<compile_context>
chip_gen: v7x
topology: tpu7x:2x2x1
jax: 0.10.0
libtpu: 0.0.40
codegen_flags: <defaults>
</compile_context>

<pallas_src>
import jax
import jax.numpy as jnp
import numpy as np
from jax.experimental import pallas as pl
from jax.experimental.pallas import tpu as pltpu


N_ACTIONS = 15
LANE = 128


def _round_up(x, m):
    return (x + m - 1) // m * m


# ----------------------------------------------------------------------------
# Fused forward kernel: conv1 -> conv2 -> fc1 -> fc_q, all VMEM resident.
# ----------------------------------------------------------------------------
def _soft_q_kernel(x_ref, w1_ref, b1_ref, w2_ref, b2_ref,
                   wf1_ref, bf1_ref, wfq_ref, bfq_ref, o_ref):
    # uint8 obs -> f32 (the /255 scaling is folded into w1 at init time).
    x = x_ref[...].astype(jnp.int32).astype(jnp.float32)

    def layer(a_f32, w_ref, b_ref, relu):
        # bf16 MXU matmul, f32 accumulate, f32 bias/ReLU epilogue.
        y = jnp.dot(a_f32.astype(jnp.bfloat16), w_ref[...],
                    preferred_element_type=jnp.float32)
        y = y + b_ref[...]
        return jnp.maximum(y, 0.0) if relu else y

    h1 = layer(x,  w1_ref,  b1_ref,  relu=True)    # conv1 (dense-unrolled)
    h2 = layer(h1, w2_ref,  b2_ref,  relu=True)    # conv2 (dense-unrolled)
    z  = layer(h2, wf1_ref, bf1_ref, relu=True)    # fc1 + ReLU
    q  = layer(z,  wfq_ref, bfq_ref, relu=False)   # fc_q (lane-padded to 128)
    o_ref[...] = q


def soft_q_forward(params, obs, n_actions):
    """obs: (B, H, W, C) uint8.  Returns q_vals: (B, n_actions) float32."""
    B, H, W, C = obs.shape
    in_dim = H * W * C
    x = obs.reshape(B, in_dim)

    # Pad the batch to a multiple of 8 sublanes; tile at up to 128 rows so the
    # grid stays >1 (and shards across TensorCores) at realistic batch sizes.
    tb = min(128, _round_up(B, 8))
    b_pad = _round_up(B, tb)
    if b_pad != B:
        x = jnp.pad(x, ((0, b_pad - B), (0, 0)))

    w1, b1 = params["w1"], params["b1"]
    w2, b2 = params["w2"], params["b2"]
    wf1, bf1 = params["wf1"], params["bf1"]
    wfq, bfq = params["wfq"], params["bfq"]
    n_pad = wfq.shape[1]

    def const_spec(a):
        # Whole array, same block for every grid step -> DMA'd once, resident.
        return pl.BlockSpec(a.shape, lambda i: (0, 0))

    out = pl.pallas_call(
        _soft_q_kernel,
        out_shape=jax.ShapeDtypeStruct((b_pad, n_pad), jnp.float32),
        grid=(b_pad // tb,),
        in_specs=[
            pl.BlockSpec((tb, in_dim), lambda i: (i, 0)),   # obs tile
            const_spec(w1), const_spec(b1),
            const_spec(w2), const_spec(b2),
            const_spec(wf1), const_spec(bf1),
            const_spec(wfq), const_spec(bfq),
        ],
        out_specs=pl.BlockSpec((tb, n_pad), lambda i: (i, 0)),
        compiler_params=pltpu.CompilerParams(
            dimension_semantics=("parallel",)),
    )(x, w1, b1, w2, b2, wf1, bf1, wfq, bfq)

    return out[:B, :n_actions]


# ----------------------------------------------------------------------------
# Parameter construction (init-time only, outside the kernel).
# ----------------------------------------------------------------------------
def _kaiming_normal(key, shape, fan_in):
    # kaiming_normal_ (fan_in, relu-gain): std = sqrt(2 / fan_in)
    return jax.random.normal(key, shape, jnp.float32) * np.sqrt(2.0 / fan_in)


def _conv_as_dense(w, b, h, w_in, stride):
    """Exact dense-matrix form of a valid conv on the flattened NHWC image.

    w: (K, K, Cin, Cout), b: (Cout,).  Returns (H*W*Cin, OH*OW*Cout) weight,
    (OH*OW*Cout,) bias; output features ordered (oh, ow, cout).
    """
    k, _, cin, cout = w.shape
    oh = (h - k) // stride + 1
    ow = (w_in - k) // stride + 1
    w_np = np.asarray(w, np.float32)
    big = np.zeros((h, w_in, cin, oh, ow, cout), np.float32)
    for oi in range(oh):
        for oj in range(ow):
            big[oi * stride:oi * stride + k,
                oj * stride:oj * stride + k, :, oi, oj, :] = w_np
    big = big.reshape(h * w_in * cin, oh * ow * cout)
    bias = np.tile(np.asarray(b, np.float32), oh * ow)
    return jnp.asarray(big), jnp.asarray(bias), oh, ow


def init_params(key, obs_shape, n_actions):
    H, W, C = obs_shape
    k1, k2, k3, k4 = jax.random.split(key, 4)

    # --- stand-in conv encoder (`conv` is injected in the PyTorch code) ---
    wc1 = _kaiming_normal(k1, (4, 4, C, 16), fan_in=4 * 4 * C)   # 4x4 s2
    bc1 = jnp.zeros((16,), jnp.float32)
    wc2 = _kaiming_normal(k2, (3, 3, 16, 32), fan_in=3 * 3 * 16)  # 3x3 s2
    bc2 = jnp.zeros((32,), jnp.float32)

    w1, b1, oh1, ow1 = _conv_as_dense(wc1, bc1, H, W, stride=2)
    w2, b2, oh2, ow2 = _conv_as_dense(wc2, bc2, oh1, ow1, stride=2)
    output_dim = oh2 * ow2 * 32

    # Fold the /255 input scaling into conv1: (x/255) @ W == x @ (W/255).
    w1 = w1 / 255.0

    # --- SoftQNetwork head (persistent params, like nn.Linear) ---
    wf1 = _kaiming_normal(k3, (output_dim, 512), fan_in=output_dim)
    bf1 = jnp.zeros((512,), jnp.float32)
    wfq = _kaiming_normal(k4, (512, n_actions), fan_in=512)
    bfq = jnp.zeros((n_actions,), jnp.float32)

    # Lane-pad fc_q to 128 output columns (dense stores; sliced in wrapper).
    n_pad = _round_up(n_actions, LANE)
    wfq_p = jnp.zeros((512, n_pad), jnp.float32).at[:, :n_actions].set(wfq)
    bfq_p = jnp.zeros((n_pad,), jnp.float32).at[:n_actions].set(bfq)

    def as_row(v):
        return v.reshape(1, -1).astype(jnp.float32)

    return dict(
        w1=w1.astype(jnp.bfloat16), b1=as_row(b1),
        w2=w2.astype(jnp.bfloat16), b2=as_row(b2),
        wf1=wf1.astype(jnp.bfloat16), bf1=as_row(bf1),
        wfq=wfq_p.astype(jnp.bfloat16), bfq=as_row(bfq_p),
    )


# ----------------------------------------------------------------------------
# Pure-JAX reference (mirrors the kernel's bf16 casts) for a sanity check.
# ----------------------------------------------------------------------------
def _ref_forward(params, obs, n_actions):
    x = obs.reshape(obs.shape[0], -1).astype(jnp.float32)

    def lin(a, w, b, relu):
        y = a.astype(jnp.bfloat16).astype(jnp.float32) @ w.astype(jnp.float32) + b
        return jnp.maximum(y, 0.0) if relu else y

    h1 = lin(x, params["w1"], params["b1"], True)
    h2 = lin(h1, params["w2"], params["b2"], True)
    z = lin(h2, params["wf1"], params["bf1"], True)
    q = lin(z, params["wfq"], params["bfq"], False)
    return q[:, :n_actions]


if __name__ == "__main__":
    key = jax.random.PRNGKey(0)
    k_obs, k_par = jax.random.split(key)

    B, H, W, C = 2, 16, 16, 4          # small procgen-like NHWC observation
    obs = jax.random.randint(k_obs, (B, H, W, C), 0, 256,
                             jnp.int32).astype(jnp.uint8)

    params = init_params(k_par, (H, W, C), N_ACTIONS)

    fwd = jax.jit(soft_q_forward, static_argnames=("n_actions",))
    q_vals = jax.block_until_ready(fwd(params, obs, n_actions=N_ACTIONS))

    q_ref = _ref_forward(params, obs, N_ACTIONS)
    assert q_vals.shape == (B, N_ACTIONS)
    assert jnp.allclose(q_vals, q_ref, atol=1e-4, rtol=1e-3), (
        float(jnp.max(jnp.abs(q_vals - q_ref))))

    print("KERNEL_OK")
</pallas_src>

<mosaic_0001>
module attributes {stable_mosaic.version = 11 : i64} {
  func.func @_soft_q_kernel(%arg0: i32, %arg1: memref<8x1024xi8, #tpu.memory_space<vmem>>, %arg2: memref<1024x784xbf16, #tpu.memory_space<vmem>>, %arg3: memref<1x784xf32, #tpu.memory_space<vmem>>, %arg4: memref<784x288xbf16, #tpu.memory_space<vmem>>, %arg5: memref<1x288xf32, #tpu.memory_space<vmem>>, %arg6: memref<288x512xbf16, #tpu.memory_space<vmem>>, %arg7: memref<1x512xf32, #tpu.memory_space<vmem>>, %arg8: memref<512x128xbf16, #tpu.memory_space<vmem>>, %arg9: memref<1x128xf32, #tpu.memory_space<vmem>>, %arg10: memref<8x128xf32, #tpu.memory_space<vmem>>) attributes {dimension_semantics = [#tpu.dimension_semantics<parallel>], iteration_bounds = array<i64: 1>, scalar_prefetch = 0 : i64, scratch_operands = 0 : i64, tpu.core_type = #tpu.core_type<tc>, window_params = [{transform_indices = @transform_0, window_bounds = array<i64: 8, 1024>}, {pipeline_mode = #tpu.pipeline_mode<synchronous>, transform_indices = @transform_1, window_bounds = array<i64: 1024, 784>}, {pipeline_mode = #tpu.pipeline_mode<synchronous>, transform_indices = @transform_2, window_bounds = array<i64: 1, 784>}, {pipeline_mode = #tpu.pipeline_mode<synchronous>, transform_indices = @transform_3, window_bounds = array<i64: 784, 288>}, {pipeline_mode = #tpu.pipeline_mode<synchronous>, transform_indices = @transform_4, window_bounds = array<i64: 1, 288>}, {pipeline_mode = #tpu.pipeline_mode<synchronous>, transform_indices = @transform_5, window_bounds = array<i64: 288, 512>}, {pipeline_mode = #tpu.pipeline_mode<synchronous>, transform_indices = @transform_6, window_bounds = array<i64: 1, 512>}, {pipeline_mode = #tpu.pipeline_mode<synchronous>, transform_indices = @transform_7, window_bounds = array<i64: 512, 128>}, {pipeline_mode = #tpu.pipeline_mode<synchronous>, transform_indices = @transform_8, window_bounds = array<i64: 1, 128>}, {transform_indices = @transform_9, window_bounds = array<i64: 8, 128>}]} {
    %c0 = arith.constant 0 : index
    %c0_0 = arith.constant 0 : index
    %0 = vector.load %arg1[%c0, %c0_0] : memref<8x1024xi8, #tpu.memory_space<vmem>>, vector<8x1024xi8>
    %1 = arith.extui %0 : vector<8x1024xi8> to vector<8x1024xi32>
    %2 = arith.sitofp %1 : vector<8x1024xi32> to vector<8x1024xf32>
    %3 = arith.truncf %2 : vector<8x1024xf32> to vector<8x1024xbf16>
    %c0_1 = arith.constant 0 : index
    %c0_2 = arith.constant 0 : index
    %4 = vector.load %arg2[%c0_1, %c0_2] : memref<1024x784xbf16, #tpu.memory_space<vmem>>, vector<1024x784xbf16>
    %cst = arith.constant dense<0.000000e+00> : vector<8x784xf32>
    %5 = tpu.matmul %3, %4, %cst {dimension_numbers = #tpu.dot_dimension_numbers<[1], [0], [0], [1], [0, 0, 1, 1], [], []>} : vector<8x1024xbf16>, vector<1024x784xbf16>, vector<8x784xf32> -> vector<8x784xf32>
    %c0_3 = arith.constant 0 : index
    %c0_4 = arith.constant 0 : index
    %6 = vector.load %arg3[%c0_3, %c0_4] : memref<1x784xf32, #tpu.memory_space<vmem>>, vector<1x784xf32>
    %7 = vector.broadcast %6 : vector<1x784xf32> to vector<8x784xf32>
    %8 = arith.addf %5, %7 : vector<8x784xf32>
    %cst_5 = arith.constant 0.000000e+00 : f32
    %9 = vector.broadcast %cst_5 : f32 to vector<8x784xf32>
    %10 = arith.maximumf %8, %9 : vector<8x784xf32>
    %11 = arith.truncf %10 : vector<8x784xf32> to vector<8x784xbf16>
    %c0_6 = arith.constant 0 : index
    %c0_7 = arith.constant 0 : index
    %12 = vector.load %arg4[%c0_6, %c0_7] : memref<784x288xbf16, #tpu.memory_space<vmem>>, vector<784x288xbf16>
    %cst_8 = arith.constant dense<0.000000e+00> : vector<8x288xf32>
    %13 = tpu.matmul %11, %12, %cst_8 {dimension_numbers = #tpu.dot_dimension_numbers<[1], [0], [0], [1], [0, 0, 1, 1], [], []>} : vector<8x784xbf16>, vector<784x288xbf16>, vector<8x288xf32> -> vector<8x288xf32>
    %c0_9 = arith.constant 0 : index
    %c0_10 = arith.constant 0 : index
    %14 = vector.load %arg5[%c0_9, %c0_10] : memref<1x288xf32, #tpu.memory_space<vmem>>, vector<1x288xf32>
    %15 = vector.broadcast %14 : vector<1x288xf32> to vector<8x288xf32>
    %16 = arith.addf %13, %15 : vector<8x288xf32>
    %cst_11 = arith.constant 0.000000e+00 : f32
    %17 = vector.broadcast %cst_11 : f32 to vector<8x288xf32>
    %18 = arith.maximumf %16, %17 : vector<8x288xf32>
    %19 = arith.truncf %18 : vector<8x288xf32> to vector<8x288xbf16>
    %c0_12 = arith.constant 0 : index
    %c0_13 = arith.constant 0 : index
    %20 = vector.load %arg6[%c0_12, %c0_13] : memref<288x512xbf16, #tpu.memory_space<vmem>>, vector<288x512xbf16>
    %cst_14 = arith.constant dense<0.000000e+00> : vector<8x512xf32>
    %21 = tpu.matmul %19, %20, %cst_14 {dimension_numbers = #tpu.dot_dimension_numbers<[1], [0], [0], [1], [0, 0, 1, 1], [], []>} : vector<8x288xbf16>, vector<288x512xbf16>, vector<8x512xf32> -> vector<8x512xf32>
    %c0_15 = arith.constant 0 : index
    %c0_16 = arith.constant 0 : index
    %22 = vector.load %arg7[%c0_15, %c0_16] : memref<1x512xf32, #tpu.memory_space<vmem>>, vector<1x512xf32>
    %23 = vector.broadcast %22 : vector<1x512xf32> to vector<8x512xf32>
    %24 = arith.addf %21, %23 : vector<8x512xf32>
    %cst_17 = arith.constant 0.000000e+00 : f32
    %25 = vector.broadcast %cst_17 : f32 to vector<8x512xf32>
    %26 = arith.maximumf %24, %25 : vector<8x512xf32>
    %27 = arith.truncf %26 : vector<8x512xf32> to vector<8x512xbf16>
    %c0_18 = arith.constant 0 : index
    %c0_19 = arith.constant 0 : index
    %28 = vector.load %arg8[%c0_18, %c0_19] : memref<512x128xbf16, #tpu.memory_space<vmem>>, vector<512x128xbf16>
    %cst_20 = arith.constant dense<0.000000e+00> : vector<8x128xf32>
    %29 = tpu.matmul %27, %28, %cst_20 {dimension_numbers = #tpu.dot_dimension_numbers<[1], [0], [0], [1], [0, 0, 1, 1], [], []>} : vector<8x512xbf16>, vector<512x128xbf16>, vector<8x128xf32> -> vector<8x128xf32>
    %c0_21 = arith.constant 0 : index
    %c0_22 = arith.constant 0 : index
    %30 = vector.load %arg9[%c0_21, %c0_22] : memref<1x128xf32, #tpu.memory_space<vmem>>, vector<1x128xf32>
    %31 = vector.broadcast %30 : vector<1x128xf32> to vector<8x128xf32>
    %32 = arith.addf %29, %31 : vector<8x128xf32>
    %c0_23 = arith.constant 0 : index
    %c0_24 = arith.constant 0 : index
    %33 = vector.load %arg10[%c0_23, %c0_24] : memref<8x128xf32, #tpu.memory_space<vmem>>, vector<8x128xf32>
    tpu.vector_store %arg10[%c0_23, %c0_24], %32 {strides = array<i32>} : memref<8x128xf32, #tpu.memory_space<vmem>>, vector<8x128xf32>,
    return
  }
  func.func @transform_0(%arg0: i32) -> (i32, i32) {
    %c0_i32 = arith.constant 0 : i32
    %c0_i32_0 = arith.constant 0 : i32
    return %arg0, %c0_i32 : i32, i32
  }
  func.func @transform_1(%arg0: i32) -> (i32, i32) {
    %c0_i32 = arith.constant 0 : i32
    %c0_i32_0 = arith.constant 0 : i32
    %c0_i32_1 = arith.constant 0 : i32
    return %c0_i32, %c0_i32_0 : i32, i32
  }
  func.func @transform_2(%arg0: i32) -> (i32, i32) {
    %c0_i32 = arith.constant 0 : i32
    %c0_i32_0 = arith.constant 0 : i32
    %c0_i32_1 = arith.constant 0 : i32
    return %c0_i32, %c0_i32_0 : i32, i32
  }
  func.func @transform_3(%arg0: i32) -> (i32, i32) {
    %c0_i32 = arith.constant 0 : i32
    %c0_i32_0 = arith.constant 0 : i32
    %c0_i32_1 = arith.constant 0 : i32
    return %c0_i32, %c0_i32_0 : i32, i32
  }
  func.func @transform_4(%arg0: i32) -> (i32, i32) {
    %c0_i32 = arith.constant 0 : i32
    %c0_i32_0 = arith.constant 0 : i32
    %c0_i32_1 = arith.constant 0 : i32
    return %c0_i32, %c0_i32_0 : i32, i32
  }
  func.func @transform_5(%arg0: i32) -> (i32, i32) {
    %c0_i32 = arith.constant 0 : i32
    %c0_i32_0 = arith.constant 0 : i32
    %c0_i32_1 = arith.constant 0 : i32
    return %c0_i32, %c0_i32_0 : i32, i32
  }
  func.func @transform_6(%arg0: i32) -> (i32, i32) {
    %c0_i32 = arith.constant 0 : i32
    %c0_i32_0 = arith.constant 0 : i32
    %c0_i32_1 = arith.constant 0 : i32
    return %c0_i32, %c0_i32_0 : i32, i32
  }
  func.func @transform_7(%arg0: i32) -> (i32, i32) {
    %c0_i32 = arith.constant 0 : i32
    %c0_i32_0 = arith.constant 0 : i32
    %c0_i32_1 = arith.constant 0 : i32
    return %c0_i32, %c0_i32_0 : i32, i32
  }
  func.func @transform_8(%arg0: i32) -> (i32, i32) {
    %c0_i32 = arith.constant 0 : i32
    %c0_i32_0 = arith.constant 0 : i32
    %c0_i32_1 = arith.constant 0 : i32
    return %c0_i32, %c0_i32_0 : i32, i32
  }
  func.func @transform_9(%arg0: i32) -> (i32, i32) {
    %c0_i32 = arith.constant 0 : i32
    %c0_i32_0 = arith.constant 0 : i32
    return %arg0, %c0_i32 : i32, i32
  }
}

</mosaic_0001>

<bundles_post_ra>
// kernel: soft_q_forward.1
= control target key start
LH: loop header
LB: loop body
LE: loop exit
PB: predicated region body
PF: predicated region fallthrough
CT: control target
= control target key end

     0   :  { %vm4583_vm0 = vcmask 130048   ;;  %vm7860_vm1 = vmmov 0   ;;  %vm5371_vm2 = vcmask 261120   ;;  %s10174_s1 = inlined_call_operand.vmem [shape: bf16[1024,784], index: 1, kind: input, shape index: {}]   ;;  %s10175_s0 = inlined_call_operand.vmem [shape: u8[8,1024], index: 0, kind: input, shape index: {}]   ;;  %s10176_s3 = inlined_call_operand.vmem [shape: bf16[784,288], index: 3, kind: input, shape index: {}]   ;;  %s10177_s2 = inlined_call_operand.vmem [shape: f32[1,784], index: 2, kind: input, shape index: {}]   ;;  %s10178_s5 = inlined_call_operand.vmem [shape: bf16[288,512], index: 5, kind: input, shape index: {}]   ;;  %s10179_s4 = inlined_call_operand.vmem [shape: f32[1,288], index: 4, kind: input, shape index: {}]   ;;  %s10180_s7 = inlined_call_operand.vmem [shape: bf16[512,128], index: 7, kind: input, shape index: {}]   ;;  %s10181_s6 = inlined_call_operand.vmem [shape: f32[1,512], index: 6, kind: input, shape index: {}]   ;;  %s10182_s8 = inlined_call_operand.vmem [shape: f32[1,128], index: 8, kind: input, shape index: {}]   ;;  %s10183_s9 = inlined_call_operand.vmem [shape: f32[8,128], index: 9, kind: output, shape index: {}]  }
   0x1   :  { %v6882_v0 = vld [vmem:[%s10174_s1 + $0x4] ss:$28 sps:$4 sm:$0xff]   ;;  %v6884_v1 = vld [vmem:[%s10174_s1 + $0xc] ss:$28 sps:$4 sm:$0xff]   ;;  %v6888_v4 = vld [vmem:[%s10174_s1 + $0x3c] ss:$28 sps:$4 sm:$0xff]  }
   0x2   :  { %2920 = vmatprep.subr.bf16.mxu0 %v6882_v0  ;;  %v6886_v2 = vld [vmem:[%s10174_s1] ss:$28 sps:$4 sm:$0xff]   ;;  %v6887_v3 = vld [vmem:[%s10174_s1 + $0x8] ss:$28 sps:$4 sm:$0xff]   ;;  %3084 = vmatprep.subr.bf16.mxu1 %v6884_v1  ;;  %v6892_v6 = vld [vmem:[%s10174_s1 + $0x38] ss:$28 sps:$4 sm:$0xff]  }
   0x3   :  { %2921 = vmatpush1.bf16.msra.mxu0 %v6886_v2  ;;  %3085 = vmatpush1.bf16.msra.mxu1 %v6887_v3  ;;  %v6890_v5 = vld [vmem:[%s10174_s1 + $0x44] ss:$28 sps:$4 sm:$0xff]   ;;  %v6894_v8 = vld [vmem:[%s10174_s1 + $0x74] ss:$28 sps:$4 sm:$0xff]   ;;  %v6896_v9 = vld [vmem:[%s10174_s1 + $0x7c] ss:$28 sps:$4 sm:$0xff]  }
   0x4   :  { %2922 = vmatprep.subr.bf16.mxu0 %v6888_v4  ;;  %v6893_v7 = vld [vmem:[%s10174_s1 + $0x40] ss:$28 sps:$4 sm:$0xff]   ;;  %3086 = vmatprep.subr.bf16.mxu1 %v6890_v5  ;;  %v6898_v10 = vld [vmem:[%s10174_s1 + $0x70] ss:$28 sps:$4 sm:$0xff]   ;;  %v6899_v11 = vld [vmem:[%s10174_s1 + $0x78] ss:$28 sps:$4 sm:$0xff]  }
   0x5   :  { %v6900_v12 = vld [vmem:[%s10174_s1 + $0xac] ss:$28 sps:$4 sm:$0xff]   ;;  %v6902_v13 = vld [vmem:[%s10174_s1 + $0xb4] ss:$28 sps:$4 sm:$0xff]   ;;  %v6906_v16 = vld [vmem:[%s10174_s1 + $0xe4] ss:$28 sps:$4 sm:$0xff]  }
   0x6   :  { %v6904_v14 = vld [vmem:[%s10174_s1 + $0xa8] ss:$28 sps:$4 sm:$0xff]   ;;  %v6905_v15 = vld [vmem:[%s10174_s1 + $0xb0] ss:$28 sps:$4 sm:$0xff]   ;;  %v6910_v18 = vld [vmem:[%s10174_s1 + $0xe0] ss:$28 sps:$4 sm:$0xff]  }
   0x7   :  { %2923 = vmatpush1.bf16.msra.mxu0 %v6892_v6  ;;  %3087 = vmatpush1.bf16.msra.mxu1 %v6893_v7  ;;  %v6908_v17 = vld [vmem:[%s10174_s1 + $0xec] ss:$28 sps:$4 sm:$0xff]   ;;  %v6912_v20 = vld [vmem:[%s10174_s1 + $0x11c] ss:$28 sps:$4 sm:$0xff]   ;;  %v6914_v21 = vld [vmem:[%s10174_s1 + $0x124] ss:$28 sps:$4 sm:$0xff]  }
   0x8   :  { %2924 = vmatprep.subr.bf16.mxu0 %v6894_v8  ;;  %3088 = vmatprep.subr.bf16.mxu1 %v6896_v9  ;;  %v6911_v19 = vld [vmem:[%s10174_s1 + $0xe8] ss:$28 sps:$4 sm:$0xff]   ;;  %v6916_v22 = vld [vmem:[%s10174_s1 + $0x118] ss:$28 sps:$4 sm:$0xff]   ;;  %v6917_v23 = vld [vmem:[%s10174_s1 + $0x120] ss:$28 sps:$4 sm:$0xff]  }
   0x9   :  { %v6918_v24 = vld [vmem:[%s10174_s1 + $0x154] ss:$28 sps:$4 sm:$0xff]   ;;  %v6920_v25 = vld [vmem:[%s10174_s1 + $0x15c] ss:$28 sps:$4 sm:$0xff]   ;;  %v6924_v28 = vld [vmem:[%s10174_s1 + $0x18c] ss:$28 sps:$4 sm:$0xff]  }
   0xa   :  { %v6922_v26 = vld [vmem:[%s10174_s1 + $0x150] ss:$28 sps:$4 sm:$0xff]   ;;  %v6923_v27 = vld [vmem:[%s10174_s1 + $0x158] ss:$28 sps:$4 sm:$0xff]   ;;  %v6928_v30 = vld [vmem:[%s10174_s1 + $0x188] ss:$28 sps:$4 sm:$0xff]  }
   0xb   :  { %2925 = vmatpush1.bf16.msra.mxu0 %v6898_v10  ;;  %3089 = vmatpush1.bf16.msra.mxu1 %v6899_v11  ;;  %v6926_v29 = vld [vmem:[%s10174_s1 + $0x194] ss:$28 sps:$4 sm:$0xff]   ;;  %v6930_v32 = vld [vmem:[%s10174_s1 + $0x1c4] ss:$28 sps:$4 sm:$0xff]   ;;  %v6932_v33 = vld [vmem:[%s10174_s1 + $0x1cc] ss:$28 sps:$4 sm:$0xff]  }
   0xc   :  { %2926 = vmatprep.subr.bf16.mxu0 %v6900_v12  ;;  %3090 = vmatprep.subr.bf16.mxu1 %v6902_v13  ;;  %v6929_v31 = vld [vmem:[%s10174_s1 + $0x190] ss:$28 sps:$4 sm:$0xff]   ;;  %v6934_v34 = vld [vmem:[%s10174_s1 + $0x1c0] ss:$28 sps:$4 sm:$0xff]   ;;  %v6935_v35 = vld [vmem:[%s10174_s1 + $0x1c8] ss:$28 sps:$4 sm:$0xff]  }
   0xd   :  { %v6936_v36 = vld [vmem:[%s10174_s1 + $0x1fc] ss:$28 sps:$4 sm:$0xff]   ;;  %v6938_v37 = vld [vmem:[%s10174_s1 + $0x204] ss:$28 sps:$4 sm:$0xff]   ;;  %v6942_v40 = vld [vmem:[%s10174_s1 + $0x234] ss:$28 sps:$4 sm:$0xff]  }
   0xe   :  { %v6940_v38 = vld [vmem:[%s10174_s1 + $0x1f8] ss:$28 sps:$4 sm:$0xff]   ;;  %v6941_v39 = vld [vmem:[%s10174_s1 + $0x200] ss:$28 sps:$4 sm:$0xff]   ;;  %v6946_v42 = vld [vmem:[%s10174_s1 + $0x230] ss:$28 sps:$4 sm:$0xff]  }
   0xf   :  { %2927 = vmatpush1.bf16.msra.mxu0 %v6904_v14  ;;  %3091 = vmatpush1.bf16.msra.mxu1 %v6905_v15  ;;  %v6944_v41 = vld [vmem:[%s10174_s1 + $0x23c] ss:$28 sps:$4 sm:$0xff]   ;;  %v6948_v44 = vld [vmem:[%s10174_s1 + $0x26c] ss:$28 sps:$4 sm:$0xff]   ;;  %v6950_v45 = vld [vmem:[%s10174_s1 + $0x274] ss:$28 sps:$4 sm:$0xff]  }
  0x10   :  { %2928 = vmatprep.subr.bf16.mxu0 %v6906_v16  ;;  %3092 = vmatprep.subr.bf16.mxu1 %v6908_v17  ;;  %v6947_v43 = vld [vmem:[%s10174_s1 + $0x238] ss:$28 sps:$4 sm:$0xff]   ;;  %v33_v46 = vld [vmem:[%s10175_s0] sm:$0xff]  ;;  %v6953_v49 = vld [vmem:[%s10174_s1 + $0x270] ss:$28 sps:$4 sm:$0xff]  }
  0x11   :  { %v6952_v47 = vld [vmem:[%s10174_s1 + $0x268] ss:$28 sps:$4 sm:$0xff]   ;;  %v35_v48 = vunpack.c.l.u8.bf16 %v33_v46  ;;  %v6958_v53 = vld [vmem:[%s10174_s1 + $0x2a0] ss:$28 sps:$4 sm:$0xff]   ;;  %v6964_v57 = vld [vmem:[%s10174_s1 + $0x2d8] ss:$28 sps:$4 sm:$0xff]   ;;  %v8116_v5 = vunpack.c.h.u8.bf16 %v33_v46 }
  0x12   :  { %v6954_v50 = vld [vmem:[%s10174_s1 + $0x2a4] ss:$28 sps:$4 sm:$0xff]   ;;  %v6956_v51 = vld [vmem:[%s10174_s1 + $0x2ac] ss:$28 sps:$4 sm:$0xff]   ;;  %v6960_v55 = vld [vmem:[%s10174_s1 + $0x2dc] ss:$28 sps:$4 sm:$0xff]  }
  0x13   :  { %2929 = vmatpush1.bf16.msra.mxu0 %v6910_v18  ;;  %3093 = vmatpush1.bf16.msra.mxu1 %v6911_v19  ;;  %v8064_v52 = vcombine.high %v35_v48, %v35_v48  ;;  %v6959_v54 = vld [vmem:[%s10174_s1 + $0x2a8] ss:$28 sps:$4 sm:$0xff]   ;;  %v6965_v58 = vld [vmem:[%s10174_s1 + $0x2e0] ss:$28 sps:$4 sm:$0xff]   ;;  %v6966_v59 = vld [vmem:[%s10174_s1 + $0x314] ss:$28 sps:$4 sm:$0xff]   ;;  %v8121_v7 = vcombine.low %v35_v48, %v35_v48  ;;  %v8134_v11 = vcombine.high %v8116_v5, %v8116_v5 }
  0x14   :  { %2930 = vmatprep.subr.bf16.mxu0 %v6912_v20  ;;  %3094 = vmatprep.subr.bf16.mxu1 %v6914_v21  ;;  %v6962_v56 = vld [vmem:[%s10174_s1 + $0x2e4] ss:$28 sps:$4 sm:$0xff]   ;;  %v6968_v60 = vld [vmem:[%s10174_s1 + $0x31c] ss:$28 sps:$4 sm:$0xff]   ;;  %v6970_v61 = vld [vmem:[%s10174_s1 + $0x310] ss:$28 sps:$4 sm:$0xff]  }
  0x15   :  { %2952 = vmatprep.mubr.bf16.mxu0 %v8064_v52  ;;  %3116 = vmatprep.mubr.bf16.mxu1 %v8064_v52  ;;  %v6971_v62 = vld [vmem:[%s10174_s1 + $0x318] ss:$28 sps:$4 sm:$0xff]   ;;  %v6972_v63 = vld [vmem:[%s10174_s1 + $0x34c] ss:$28 sps:$4 sm:$0xff]   ;;  %v6980_v3 = vld [vmem:[%s10174_s1 + $0x384] ss:$28 sps:$4 sm:$0xff]  }
  0x16   :  { %v6974_v0 = vld [vmem:[%s10174_s1 + $0x354] ss:$28 sps:$4 sm:$0xff]   ;;  %v6976_v1 = vld [vmem:[%s10174_s1 + $0x348] ss:$28 sps:$4 sm:$0xff]   ;;  %v6978_v6 = vld [vmem:[%s10174_s1 + $0x380] ss:$28 sps:$4 sm:$0xff]  }
  0x17   :  { %2931 = vmatpush1.bf16.msra.mxu0 %v6916_v22  ;;  %3095 = vmatpush1.bf16.msra.mxu1 %v6917_v23  ;;  %v6977_v2 = vld [vmem:[%s10174_s1 + $0x350] ss:$28 sps:$4 sm:$0xff]   ;;  %v6981_v8 = vld [vmem:[%s10174_s1 + $0x388] ss:$28 sps:$4 sm:$0xff]   ;;  %v6986_v9 = vld [vmem:[%s10174_s1 + $0x3bc] ss:$28 sps:$4 sm:$0xff]  }
  0x18   :  { %2932 = vmatprep.subr.bf16.mxu0 %v6918_v24  ;;  %3096 = vmatprep.subr.bf16.mxu1 %v6920_v25  ;;  %v6983_v4 = vld [vmem:[%s10174_s1 + $0x38c] ss:$28 sps:$4 sm:$0xff]   ;;  %v6989_v10 = vld [vmem:[%s10174_s1 + $0x3c4] ss:$28 sps:$4 sm:$0xff]   ;;  %v6984_v12 = vld [vmem:[%s10174_s1 + $0x3b8] ss:$28 sps:$4 sm:$0xff]  }
  0x19   :  { %v6987_v13 = vld [vmem:[%s10174_s1 + $0x3c0] ss:$28 sps:$4 sm:$0xff]   ;;  %v6992_v14 = vld [vmem:[%s10174_s1 + $0x3f4] ss:$28 sps:$4 sm:$0xff]   ;;  %v6998_v18 = vld [vmem:[%s10174_s1 + $0x42c] ss:$28 sps:$4 sm:$0xff]  }
  0x1a   :  { %v6995_v15 = vld [vmem:[%s10174_s1 + $0x3fc] ss:$28 sps:$4 sm:$0xff]   ;;  %v6990_v16 = vld [vmem:[%s10174_s1 + $0x3f0] ss:$28 sps:$4 sm:$0xff]   ;;  %v6996_v20 = vld [vmem:[%s10174_s1 + $0x428] ss:$28 sps:$4 sm:$0xff]  }
  0x1b   :  { %2933 = vmatpush1.bf16.msra.mxu0 %v6922_v26  ;;  %3097 = vmatpush1.bf16.msra.mxu1 %v6923_v27  ;;  %v6993_v17 = vld [vmem:[%s10174_s1 + $0x3f8] ss:$28 sps:$4 sm:$0xff]   ;;  %v6999_v21 = vld [vmem:[%s10174_s1 + $0x430] ss:$28 sps:$4 sm:$0xff]   ;;  %v7004_v22 = vld [vmem:[%s10174_s1 + $0x464] ss:$28 sps:$4 sm:$0xff]  }
  0x1c   :  { %2934 = vmatprep.subr.bf16.mxu0 %v6924_v28  ;;  %3098 = vmatprep.subr.bf16.mxu1 %v6926_v29  ;;  %v7001_v19 = vld [vmem:[%s10174_s1 + $0x434] ss:$28 sps:$4 sm:$0xff]   ;;  %v7007_v23 = vld [vmem:[%s10174_s1 + $0x46c] ss:$28 sps:$4 sm:$0xff]   ;;  %v7002_v24 = vld [vmem:[%s10174_s1 + $0x460] ss:$28 sps:$4 sm:$0xff]  }
  0x1d   :  { %v7005_v25 = vld [vmem:[%s10174_s1 + $0x468] ss:$28 sps:$4 sm:$0xff]   ;;  %v7010_v26 = vld [vmem:[%s10174_s1 + $0x49c] ss:$28 sps:$4 sm:$0xff]   ;;  %v7040_v46 = vld [vmem:[%s10174_s1 + $0x5b4] ss:$28 sps:$4 sm:$0xff]  }
  0x1e   :  { %v7013_v27 = vld [vmem:[%s10174_s1 + $0x4a4] ss:$28 sps:$4 sm:$0xff]   ;;  %v7008_v28 = vld [vmem:[%s10174_s1 + $0x498] ss:$28 sps:$4 sm:$0xff]   ;;  %v7038_v48 = vld [vmem:[%s10174_s1 + $0x5b0] ss:$28 sps:$4 sm:$0xff]  }
  0x1f   :  { %2935 = vmatpush1.bf16.msra.mxu0 %v6928_v30  ;;  %3099 = vmatpush1.bf16.msra.mxu1 %v6929_v31  ;;  %v7011_v29 = vld [vmem:[%s10174_s1 + $0x4a0] ss:$28 sps:$4 sm:$0xff]   ;;  %v7016_v30 = vld [vmem:[%s10174_s1 + $0x4d4] ss:$28 sps:$4 sm:$0xff]  }
  0x20   :  { %2936 = vmatprep.subr.bf16.mxu0 %v6930_v32  ;;  %3100 = vmatprep.subr.bf16.mxu1 %v6932_v33  ;;  %v7019_v31 = vld [vmem:[%s10174_s1 + $0x4dc] ss:$28 sps:$4 sm:$0xff]   ;;  %v7014_v32 = vld [vmem:[%s10174_s1 + $0x4d0] ss:$28 sps:$4 sm:$0xff]  }
  0x21   :  { %v7017_v33 = vld [vmem:[%s10174_s1 + $0x4d8] ss:$28 sps:$4 sm:$0xff]  }
  0x23   :  { %2937 = vmatpush1.bf16.msra.mxu0 %v6934_v34  ;;  %3101 = vmatpush1.bf16.msra.mxu1 %v6935_v35  ;;  %v7022_v34 = vld [vmem:[%s10174_s1 + $0x50c] ss:$28 sps:$4 sm:$0xff]   ;;  %v7025_v35 = vld [vmem:[%s10174_s1 + $0x514] ss:$28 sps:$4 sm:$0xff]  }
  0x24   :  { %2938 = vmatprep.subr.bf16.mxu0 %v6936_v36  ;;  %3102 = vmatprep.subr.bf16.mxu1 %v6938_v37  ;;  %v7020_v36 = vld [vmem:[%s10174_s1 + $0x508] ss:$28 sps:$4 sm:$0xff]   ;;  %v7023_v37 = vld [vmem:[%s10174_s1 + $0x510] ss:$28 sps:$4 sm:$0xff]  }
  0x27   :  { %2939 = vmatpush1.bf16.msra.mxu0 %v6940_v38  ;;  %3103 = vmatpush1.bf16.msra.mxu1 %v6941_v39  ;;  %v7028_v38 = vld [vmem:[%s10174_s1 + $0x544] ss:$28 sps:$4 sm:$0xff]   ;;  %v7031_v39 = vld [vmem:[%s10174_s1 + $0x54c] ss:$28 sps:$4 sm:$0xff]  }
  0x28   :  { %2940 = vmatprep.subr.bf16.mxu0 %v6942_v40  ;;  %3104 = vmatprep.subr.bf16.mxu1 %v6944_v41  ;;  %v7026_v40 = vld [vmem:[%s10174_s1 + $0x540] ss:$28 sps:$4 sm:$0xff]   ;;  %v7029_v41 = vld [vmem:[%s10174_s1 + $0x548] ss:$28 sps:$4 sm:$0xff]  }
  0x2b   :  { %2941 = vmatpush1.bf16.msra.mxu0 %v6946_v42  ;;  %3105 = vmatpush1.bf16.msra.mxu1 %v6947_v43  ;;  %v7034_v42 = vld [vmem:[%s10174_s1 + $0x57c] ss:$28 sps:$4 sm:$0xff]   ;;  %v7037_v43 = vld [vmem:[%s10174_s1 + $0x584] ss:$28 sps:$4 sm:$0xff]  }
  0x2c   :  { %2942 = vmatprep.subr.bf16.mxu0 %v6948_v44  ;;  %3106 = vmatprep.subr.bf16.mxu1 %v6950_v45  ;;  %v7032_v44 = vld [vmem:[%s10174_s1 + $0x578] ss:$28 sps:$4 sm:$0xff]   ;;  %v7035_v45 = vld [vmem:[%s10174_s1 + $0x580] ss:$28 sps:$4 sm:$0xff]  }
  0x2f   :  { %2943 = vmatpush1.bf16.msra.mxu0 %v6952_v47  ;;  %3107 = vmatpush1.bf16.msra.mxu1 %v6953_v49  ;;  %v7043_v47 = vld [vmem:[%s10174_s1 + $0x5bc] ss:$28 sps:$4 sm:$0xff]  }
  0x30   :  { %2944 = vmatprep.subr.bf16.mxu0 %v6954_v50  ;;  %3108 = vmatprep.subr.bf16.mxu1 %v6956_v51  ;;  %v7041_v49 = vld [vmem:[%s10174_s1 + $0x5b8] ss:$28 sps:$4 sm:$0xff]   ;;  %v7046_v50 = vld [vmem:[%s10174_s1 + $0x5ec] ss:$28 sps:$4 sm:$0xff]  }
  0x31   :  { %v7049_v51 = vld [vmem:[%s10174_s1 + $0x5f4] ss:$28 sps:$4 sm:$0xff]  }
  0x33   :  { %2945 = vmatpush1.bf16.msra.mxu0 %v6958_v53  ;;  %3109 = vmatpush1.bf16.msra.mxu1 %v6959_v54  ;;  %v7044_v53 = vld [vmem:[%s10174_s1 + $0x5e8] ss:$28 sps:$4 sm:$0xff]   ;;  %v7047_v54 = vld [vmem:[%s10174_s1 + $0x5f0] ss:$28 sps:$4 sm:$0xff]  }
  0x34   :  { %2946 = vmatprep.subr.bf16.mxu0 %v6960_v55  ;;  %3110 = vmatprep.subr.bf16.mxu1 %v6962_v56  ;;  %v7052_v55 = vld [vmem:[%s10174_s1 + $0x624] ss:$28 sps:$4 sm:$0xff]   ;;  %v7055_v56 = vld [vmem:[%s10174_s1 + $0x62c] ss:$28 sps:$4 sm:$0xff]  }
  0x37   :  { %2947 = vmatpush1.bf16.msra.mxu0 %v6964_v57  ;;  %3111 = vmatpush1.bf16.msra.mxu1 %v6965_v58  ;;  %v7050_v57 = vld [vmem:[%s10174_s1 + $0x620] ss:$28 sps:$4 sm:$0xff]   ;;  %v7053_v58 = vld [vmem:[%s10174_s1 + $0x628] ss:$28 sps:$4 sm:$0xff]  }
  0x38   :  { %2948 = vmatprep.subr.bf16.mxu0 %v6966_v59  ;;  %3112 = vmatprep.subr.bf16.mxu1 %v6968_v60  ;;  %v7058_v59 = vld [vmem:[%s10174_s1 + $0x65c] ss:$28 sps:$4 sm:$0xff]   ;;  %v7061_v60 = vld [vmem:[%s10174_s1 + $0x664] ss:$28 sps:$4 sm:$0xff]  }
  0x3b   :  { %2949 = vmatpush1.bf16.msra.mxu0 %v6970_v61  ;;  %3113 = vmatpush1.bf16.msra.mxu1 %v6971_v62  ;;  %v7056_v61 = vld [vmem:[%s10174_s1 + $0x658] ss:$28 sps:$4 sm:$0xff]   ;;  %v7059_v62 = vld [vmem:[%s10174_s1 + $0x660] ss:$28 sps:$4 sm:$0xff]  }
  0x3c   :  { %2950 = vmatprep.subr.bf16.mxu0 %v6972_v63  ;;  %3114 = vmatprep.subr.bf16.mxu1 %v6974_v0  ;;  %v7064_v63 = vld [vmem:[%s10174_s1 + $0x694] ss:$28 sps:$4 sm:$0xff]   ;;  %v7067_v0 = vld [vmem:[%s10174_s1 + $0x69c] ss:$28 sps:$4 sm:$0xff]  }
  0x3f   :  { %2951 = vmatpush1.bf16.msra.mxu0 %v6976_v1  ;;  %3115 = vmatpush1.bf16.msra.mxu1 %v6977_v2  ;;  %v7062_v1 = vld [vmem:[%s10174_s1 + $0x690] ss:$28 sps:$4 sm:$0xff]   ;;  %v7065_v2 = vld [vmem:[%s10174_s1 + $0x698] ss:$28 sps:$4 sm:$0xff]  }
  0x40   :  { %2961 = vmatprep.subr.bf16.mxu0 %v6980_v3  ;;  %3125 = vmatprep.subr.bf16.mxu1 %v6983_v4  ;;  %v7070_v3 = vld [vmem:[%s10174_s1 + $0x6cc] ss:$28 sps:$4 sm:$0xff]   ;;  %v7073_v4 = vld [vmem:[%s10174_s1 + $0x6d4] ss:$28 sps:$4 sm:$0xff]  }
  0x42   :  { %2953 = vmatmul.mubr.bf16.vlgmr.msra.gmra.mrb[0].mxu0 %v8121_v7  ;;  %3117 = vmatmul.mubr.bf16.vlgmr.msra.gmra.mrb[0].mxu1 %v8121_v7 }
  0x43   :  { %2962 = vmatpush1.bf16.msra.mxu0 %v6978_v6  ;;  %3126 = vmatpush1.bf16.msra.mxu1 %v6981_v8  ;;  %v7068_v6 = vld [vmem:[%s10174_s1 + $0x6c8] ss:$28 sps:$4 sm:$0xff]   ;;  %v7071_v8 = vld [vmem:[%s10174_s1 + $0x6d0] ss:$28 sps:$4 sm:$0xff]  }
  0x44   :  { %2963 = vmatprep.subr.bf16.mxu0 %v6986_v9  ;;  %3127 = vmatprep.subr.bf16.mxu1 %v6989_v10  ;;  %v7076_v9 = vld [vmem:[%s10174_s1 + $0x704] ss:$28 sps:$4 sm:$0xff]   ;;  %v7079_v10 = vld [vmem:[%s10174_s1 + $0x70c] ss:$28 sps:$4 sm:$0xff]  }
  0x45   :  { %2993 = vmatprep.mubr.bf16.mxu0 %v8134_v11  ;;  %3157 = vmatprep.mubr.bf16.mxu1 %v8134_v11 }
  0x47   :  { %2964 = vmatpush1.bf16.msra.mxu0 %v6984_v12  ;;  %3128 = vmatpush1.bf16.msra.mxu1 %v6987_v13  ;;  %v7074_v12 = vld [vmem:[%s10174_s1 + $0x700] ss:$28 sps:$4 sm:$0xff]   ;;  %v8325_v13 = vcombine.low %v8116_v5, %v8116_v5 }
  0x48   :  { %2965 = vmatprep.subr.bf16.mxu0 %v6992_v14  ;;  %3129 = vmatprep.subr.bf16.mxu1 %v6995_v15  ;;  %v7077_v14 = vld [vmem:[%s10174_s1 + $0x708] ss:$28 sps:$4 sm:$0xff]  }
  0x49   :  { %v8333_v15 = vld [vmem:[%s10175_s0 + $0x8] sm:$0xff]  ;;  %v7085_v5 = vld [vmem:[%s10174_s1 + $0x744] ss:$28 sps:$4 sm:$0xff]  }
  0x4b   :  { %2966 = vmatpush1.bf16.msra.mxu0 %v6990_v16  ;;  %3130 = vmatpush1.bf16.msra.mxu1 %v6993_v17  ;;  %v7082_v16 = vld [vmem:[%s10174_s1 + $0x73c] ss:$28 sps:$4 sm:$0xff]   ;;  %v8342_v17 = vunpack.c.l.u8.bf16 %v8333_v15 }
  0x4c   :  { %2967 = vmatprep.subr.bf16.mxu0 %v6998_v18  ;;  %3131 = vmatprep.subr.bf16.mxu1 %v7001_v19  ;;  %v7080_v19 = vld [vmem:[%s10174_s1 + $0x738] ss:$28 sps:$4 sm:$0xff]  }
  0x4d   :  { %v8348_v18 = vcombine.high %v8342_v17, %v8342_v17 }
  0x4f   :  { %2968 = vmatpush1.bf16.msra.mxu0 %v6996_v20  ;;  %3132 = vmatpush1.bf16.msra.mxu1 %v6999_v21  ;;  %v7083_v20 = vld [vmem:[%s10174_s1 + $0x740] ss:$28 sps:$4 sm:$0xff]   ;;  %v7088_v21 = vld [vmem:[%s10174_s1 + $0x774] ss:$28 sps:$4 sm:$0xff]  }
  0x50   :  { %2969 = vmatprep.subr.bf16.mxu0 %v7004_v22  ;;  %3133 = vmatprep.subr.bf16.mxu1 %v7007_v23  ;;  %v7091_v22 = vld [vmem:[%s10174_s1 + $0x77c] ss:$28 sps:$4 sm:$0xff]   ;;  %v7086_v23 = vld [vmem:[%s10174_s1 + $0x770] ss:$28 sps:$4 sm:$0xff]  }
  0x53   :  { %2970 = vmatpush1.bf16.msra.mxu0 %v7002_v24  ;;  %3134 = vmatpush1.bf16.msra.mxu1 %v7005_v25  ;;  %v7089_v24 = vld [vmem:[%s10174_s1 + $0x778] ss:$28 sps:$4 sm:$0xff]   ;;  %v7094_v25 = vld [vmem:[%s10174_s1 + $0x7ac] ss:$28 sps:$4 sm:$0xff]  }
  0x54   :  { %2971 = vmatprep.subr.bf16.mxu0 %v7010_v26  ;;  %3135 = vmatprep.subr.bf16.mxu1 %v7013_v27  ;;  %v7097_v26 = vld [vmem:[%s10174_s1 + $0x7b4] ss:$28 sps:$4 sm:$0xff]   ;;  %v7092_v27 = vld [vmem:[%s10174_s1 + $0x7a8] ss:$28 sps:$4 sm:$0xff]  }
  0x57   :  { %2972 = vmatpush1.bf16.msra.mxu0 %v7008_v28  ;;  %3136 = vmatpush1.bf16.msra.mxu1 %v7011_v29  ;;  %v7095_v28 = vld [vmem:[%s10174_s1 + $0x7b0] ss:$28 sps:$4 sm:$0xff]   ;;  %v7100_v29 = vld [vmem:[%s10174_s1 + $0x7e4] ss:$28 sps:$4 sm:$0xff]  }
  0x58   :  { %2973 = vmatprep.subr.bf16.mxu0 %v7016_v30  ;;  %3137 = vmatprep.subr.bf16.mxu1 %v7019_v31  ;;  %v7103_v30 = vld [vmem:[%s10174_s1 + $0x7ec] ss:$28 sps:$4 sm:$0xff]   ;;  %v7098_v31 = vld [vmem:[%s10174_s1 + $0x7e0] ss:$28 sps:$4 sm:$0xff]  }
  0x5b   :  { %2974 = vmatpush1.bf16.msra.mxu0 %v7014_v32  ;;  %3138 = vmatpush1.bf16.msra.mxu1 %v7017_v33  ;;  %v7101_v32 = vld [vmem:[%s10174_s1 + $0x7e8] ss:$28 sps:$4 sm:$0xff]   ;;  %v7106_v33 = vld [vmem:[%s10174_s1 + $0x81c] ss:$28 sps:$4 sm:$0xff]  }
  0x5c   :  { %2975 = vmatprep.subr.bf16.mxu0 %v7022_v34  ;;  %3139 = vmatprep.subr.bf16.mxu1 %v7025_v35  ;;  %v7109_v34 = vld [vmem:[%s10174_s1 + $0x824] ss:$28 sps:$4 sm:$0xff]   ;;  %v7104_v35 = vld [vmem:[%s10174_s1 + $0x818] ss:$28 sps:$4 sm:$0xff]  }
  0x5f   :  { %2976 = vmatpush1.bf16.msra.mxu0 %v7020_v36  ;;  %3140 = vmatpush1.bf16.msra.mxu1 %v7023_v37  ;;  %v7107_v36 = vld [vmem:[%s10174_s1 + $0x820] ss:$28 sps:$4 sm:$0xff]   ;;  %v7112_v37 = vld [vmem:[%s10174_s1 + $0x854] ss:$28 sps:$4 sm:$0xff]  }
  0x60   :  { %2977 = vmatprep.subr.bf16.mxu0 %v7028_v38  ;;  %3141 = vmatprep.subr.bf16.mxu1 %v7031_v39  ;;  %v7115_v38 = vld [vmem:[%s10174_s1 + $0x85c] ss:$28 sps:$4 sm:$0xff]   ;;  %v7110_v39 = vld [vmem:[%s10174_s1 + $0x850] ss:$28 sps:$4 sm:$0xff]  }
  0x63   :  { %2978 = vmatpush1.bf16.msra.mxu0 %v7026_v40  ;;  %3142 = vmatpush1.bf16.msra.mxu1 %v7029_v41  ;;  %v7113_v40 = vld [vmem:[%s10174_s1 + $0x858] ss:$28 sps:$4 sm:$0xff]   ;;  %v7118_v41 = vld [vmem:[%s10174_s1 + $0x88c] ss:$28 sps:$4 sm:$0xff]  }
  0x64   :  { %2979 = vmatprep.subr.bf16.mxu0 %v7034_v42  ;;  %3143 = vmatprep.subr.bf16.mxu1 %v7037_v43  ;;  %v7121_v42 = vld [vmem:[%s10174_s1 + $0x894] ss:$28 sps:$4 sm:$0xff]   ;;  %v7116_v43 = vld [vmem:[%s10174_s1 + $0x888] ss:$28 sps:$4 sm:$0xff]  }
  0x67   :  { %2980 = vmatpush1.bf16.msra.mxu0 %v7032_v44  ;;  %3144 = vmatpush1.bf16.msra.mxu1 %v7035_v45  ;;  %v7119_v44 = vld [vmem:[%s10174_s1 + $0x890] ss:$28 sps:$4 sm:$0xff]   ;;  %v7124_v45 = vld [vmem:[%s10174_s1 + $0x8c4] ss:$28 sps:$4 sm:$0xff]  }
  0x68   :  { %2981 = vmatprep.subr.bf16.mxu0 %v7040_v46  ;;  %3145 = vmatprep.subr.bf16.mxu1 %v7043_v47  ;;  %v7127_v46 = vld [vmem:[%s10174_s1 + $0x8cc] ss:$28 sps:$4 sm:$0xff]   ;;  %v7122_v47 = vld [vmem:[%s10174_s1 + $0x8c0] ss:$28 sps:$4 sm:$0xff]  }
  0x6b   :  { %2982 = vmatpush1.bf16.msra.mxu0 %v7038_v48  ;;  %3146 = vmatpush1.bf16.msra.mxu1 %v7041_v49  ;;  %v7125_v48 = vld [vmem:[%s10174_s1 + $0x8c8] ss:$28 sps:$4 sm:$0xff]   ;;  %v7130_v49 = vld [vmem:[%s10174_s1 + $0x8fc] ss:$28 sps:$4 sm:$0xff]  }
  0x6c   :  { %2983 = vmatprep.subr.bf16.mxu0 %v7046_v50  ;;  %3147 = vmatprep.subr.bf16.mxu1 %v7049_v51  ;;  %v7133_v50 = vld [vmem:[%s10174_s1 + $0x904] ss:$28 sps:$4 sm:$0xff]   ;;  %v7128_v51 = vld [vmem:[%s10174_s1 + $0x8f8] ss:$28 sps:$4 sm:$0xff]  }
  0x6f   :  { %2984 = vmatpush1.bf16.msra.mxu0 %v7044_v53  ;;  %3148 = vmatpush1.bf16.msra.mxu1 %v7047_v54  ;;  %v7131_v53 = vld [vmem:[%s10174_s1 + $0x900] ss:$28 sps:$4 sm:$0xff]   ;;  %v7136_v54 = vld [vmem:[%s10174_s1 + $0x934] ss:$28 sps:$4 sm:$0xff]  }
  0x70   :  { %2985 = vmatprep.subr.bf16.mxu0 %v7052_v55  ;;  %3149 = vmatprep.subr.bf16.mxu1 %v7055_v56  ;;  %v7139_v55 = vld [vmem:[%s10174_s1 + $0x93c] ss:$28 sps:$4 sm:$0xff]   ;;  %v7134_v56 = vld [vmem:[%s10174_s1 + $0x930] ss:$28 sps:$4 sm:$0xff]  }
  0x73   :  { %2986 = vmatpush1.bf16.msra.mxu0 %v7050_v57  ;;  %3150 = vmatpush1.bf16.msra.mxu1 %v7053_v58  ;;  %v7137_v57 = vld [vmem:[%s10174_s1 + $0x938] ss:$28 sps:$4 sm:$0xff]   ;;  %v7142_v58 = vld [vmem:[%s10174_s1 + $0x96c] ss:$28 sps:$4 sm:$0xff]  }
  0x74   :  { %2987 = vmatprep.subr.bf16.mxu0 %v7058_v59  ;;  %3151 = vmatprep.subr.bf16.mxu1 %v7061_v60  ;;  %v7145_v59 = vld [vmem:[%s10174_s1 + $0x974] ss:$28 sps:$4 sm:$0xff]   ;;  %v7140_v60 = vld [vmem:[%s10174_s1 + $0x968] ss:$28 sps:$4 sm:$0xff]  }
  0x77   :  { %2988 = vmatpush1.bf16.msra.mxu0 %v7056_v61  ;;  %3152 = vmatpush1.bf16.msra.mxu1 %v7059_v62  ;;  %v7143_v61 = vld [vmem:[%s10174_s1 + $0x970] ss:$28 sps:$4 sm:$0xff]   ;;  %v7148_v62 = vld [vmem:[%s10174_s1 + $0x9a4] ss:$28 sps:$4 sm:$0xff]  }
  0x78   :  { %2989 = vmatprep.subr.bf16.mxu0 %v7064_v63  ;;  %3153 = vmatprep.subr.bf16.mxu1 %v7067_v0  ;;  %v7151_v63 = vld [vmem:[%s10174_s1 + $0x9ac] ss:$28 sps:$4 sm:$0xff]   ;;  %v7146_v0 = vld [vmem:[%s10174_s1 + $0x9a0] ss:$28 sps:$4 sm:$0xff]  }
  0x7b   :  { %2990 = vmatpush1.bf16.msra.mxu0 %v7062_v1  ;;  %3154 = vmatpush1.bf16.msra.mxu1 %v7065_v2  ;;  %v7149_v1 = vld [vmem:[%s10174_s1 + $0x9a8] ss:$28 sps:$4 sm:$0xff]   ;;  %v7154_v2 = vld [vmem:[%s10174_s1 + $0x9dc] ss:$28 sps:$4 sm:$0xff]  }
  0x7c   :  { %2991 = vmatprep.subr.bf16.mxu0 %v7070_v3  ;;  %3155 = vmatprep.subr.bf16.mxu1 %v7073_v4  ;;  %v7157_v3 = vld [vmem:[%s10174_s1 + $0x9e4] ss:$28 sps:$4 sm:$0xff]   ;;  %v7152_v4 = vld [vmem:[%s10174_s1 + $0x9d8] ss:$28 sps:$4 sm:$0xff]  }
  0x7f   :  { %2992 = vmatpush1.bf16.msra.mxu0 %v7068_v6  ;;  %3156 = vmatpush1.bf16.msra.mxu1 %v7071_v8  ;;  %v7155_v6 = vld [vmem:[%s10174_s1 + $0x9e0] ss:$28 sps:$4 sm:$0xff]   ;;  %v7160_v8 = vld [vmem:[%s10174_s1 + $0xa14] ss:$28 sps:$4 sm:$0xff]  }
  0x80   :  { %3002 = vmatprep.subr.bf16.mxu0 %v7076_v9  ;;  %3166 = vmatprep.subr.bf16.mxu1 %v7079_v10  ;;  %v7163_v9 = vld [vmem:[%s10174_s1 + $0xa1c] ss:$28 sps:$4 sm:$0xff]   ;;  %v7158_v10 = vld [vmem:[%s10174_s1 + $0xa10] ss:$28 sps:$4 sm:$0xff]  }
  0x82   :  { %2994 = vmatmul.mubr.bf16.vlgmr.msra.gmra.mrb[0].mxu0 %v8325_v13  ;;  %3158 = vmatmul.mubr.bf16.vlgmr.msra.gmra.mrb[0].mxu1 %v8325_v13 }
  0x83   :  { %3003 = vmatpush1.bf16.msra.mxu0 %v7074_v12  ;;  %3167 = vmatpush1.bf16.msra.mxu1 %v7077_v14  ;;  %v7161_v12 = vld [vmem:[%s10174_s1 + $0xa18] ss:$28 sps:$4 sm:$0xff]   ;;  %v7166_v14 = vld [vmem:[%s10174_s1 + $0xa4c] ss:$28 sps:$4 sm:$0xff]  }
  0x84   :  { %3004 = vmatprep.subr.bf16.mxu0 %v7082_v16  ;;  %3168 = vmatprep.subr.bf16.mxu1 %v7085_v5  ;;  %v7169_v16 = vld [vmem:[%s10174_s1 + $0xa54] ss:$28 sps:$4 sm:$0xff]   ;;  %v7164_v5 = vld [vmem:[%s10174_s1 + $0xa48] ss:$28 sps:$4 sm:$0xff]  }
  0x85   :  { %3034 = vmatprep.mubr.bf16.mxu0 %v8348_v18  ;;  %3198 = vmatprep.mubr.bf16.mxu1 %v8348_v18 }
  0x87   :  { %3005 = vmatpush1.bf16.msra.mxu0 %v7080_v19  ;;  %3169 = vmatpush1.bf16.msra.mxu1 %v7083_v20  ;;  %v7167_v19 = vld [vmem:[%s10174_s1 + $0xa50] ss:$28 sps:$4 sm:$0xff]   ;;  %v7172_v20 = vld [vmem:[%s10174_s1 + $0xa84] ss:$28 sps:$4 sm:$0xff]  }
  0x88   :  { %3006 = vmatprep.subr.bf16.mxu0 %v7088_v21  ;;  %3170 = vmatprep.subr.bf16.mxu1 %v7091_v22  ;;  %v7175_v21 = vld [vmem:[%s10174_s1 + $0xa8c] ss:$28 sps:$4 sm:$0xff]   ;;  %v8533_v22 = vunpack.c.h.u8.bf16 %v8333_v15  ;;  %v7181_v15 = vld [vmem:[%s10174_s1 + $0xac4] ss:$28 sps:$4 sm:$0xff]  }
  0x8b   :  { %3007 = vmatpush1.bf16.msra.mxu0 %v7086_v23  ;;  %3171 = vmatpush1.bf16.msra.mxu1 %v7089_v24  ;;  %v7170_v23 = vld [vmem:[%s10174_s1 + $0xa80] ss:$28 sps:$4 sm:$0xff]   ;;  %v8540_v24 = vcombine.low %v8342_v17, %v8342_v17  ;;  %v7176_v17 = vld [vmem:[%s10174_s1 + $0xab8] ss:$28 sps:$4 sm:$0xff]  }
  0x8c   :  { %3008 = vmatprep.subr.bf16.mxu0 %v7094_v25  ;;  %3172 = vmatprep.subr.bf16.mxu1 %v7097_v26  ;;  %v7173_v25 = vld [vmem:[%s10174_s1 + $0xa88] ss:$28 sps:$4 sm:$0xff]   ;;  %v7178_v26 = vld [vmem:[%s10174_s1 + $0xabc] ss:$28 sps:$4 sm:$0xff]  }
  0x8f   :  { %3009 = vmatpush1.bf16.msra.mxu0 %v7092_v27  ;;  %3173 = vmatpush1.bf16.msra.mxu1 %v7095_v28  ;;  %v8556_v27 = vcombine.high %v8533_v22, %v8533_v22  ;;  %v7179_v28 = vld [vmem:[%s10174_s1 + $0xac0] ss:$28 sps:$4 sm:$0xff]  }
  0x90   :  { %3010 = vmatprep.subr.bf16.mxu0 %v7100_v29  ;;  %3174 = vmatprep.subr.bf16.mxu1 %v7103_v30  ;;  %v7184_v29 = vld [vmem:[%s10174_s1 + $0xaf4] ss:$28 sps:$4 sm:$0xff]   ;;  %v7187_v30 = vld [vmem:[%s10174_s1 + $0xafc] ss:$28 sps:$4 sm:$0xff]  }
  0x93   :  { %3011 = vmatpush1.bf16.msra.mxu0 %v7098_v31  ;;  %3175 = vmatpush1.bf16.msra.mxu1 %v7101_v32  ;;  %v7182_v31 = vld [vmem:[%s10174_s1 + $0xaf0] ss:$28 sps:$4 sm:$0xff]   ;;  %v7185_v32 = vld [vmem:[%s10174_s1 + $0xaf8] ss:$28 sps:$4 sm:$0xff]  }
  0x94   :  { %3012 = vmatprep.subr.bf16.mxu0 %v7106_v33  ;;  %3176 = vmatprep.subr.bf16.mxu1 %v7109_v34  ;;  %v7190_v33 = vld [vmem:[%s10174_s1 + $0xb2c] ss:$28 sps:$4 sm:$0xff]   ;;  %v7193_v34 = vld [vmem:[%s10174_s1 + $0xb34] ss:$28 sps:$4 sm:$0xff]  }
  0x97   :  { %3013 = vmatpush1.bf16.msra.mxu0 %v7104_v35  ;;  %3177 = vmatpush1.bf16.msra.mxu1 %v7107_v36  ;;  %v7188_v35 = vld [vmem:[%s10174_s1 + $0xb28] ss:$28 sps:$4 sm:$0xff]   ;;  %v7191_v36 = vld [vmem:[%s10174_s1 + $0xb30] ss:$28 sps:$4 sm:$0xff]  }
  0x98   :  { %3014 = vmatprep.subr.bf16.mxu0 %v7112_v37  ;;  %3178 = vmatprep.subr.bf16.mxu1 %v7115_v38  ;;  %v7196_v37 = vld [vmem:[%s10174_s1 + $0xb64] ss:$28 sps:$4 sm:$0xff]   ;;  %v7199_v38 = vld [vmem:[%s10174_s1 + $0xb6c] ss:$28 sps:$4 sm:$0xff]  }
  0x9b   :  { %3015 = vmatpush1.bf16.msra.mxu0 %v7110_v39  ;;  %3179 = vmatpush1.bf16.msra.mxu1 %v7113_v40  ;;  %v7194_v39 = vld [vmem:[%s10174_s1 + $0xb60] ss:$28 sps:$4 sm:$0xff]   ;;  %v7197_v40 = vld [vmem:[%s10174_s1 + $0xb68] ss:$28 sps:$4 sm:$0xff]  }
  0x9c   :  { %3016 = vmatprep.subr.bf16.mxu0 %v7118_v41  ;;  %3180 = vmatprep.subr.bf16.mxu1 %v7121_v42  ;;  %v7202_v41 = vld [vmem:[%s10174_s1 + $0xb9c] ss:$28 sps:$4 sm:$0xff]   ;;  %v7205_v42 = vld [vmem:[%s10174_s1 + $0xba4] ss:$28 sps:$4 sm:$0xff]  }
  0x9f   :  { %3017 = vmatpush1.bf16.msra.mxu0 %v7116_v43  ;;  %3181 = vmatpush1.bf16.msra.mxu1 %v7119_v44  ;;  %v7200_v43 = vld [vmem:[%s10174_s1 + $0xb98] ss:$28 sps:$4 sm:$0xff]   ;;  %v7203_v44 = vld [vmem:[%s10174_s1 + $0xba0] ss:$28 sps:$4 sm:$0xff]  }
  0xa0   :  { %3018 = vmatprep.subr.bf16.mxu0 %v7124_v45  ;;  %3182 = vmatprep.subr.bf16.mxu1 %v7127_v46  ;;  %v7208_v45 = vld [vmem:[%s10174_s1 + $0xbd4] ss:$28 sps:$4 sm:$0xff]   ;;  %v7211_v46 = vld [vmem:[%s10174_s1 + $0xbdc] ss:$28 sps:$4 sm:$0xff]  }
  0xa3   :  { %3019 = vmatpush1.bf16.msra.mxu0 %v7122_v47  ;;  %3183 = vmatpush1.bf16.msra.mxu1 %v7125_v48  ;;  %v7206_v47 = vld [vmem:[%s10174_s1 + $0xbd0] ss:$28 sps:$4 sm:$0xff]   ;;  %v7209_v48 = vld [vmem:[%s10174_s1 + $0xbd8] ss:$28 sps:$4 sm:$0xff]  }
  0xa4   :  { %3020 = vmatprep.subr.bf16.mxu0 %v7130_v49  ;;  %3184 = vmatprep.subr.bf16.mxu1 %v7133_v50  ;;  %v7214_v49 = vld [vmem:[%s10174_s1 + $0xc0c] ss:$28 sps:$4 sm:$0xff]   ;;  %v7217_v50 = vld [vmem:[%s10174_s1 + $0xc14] ss:$28 sps:$4 sm:$0xff]  }
  0xa7   :  { %3021 = vmatpush1.bf16.msra.mxu0 %v7128_v51  ;;  %3185 = vmatpush1.bf16.msra.mxu1 %v7131_v53  ;;  %v7212_v51 = vld [vmem:[%s10174_s1 + $0xc08] ss:$28 sps:$4 sm:$0xff]   ;;  %v7215_v53 = vld [vmem:[%s10174_s1 + $0xc10] ss:$28 sps:$4 sm:$0xff]  }
  0xa8   :  { %3022 = vmatprep.subr.bf16.mxu0 %v7136_v54  ;;  %3186 = vmatprep.subr.bf16.mxu1 %v7139_v55  ;;  %v7220_v54 = vld [vmem:[%s10174_s1 + $0xc44] ss:$28 sps:$4 sm:$0xff]   ;;  %v7223_v55 = vld [vmem:[%s10174_s1 + $0xc4c] ss:$28 sps:$4 sm:$0xff]  }
  0xab   :  { %3023 = vmatpush1.bf16.msra.mxu0 %v7134_v56  ;;  %3187 = vmatpush1.bf16.msra.mxu1 %v7137_v57  ;;  %v7218_v56 = vld [vmem:[%s10174_s1 + $0xc40] ss:$28 sps:$4 sm:$0xff]   ;;  %v7221_v57 = vld [vmem:[%s10174_s1 + $0xc48] ss:$28 sps:$4 sm:$0xff]  }
  0xac   :  { %3024 = vmatprep.subr.bf16.mxu0 %v7142_v58  ;;  %3188 = vmatprep.subr.bf16.mxu1 %v7145_v59  ;;  %v7226_v58 = vld [vmem:[%s10174_s1 + $0xc7c] ss:$28 sps:$4 sm:$0xff]   ;;  %v7229_v59 = vld [vmem:[%s10174_s1 + $0xc84] ss:$28 sps:$4 sm:$0xff]  }
  0xaf   :  { %3025 = vmatpush1.bf16.msra.mxu0 %v7140_v60  ;;  %3189 = vmatpush1.bf16.msra.mxu1 %v7143_v61  ;;  %v7224_v60 = vld [vmem:[%s10174_s1 + $0xc78] ss:$28 sps:$4 sm:$0xff]   ;;  %v7227_v61 = vld [vmem:[%s10174_s1 + $0xc80] ss:$28 sps:$4 sm:$0xff]  }
  0xb0   :  { %3026 = vmatprep.subr.bf16.mxu0 %v7148_v62  ;;  %3190 = vmatprep.subr.bf16.mxu1 %v7151_v63  ;;  %v7232_v62 = vld [vmem:[%s10174_s1 + $0xcb4] ss:$28 sps:$4 sm:$0xff]   ;;  %v7235_v63 = vld [vmem:[%s10174_s1 + $0xcbc] ss:$28 sps:$4 sm:$0xff]  }
  0xb3   :  { %3027 = vmatpush1.bf16.msra.mxu0 %v7146_v0  ;;  %3191 = vmatpush1.bf16.msra.mxu1 %v7149_v1  ;;  %v7230_v0 = vld [vmem:[%s10174_s1 + $0xcb0] ss:$28 sps:$4 sm:$0xff]   ;;  %v7233_v1 = vld [vmem:[%s10174_s1 + $0xcb8] ss:$28 sps:$4 sm:$0xff]  }
  0xb4   :  { %3028 = vmatprep.subr.bf16.mxu0 %v7154_v2  ;;  %3192 = vmatprep.subr.bf16.mxu1 %v7157_v3  ;;  %v7238_v2 = vld [vmem:[%s10174_s1 + $0xcec] ss:$28 sps:$4 sm:$0xff]   ;;  %v7241_v3 = vld [vmem:[%s10174_s1 + $0xcf4] ss:$28 sps:$4 sm:$0xff]  }
  0xb7   :  { %3029 = vmatpush1.bf16.msra.mxu0 %v7152_v4  ;;  %3193 = vmatpush1.bf16.msra.mxu1 %v7155_v6  ;;  %v7236_v4 = vld [vmem:[%s10174_s1 + $0xce8] ss:$28 sps:$4 sm:$0xff]   ;;  %v7239_v6 = vld [vmem:[%s10174_s1 + $0xcf0] ss:$28 sps:$4 sm:$0xff]  }
  0xb8   :  { %3030 = vmatprep.subr.bf16.mxu0 %v7160_v8  ;;  %3194 = vmatprep.subr.bf16.mxu1 %v7163_v9  ;;  %v7244_v8 = vld [vmem:[%s10174_s1 + $0xd24] ss:$28 sps:$4 sm:$0xff]   ;;  %v7247_v9 = vld [vmem:[%s10174_s1 + $0xd2c] ss:$28 sps:$4 sm:$0xff]  }
  0xbb   :  { %3031 = vmatpush1.bf16.msra.mxu0 %v7158_v10  ;;  %3195 = vmatpush1.bf16.msra.mxu1 %v7161_v12  ;;  %v7242_v10 = vld [vmem:[%s10174_s1 + $0xd20] ss:$28 sps:$4 sm:$0xff]   ;;  %v7245_v12 = vld [vmem:[%s10174_s1 + $0xd28] ss:$28 sps:$4 sm:$0xff]  }
  0xbc   :  { %3032 = vmatprep.subr.bf16.mxu0 %v7166_v14  ;;  %3196 = vmatprep.subr.bf16.mxu1 %v7169_v16  ;;  %v7250_v14 = vld [vmem:[%s10174_s1 + $0xd5c] ss:$28 sps:$4 sm:$0xff]   ;;  %v7253_v16 = vld [vmem:[%s10174_s1 + $0xd64] ss:$28 sps:$4 sm:$0xff]  }
  0xbf   :  { %3033 = vmatpush1.bf16.msra.mxu0 %v7164_v5  ;;  %3197 = vmatpush1.bf16.msra.mxu1 %v7167_v19  ;;  %v7248_v5 = vld [vmem:[%s10174_s1 + $0xd58] ss:$28 sps:$4 sm:$0xff]   ;;  %v7251_v19 = vld [vmem:[%s10174_s1 + $0xd60] ss:$28 sps:$4 sm:$0xff]  }
  0xc0   :  { %3043 = vmatprep.subr.bf16.mxu0 %v7172_v20  ;;  %3207 = vmatprep.subr.bf16.mxu1 %v7175_v21  ;;  %v7256_v20 = vld [vmem:[%s10174_s1 + $0xd94] ss:$28 sps:$4 sm:$0xff]   ;;  %v7259_v21 = vld [vmem:[%s10174_s1 + $0xd9c] ss:$28 sps:$4 sm:$0xff]  }
  0xc2   :  { %3035 = vmatmul.mubr.bf16.vlgmr.msra.gmra.mrb[0].mxu0 %v8540_v24  ;;  %3199 = vmatmul.mubr.bf16.vlgmr.msra.gmra.mrb[0].mxu1 %v8540_v24 }
  0xc3   :  { %3044 = vmatpush1.bf16.msra.mxu0 %v7170_v23  ;;  %3208 = vmatpush1.bf16.msra.mxu1 %v7173_v25  ;;  %v7254_v23 = vld [vmem:[%s10174_s1 + $0xd90] ss:$28 sps:$4 sm:$0xff]   ;;  %v7257_v25 = vld [vmem:[%s10174_s1 + $0xd98] ss:$28 sps:$4 sm:$0xff]  }
  0xc4   :  { %3045 = vmatprep.subr.bf16.mxu0 %v7178_v26  ;;  %3209 = vmatprep.subr.bf16.mxu1 %v7181_v15  ;;  %v7262_v26 = vld [vmem:[%s10174_s1 + $0xdcc] ss:$28 sps:$4 sm:$0xff]   ;;  %v7265_v15 = vld [vmem:[%s10174_s1 + $0xdd4] ss:$28 sps:$4 sm:$0xff]  }
  0xc5   :  { %3075 = vmatprep.mubr.bf16.mxu0 %v8556_v27  ;;  %3239 = vmatprep.mubr.bf16.mxu1 %v8556_v27 }
  0xc7   :  { %3046 = vmatpush1.bf16.msra.mxu0 %v7176_v17  ;;  %3210 = vmatpush1.bf16.msra.mxu1 %v7179_v28  ;;  %v7260_v17 = vld [vmem:[%s10174_s1 + $0xdc8] ss:$28 sps:$4 sm:$0xff]   ;;  %v7263_v28 = vld [vmem:[%s10174_s1 + $0xdd0] ss:$28 sps:$4 sm:$0xff]  }
  0xc8   :  { %3047 = vmatprep.subr.bf16.mxu0 %v7184_v29  ;;  %3211 = vmatprep.subr.bf16.mxu1 %v7187_v30  ;;  %v7268_v29 = vld [vmem:[%s10174_s1 + $0x14] ss:$28 sps:$4 sm:$0xff]  }
  0xc9   :  { %v7287_v30 = vld [vmem:[%s10174_s1 + $0x1d8] ss:$28 sps:$4 sm:$0xff]  }
  0xcb   :  { %3048 = vmatpush1.bf16.msra.mxu0 %v7182_v31  ;;  %3212 = vmatpush1.bf16.msra.mxu1 %v7185_v32  ;;  %v7266_v31 = vld [vmem:[%s10174_s1 + $0x10] ss:$28 sps:$4 sm:$0xff]   ;;  %v8744_v32 = vcombine.low %v8533_v22, %v8533_v22  ;;  %v7269_v22 = vld [vmem:[%s10174_s1 + $0x48] ss:$28 sps:$4 sm:$0xff]  }
  0xcc   :  { %3049 = vmatprep.subr.bf16.mxu0 %v7190_v33  ;;  %3213 = vmatprep.subr.bf16.mxu1 %v7193_v34  ;;  %v7271_v33 = vld [vmem:[%s10174_s1 + $0x4c] ss:$28 sps:$4 sm:$0xff]   ;;  %v7291_v34 = vld [vmem:[%s10174_s1 + $0x18] ss:$28 sps:$4 sm:$0xff]  }
  0xcf   :  { %3050 = vmatpush1.bf16.msra.mxu0 %v7188_v35  ;;  %3214 = vmatpush1.bf16.msra.mxu1 %v7191_v36  ;;  %v7292_v35 = vld [vmem:[%s10174_s1 + $0x210] ss:$28 sps:$4 sm:$0xff]   ;;  %v7274_v36 = vld [vmem:[%s10174_s1 + $0x84] ss:$28 sps:$4 sm:$0xff]  }
  0xd0   :  { %3051 = vmatprep.subr.bf16.mxu0 %v7196_v37  ;;  %3215 = vmatprep.subr.bf16.mxu1 %v7199_v38  ;;  %v7296_v37 = vld [vmem:[%s10174_s1 + $0x50] ss:$28 sps:$4 sm:$0xff]   ;;  %v7297_v38 = vld [vmem:[%s10174_s1 + $0x248] ss:$28 sps:$4 sm:$0xff]  }
  0xd3   :  { %3052 = vmatpush1.bf16.msra.mxu0 %v7194_v39  ;;  %3216 = vmatpush1.bf16.msra.mxu1 %v7197_v40  ;;  %v7272_v39 = vld [vmem:[%s10174_s1 + $0x80] ss:$28 sps:$4 sm:$0xff]  }
  0xd4   :  { %3053 = vmatprep.subr.bf16.mxu0 %v7202_v41  ;;  %3217 = vmatprep.subr.bf16.mxu1 %v7205_v42  ;;  %v7277_v40 = vld [vmem:[%s10174_s1 + $0xbc] ss:$28 sps:$4 sm:$0xff]   ;;  %v7301_v41 = vld [vmem:[%s10174_s1 + $0x88] ss:$28 sps:$4 sm:$0xff]  }
  0xd5   :  { %v7302_v42 = vld [vmem:[%s10174_s1 + $0x280] ss:$28 sps:$4 sm:$0xff]  }
  0xd7   :  { %3054 = vmatpush1.bf16.msra.mxu0 %v7200_v43  ;;  %3218 = vmatpush1.bf16.msra.mxu1 %v7203_v44  ;;  %v7306_v43 = vld [vmem:[%s10174_s1 + $0xc0] ss:$28 sps:$4 sm:$0xff]   ;;  %v7280_v44 = vld [vmem:[%s10174_s1 + $0xf4] ss:$28 sps:$4 sm:$0xff]  }
  0xd8   :  { %3055 = vmatprep.subr.bf16.mxu0 %v7208_v45  ;;  %3219 = vmatprep.subr.bf16.mxu1 %v7211_v46  ;;  %v7307_v45 = vld [vmem:[%s10174_s1 + $0x2b8] ss:$28 sps:$4 sm:$0xff]   ;;  %v7278_v46 = vld [vmem:[%s10174_s1 + $0xf0] ss:$28 sps:$4 sm:$0xff]  }
  0xdb   :  { %3056 = vmatpush1.bf16.msra.mxu0 %v7206_v47  ;;  %3220 = vmatpush1.bf16.msra.mxu1 %v7209_v48  ;;  %v7283_v47 = vld [vmem:[%s10174_s1 + $0x12c] ss:$28 sps:$4 sm:$0xff]   ;;  %v7311_v48 = vld [vmem:[%s10174_s1 + $0xf8] ss:$28 sps:$4 sm:$0xff]  }
  0xdc   :  { %3057 = vmatprep.subr.bf16.mxu0 %v7214_v49  ;;  %3221 = vmatprep.subr.bf16.mxu1 %v7217_v50  ;;  %v7312_v49 = vld [vmem:[%s10174_s1 + $0x2f0] ss:$28 sps:$4 sm:$0xff]   ;;  %v7281_v50 = vld [vmem:[%s10174_s1 + $0x128] ss:$28 sps:$4 sm:$0xff]  }
  0xdf   :  { %3058 = vmatpush1.bf16.msra.mxu0 %v7212_v51  ;;  %3222 = vmatpush1.bf16.msra.mxu1 %v7215_v53  ;;  %v7286_v51 = vld [vmem:[%s10174_s1 + $0x164] ss:$28 sps:$4 sm:$0xff]   ;;  %v7316_v53 = vld [vmem:[%s10174_s1 + $0x130] ss:$28 sps:$4 sm:$0xff]  }
  0xe0   :  { %3059 = vmatprep.subr.bf16.mxu0 %v7220_v54  ;;  %3223 = vmatprep.subr.bf16.mxu1 %v7223_v55  ;;  %v7317_v54 = vld [vmem:[%s10174_s1 + $0x328] ss:$28 sps:$4 sm:$0xff]   ;;  %v7284_v55 = vld [vmem:[%s10174_s1 + $0x160] ss:$28 sps:$4 sm:$0xff]  }
  0xe3   :  { %3060 = vmatpush1.bf16.msra.mxu0 %v7218_v56  ;;  %3224 = vmatpush1.bf16.msra.mxu1 %v7221_v57  ;;  %v7290_v56 = vld [vmem:[%s10174_s1 + $0x19c] ss:$28 sps:$4 sm:$0xff]   ;;  %v7321_v57 = vld [vmem:[%s10174_s1 + $0x168] ss:$28 sps:$4 sm:$0xff]  }
  0xe4   :  { %3061 = vmatprep.subr.bf16.mxu0 %v7226_v58  ;;  %3225 = vmatprep.subr.bf16.mxu1 %v7229_v59  ;;  %v7322_v58 = vld [vmem:[%s10174_s1 + $0x360] ss:$28 sps:$4 sm:$0xff]   ;;  %v7288_v59 = vld [vmem:[%s10174_s1 + $0x198] ss:$28 sps:$4 sm:$0xff]  }
  0xe7   :  { %3062 = vmatpush1.bf16.msra.mxu0 %v7224_v60  ;;  %3226 = vmatpush1.bf16.msra.mxu1 %v7227_v61  ;;  %v7295_v60 = vld [vmem:[%s10174_s1 + $0x1d4] ss:$28 sps:$4 sm:$0xff]   ;;  %v7326_v61 = vld [vmem:[%s10174_s1 + $0x1a0] ss:$28 sps:$4 sm:$0xff]  }
  0xe8   :  { %3063 = vmatprep.subr.bf16.mxu0 %v7232_v62  ;;  %3227 = vmatprep.subr.bf16.mxu1 %v7235_v63  ;;  %v7327_v62 = vld [vmem:[%s10174_s1 + $0x558] ss:$28 sps:$4 sm:$0xff]   ;;  %v7293_v63 = vld [vmem:[%s10174_s1 + $0x1d0] ss:$28 sps:$4 sm:$0xff]  }
  0xeb   :  { %3064 = vmatpush1.bf16.msra.mxu0 %v7230_v0  ;;  %3228 = vmatpush1.bf16.msra.mxu1 %v7233_v1  ;;  %v7331_v0 = vld [vmem:[%s10174_s1 + $0x398] ss:$28 sps:$4 sm:$0xff]   ;;  %v7300_v1 = vld [vmem:[%s10174_s1 + $0x20c] ss:$28 sps:$4 sm:$0xff]  }
  0xec   :  { %3065 = vmatprep.subr.bf16.mxu0 %v7238_v2  ;;  %3229 = vmatprep.subr.bf16.mxu1 %v7241_v3  ;;  %v7332_v2 = vld [vmem:[%s10174_s1 + $0x590] ss:$28 sps:$4 sm:$0xff]   ;;  %v7298_v3 = vld [vmem:[%s10174_s1 + $0x208] ss:$28 sps:$4 sm:$0xff]  }
  0xef   :  { %3066 = vmatpush1.bf16.msra.mxu0 %v7236_v4  ;;  %3230 = vmatpush1.bf16.msra.mxu1 %v7239_v6  ;;  %v7336_v4 = vld [vmem:[%s10174_s1 + $0x3d0] ss:$28 sps:$4 sm:$0xff]   ;;  %v7305_v6 = vld [vmem:[%s10174_s1 + $0x244] ss:$28 sps:$4 sm:$0xff]  }
  0xf0   :  { %3067 = vmatprep.subr.bf16.mxu0 %v7244_v8  ;;  %3231 = vmatprep.subr.bf16.mxu1 %v7247_v9  ;;  %v7337_v8 = vld [vmem:[%s10174_s1 + $0x5c8] ss:$28 sps:$4 sm:$0xff]   ;;  %v7303_v9 = vld [vmem:[%s10174_s1 + $0x240] ss:$28 sps:$4 sm:$0xff]  }
  0xf3   :  { %3068 = vmatpush1.bf16.msra.mxu0 %v7242_v10  ;;  %3232 = vmatpush1.bf16.msra.mxu1 %v7245_v12  ;;  %v7341_v10 = vld [vmem:[%s10174_s1 + $0x408] ss:$28 sps:$4 sm:$0xff]   ;;  %v7310_v12 = vld [vmem:[%s10174_s1 + $0x27c] ss:$28 sps:$4 sm:$0xff]  }
  0xf4   :  { %3069 = vmatprep.subr.bf16.mxu0 %v7250_v14  ;;  %3233 = vmatprep.subr.bf16.mxu1 %v7253_v16  ;;  %v7342_v14 = vld [vmem:[%s10174_s1 + $0x600] ss:$28 sps:$4 sm:$0xff]   ;;  %v7308_v16 = vld [vmem:[%s10174_s1 + $0x278] ss:$28 sps:$4 sm:$0xff]  }
  0xf7   :  { %3070 = vmatpush1.bf16.msra.mxu0 %v7248_v5  ;;  %3234 = vmatpush1.bf16.msra.mxu1 %v7251_v19  ;;  %v7315_v5 = vld [vmem:[%s10174_s1 + $0x2b4] ss:$28 sps:$4 sm:$0xff]   ;;  %v7346_v19 = vld [vmem:[%s10174_s1 + $0x440] ss:$28 sps:$4 sm:$0xff]  }
  0xf8   :  { %3071 = vmatprep.subr.bf16.mxu0 %v7256_v20  ;;  %3235 = vmatprep.subr.bf16.mxu1 %v7259_v21  ;;  %v7347_v20 = vld [vmem:[%s10174_s1 + $0x638] ss:$28 sps:$4 sm:$0xff]   ;;  %v7313_v21 = vld [vmem:[%s10174_s1 + $0x2b0] ss:$28 sps:$4 sm:$0xff]  }
  0xfb   :  { %3072 = vmatpush1.bf16.msra.mxu0 %v7254_v23  ;;  %3236 = vmatpush1.bf16.msra.mxu1 %v7257_v25  ;;  %v7320_v23 = vld [vmem:[%s10174_s1 + $0x2ec] ss:$28 sps:$4 sm:$0xff]   ;;  %v7351_v25 = vld [vmem:[%s10174_s1 + $0x478] ss:$28 sps:$4 sm:$0xff]  }
  0xfc   :  { %3073 = vmatprep.subr.bf16.mxu0 %v7262_v26  ;;  %3237 = vmatprep.subr.bf16.mxu1 %v7265_v15  ;;  %v7352_v26 = vld [vmem:[%s10174_s1 + $0x670] ss:$28 sps:$4 sm:$0xff]   ;;  %v7318_v15 = vld [vmem:[%s10174_s1 + $0x2e8] ss:$28 sps:$4 sm:$0xff]  }
  0xff   :  { %3074 = vmatpush1.bf16.msra.mxu0 %v7260_v17  ;;  %3238 = vmatpush1.bf16.msra.mxu1 %v7263_v28  ;;  %v7325_v17 = vld [vmem:[%s10174_s1 + $0x324] ss:$28 sps:$4 sm:$0xff]   ;;  %v7356_v28 = vld [vmem:[%s10174_s1 + $0x4b0] ss:$28 sps:$4 sm:$0xff]  }
 0x100   :  { %3248 = vmatprep.subr.bf16.mxu0 %v7268_v29  ;;  %6607 = vmatprep.subr.bf16.mxu1 %v7287_v30  ;;  %v7357_v29 = vld [vmem:[%s10174_s1 + $0x6a8] ss:$28 sps:$4 sm:$0xff]   ;;  %v7323_v30 = vld [vmem:[%s10174_s1 + $0x320] ss:$28 sps:$4 sm:$0xff]  }
 0x102   :  { %3076 = vmatmul.mubr.bf16.vlgmr.msra.gmra.mrb[0].mxu0 %v8744_v32  ;;  %3240 = vmatmul.mubr.bf16.vlgmr.msra.gmra.mrb[0].mxu1 %v8744_v32 }
 0x103   :  { %3249 = vmatpush1.bf16.msra.mxu0 %v7266_v31  ;;  %6608 = vmatpush3.bf16.msra.mxu1 %v7291_v34  ;;  %v7330_v31 = vld [vmem:[%s10174_s1 + $0x35c] ss:$28 sps:$4 sm:$0xff]  }
 0x104   :  { %3250 = vmatprep.subr.bf16.mxu0 %v7271_v33  ;;  %6609 = vmatprep.subr.bf16.mxu1 %v7292_v35  ;;  %v7361_v33 = vld [vmem:[%s10174_s1 + $0x4e8] ss:$28 sps:$4 sm:$0xff]   ;;  %v7362_v34 = vld [vmem:[%s10174_s1 + $0x6e0] ss:$28 sps:$4 sm:$0xff]   ;;  %v7328_v35 = vld [vmem:[%s10174_s1 + $0x358] ss:$28 sps:$4 sm:$0xff]  }
 0x105   :  { %3444 = vmatprep.mubr.bf16.mxu1 %v8064_v52  ;;  %3280 = vmatprep.mubr.bf16.mxu0 %v8064_v52  ;;  %v7275_v52 = vld [vmem:[%s10174_s1 + $0xb8] ss:$28 sps:$4 sm:$0xff]  }
 0x107   :  { %3251 = vmatpush1.bf16.msra.mxu0 %v7269_v22  ;;  %6610 = vmatpush3.bf16.msra.mxu1 %v7296_v37  ;;  %v7335_v22 = vld [vmem:[%s10174_s1 + $0x394] ss:$28 sps:$4 sm:$0xff]  }
 0x108   :  { %3252 = vmatprep.subr.bf16.mxu0 %v7274_v36  ;;  %6611 = vmatprep.subr.bf16.mxu1 %v7297_v38  ;;  %v7366_v36 = vld [vmem:[%s10174_s1 + $0x520] ss:$28 sps:$4 sm:$0xff]   ;;  %v7367_v37 = vld [vmem:[%s10174_s1 + $0x8d8] ss:$28 sps:$4 sm:$0xff]   ;;  %v7333_v38 = vld [vmem:[%s10174_s1 + $0x390] ss:$28 sps:$4 sm:$0xff]  }
 0x10b   :  { %3253 = vmatpush1.bf16.msra.mxu0 %v7272_v39  ;;  %6612 = vmatpush3.bf16.msra.mxu1 %v7301_v41  ;;  %v7340_v39 = vld [vmem:[%s10174_s1 + $0x3cc] ss:$28 sps:$4 sm:$0xff]  }
 0x10c   :  { %3254 = vmatprep.subr.bf16.mxu0 %v7277_v40  ;;  %6613 = vmatprep.subr.bf16.mxu1 %v7302_v42  ;;  %v7371_v40 = vld [vmem:[%s10174_s1 + $0x718] ss:$28 sps:$4 sm:$0xff]   ;;  %v7372_v41 = vld [vmem:[%s10174_s1 + $0x910] ss:$28 sps:$4 sm:$0xff]   ;;  %v7338_v42 = vld [vmem:[%s10174_s1 + $0x3c8] ss:$28 sps:$4 sm:$0xff]  }
 0x10f   :  { %3255 = vmatpush1.bf16.msra.mxu0 %v7275_v52  ;;  %6614 = vmatpush3.bf16.msra.mxu1 %v7306_v43  ;;  %v7345_v52 = vld [vmem:[%s10174_s1 + $0x404] ss:$28 sps:$4 sm:$0xff]   ;;  %v7376_v43 = vld [vmem:[%s10174_s1 + $0x750] ss:$28 sps:$4 sm:$0xff]  }
 0x110   :  { %3256 = vmatprep.subr.bf16.mxu0 %v7280_v44  ;;  %6615 = vmatprep.subr.bf16.mxu1 %v7307_v45  ;;  %v7343_v44 = vld [vmem:[%s10174_s1 + $0x400] ss:$28 sps:$4 sm:$0xff]  }
 0x111   :  { %v7350_v45 = vld [vmem:[%s10174_s1 + $0x43c] ss:$28 sps:$4 sm:$0xff]  }
 0x113   :  { %3257 = vmatpush1.bf16.msra.mxu0 %v7278_v46  ;;  %6616 = vmatpush3.bf16.msra.mxu1 %v7311_v48  ;;  %v7381_v46 = vld [vmem:[%s10174_s1 + $0x788] ss:$28 sps:$4 sm:$0xff]   ;;  %v7355_v48 = vld [vmem:[%s10174_s1 + $0x474] ss:$28 sps:$4 sm:$0xff]  }
 0x114   :  { %3258 = vmatprep.subr.bf16.mxu0 %v7283_v47  ;;  %6617 = vmatprep.subr.bf16.mxu1 %v7312_v49  ;;  %v7348_v47 = vld [vmem:[%s10174_s1 + $0x438] ss:$28 sps:$4 sm:$0xff]   ;;  %v7386_v49 = vld [vmem:[%s10174_s1 + $0x7c0] ss:$28 sps:$4 sm:$0xff]  }
 0x117   :  { %3259 = vmatpush1.bf16.msra.mxu0 %v7281_v50  ;;  %6618 = vmatpush3.bf16.msra.mxu1 %v7316_v53  ;;  %v7387_v50 = vld [vmem:[%s10174_s1 + $0x9b8] ss:$28 sps:$4 sm:$0xff]   ;;  %v7360_v53 = vld [vmem:[%s10174_s1 + $0x4ac] ss:$28 sps:$4 sm:$0xff]  }
 0x118   :  { %3260 = vmatprep.subr.bf16.mxu0 %v7286_v51  ;;  %6619 = vmatprep.subr.bf16.mxu1 %v7317_v54  ;;  %v7353_v51 = vld [vmem:[%s10174_s1 + $0x470] ss:$28 sps:$4 sm:$0xff]   ;;  %v7391_v54 = vld [vmem:[%s10174_s1 + $0x7f8] ss:$28 sps:$4 sm:$0xff]  }
 0x11b   :  { %3261 = vmatpush1.bf16.msra.mxu0 %v7284_v55  ;;  %6620 = vmatpush3.bf16.msra.mxu1 %v7321_v57  ;;  %v7392_v55 = vld [vmem:[%s10174_s1 + $0x9f0] ss:$28 sps:$4 sm:$0xff]  }
 0x11c   :  { %3262 = vmatprep.subr.bf16.mxu0 %v7290_v56  ;;  %6621 = vmatprep.subr.bf16.mxu1 %v7322_v58  ;;  %v7358_v56 = vld [vmem:[%s10174_s1 + $0x4a8] ss:$28 sps:$4 sm:$0xff]   ;;  %v7396_v57 = vld [vmem:[%s10174_s1 + $0x830] ss:$28 sps:$4 sm:$0xff]  }
 0x11d   :  { %v7365_v58 = vld [vmem:[%s10174_s1 + $0x4e4] ss:$28 sps:$4 sm:$0xff]  }
 0x11f   :  { %3263 = vmatpush1.bf16.msra.mxu0 %v7288_v59  ;;  %6622 = vmatpush3.bf16.msra.mxu1 %v7326_v61  ;;  %v7397_v59 = vld [vmem:[%s10174_s1 + $0xa28] ss:$28 sps:$4 sm:$0xff]  }
 0x120   :  { %3264 = vmatprep.subr.bf16.mxu0 %v7295_v60  ;;  %6629 = vmatprep.subr.bf16.mxu1 %v7327_v62  ;;  %v7363_v60 = vld [vmem:[%s10174_s1 + $0x4e0] ss:$28 sps:$4 sm:$0xff]   ;;  %v7401_v61 = vld [vmem:[%s10174_s1 + $0x868] ss:$28 sps:$4 sm:$0xff]  }
 0x121   :  { %v7370_v62 = vld [vmem:[%s10174_s1 + $0x51c] ss:$28 sps:$4 sm:$0xff]  }
 0x122   :  { %3445 = vmatmul.mubr.bf16.vlgmr.msra.gmra.mrb[4].mxu1 %v8121_v7 }
 0x123   :  { %3265 = vmatpush1.bf16.msra.mxu0 %v7293_v63  ;;  %6630 = vmatpush3.bf16.msra.mxu1 %v7331_v0  ;;  %v7402_v63 = vld [vmem:[%s10174_s1 + $0xa60] ss:$28 sps:$4 sm:$0xff]   ;;  %v7368_v0 = vld [vmem:[%s10174_s1 + $0x518] ss:$28 sps:$4 sm:$0xff]  }
 0x124   :  { %3266 = vmatprep.subr.bf16.mxu0 %v7300_v1  ;;  %6631 = vmatprep.subr.bf16.mxu1 %v7332_v2  ;;  %v7406_v1 = vld [vmem:[%s10174_s1 + $0x8a0] ss:$28 sps:$4 sm:$0xff]   ;;  %v7375_v2 = vld [vmem:[%s10174_s1 + $0x554] ss:$28 sps:$4 sm:$0xff]  }
 0x125   :  { %3484 = vmatprep.mubr.bf16.mxu1 %v8134_v11 }
 0x127   :  { %3267 = vmatpush1.bf16.msra.mxu0 %v7298_v3  ;;  %6632 = vmatpush3.bf16.msra.mxu1 %v7336_v4  ;;  %v7407_v3 = vld [vmem:[%s10174_s1 + $0xc58] ss:$28 sps:$4 sm:$0xff]   ;;  %v7373_v4 = vld [vmem:[%s10174_s1 + $0x550] ss:$28 sps:$4 sm:$0xff]  }
 0x128   :  { %3268 = vmatprep.subr.bf16.mxu0 %v7305_v6  ;;  %6633 = vmatprep.subr.bf16.mxu1 %v7337_v8  ;;  %v7411_v6 = vld [vmem:[%s10174_s1 + $0xa98] ss:$28 sps:$4 sm:$0xff]   ;;  %v7380_v8 = vld [vmem:[%s10174_s1 + $0x58c] ss:$28 sps:$4 sm:$0xff]  }
 0x12b   :  { %3269 = vmatpush1.bf16.msra.mxu0 %v7303_v9  ;;  %6634 = vmatpush3.bf16.msra.mxu1 %v7341_v10  ;;  %v7412_v9 = vld [vmem:[%s10174_s1 + $0xc90] ss:$28 sps:$4 sm:$0xff]   ;;  %v7378_v10 = vld [vmem:[%s10174_s1 + $0x588] ss:$28 sps:$4 sm:$0xff]  }
 0x12c   :  { %3270 = vmatprep.subr.bf16.mxu0 %v7310_v12  ;;  %6635 = vmatprep.subr.bf16.mxu1 %v7342_v14  ;;  %v7416_v12 = vld [vmem:[%s10174_s1 + $0xad0] ss:$28 sps:$4 sm:$0xff]   ;;  %v7385_v14 = vld [vmem:[%s10174_s1 + $0x5c4] ss:$28 sps:$4 sm:$0xff]  }
 0x12f   :  { %3271 = vmatpush1.bf16.msra.mxu0 %v7308_v16  ;;  %6636 = vmatpush3.bf16.msra.mxu1 %v7346_v19  ;;  %v7417_v16 = vld [vmem:[%s10174_s1 + $0xcc8] ss:$28 sps:$4 sm:$0xff]  }
 0x130   :  { %3272 = vmatprep.subr.bf16.mxu0 %v7315_v5  ;;  %6637 = vmatprep.subr.bf16.mxu1 %v7347_v20  ;;  %v7383_v5 = vld [vmem:[%s10174_s1 + $0x5c0] ss:$28 sps:$4 sm:$0xff]   ;;  %v7421_v19 = vld [vmem:[%s10174_s1 + $0xb08] ss:$28 sps:$4 sm:$0xff]  }
 0x131   :  { %v7390_v20 = vld [vmem:[%s10174_s1 + $0x5fc] ss:$28 sps:$4 sm:$0xff]  }
 0x133   :  { %3273 = vmatpush1.bf16.msra.mxu0 %v7313_v21  ;;  %6638 = vmatpush3.bf16.msra.mxu1 %v7351_v25  ;;  %v7422_v21 = vld [vmem:[%s10174_s1 + $0xd00] ss:$28 sps:$4 sm:$0xff]  }
 0x134   :  { %3274 = vmatprep.subr.bf16.mxu0 %v7320_v23  ;;  %6639 = vmatprep.subr.bf16.mxu1 %v7352_v26  ;;  %v7388_v23 = vld [vmem:[%s10174_s1 + $0x5f8] ss:$28 sps:$4 sm:$0xff]   ;;  %v7426_v25 = vld [vmem:[%s10174_s1 + $0xb40] ss:$28 sps:$4 sm:$0xff]  }
 0x135   :  { %v7395_v26 = vld [vmem:[%s10174_s1 + $0x634] ss:$28 sps:$4 sm:$0xff]  }
 0x137   :  { %3275 = vmatpush1.bf16.msra.mxu0 %v7318_v15  ;;  %6640 = vmatpush3.bf16.msra.mxu1 %v7356_v28  ;;  %v7427_v15 = vld [vmem:[%s10174_s1 + $0xd38] ss:$28 sps:$4 sm:$0xff]  }
 0x138   :  { %3276 = vmatprep.subr.bf16.mxu0 %v7325_v17  ;;  %6641 = vmatprep.subr.bf16.mxu1 %v7357_v29  ;;  %v7393_v17 = vld [vmem:[%s10174_s1 + $0x630] ss:$28 sps:$4 sm:$0xff]   ;;  %v7431_v28 = vld [vmem:[%s10174_s1 + $0xb78] ss:$28 sps:$4 sm:$0xff]  }
 0x139   :  { %v7400_v29 = vld [vmem:[%s10174_s1 + $0x66c] ss:$28 sps:$4 sm:$0xff]  }
 0x13b   :  { %3277 = vmatpush1.bf16.msra.mxu0 %v7323_v30  ;;  %6642 = vmatpush3.bf16.msra.mxu1 %v7361_v33  ;;  %v7432_v30 = vld [vmem:[%s10174_s1 + $0xd70] ss:$28 sps:$4 sm:$0xff]  }
 0x13c   :  { %3278 = vmatprep.subr.bf16.mxu0 %v7330_v31  ;;  %6643 = vmatprep.subr.bf16.mxu1 %v7362_v34  ;;  %v7398_v31 = vld [vmem:[%s10174_s1 + $0x668] ss:$28 sps:$4 sm:$0xff]   ;;  %v7436_v33 = vld [vmem:[%s10174_s1 + $0xbb0] ss:$28 sps:$4 sm:$0xff]  }
 0x13d   :  { %v7405_v34 = vld [vmem:[%s10174_s1 + $0x6a4] ss:$28 sps:$4 sm:$0xff]  }
 0x13f   :  { %3279 = vmatpush1.bf16.msra.mxu0 %v7328_v35  ;;  %6644 = vmatpush3.bf16.msra.mxu1 %v7366_v36  ;;  %v7437_v35 = vld [vmem:[%s10174_s1 + $0xda8] ss:$28 sps:$4 sm:$0xff]  }
 0x140   :  { %3289 = vmatprep.subr.bf16.mxu0 %v7335_v22  ;;  %6651 = vmatprep.subr.bf16.mxu1 %v7367_v37  ;;  %v7403_v22 = vld [vmem:[%s10174_s1 + $0x6a0] ss:$28 sps:$4 sm:$0xff]   ;;  %v7441_v36 = vld [vmem:[%s10174_s1 + $0xbe8] ss:$28 sps:$4 sm:$0xff]  }
 0x141   :  { %v7410_v37 = vld [vmem:[%s10174_s1 + $0x6dc] ss:$28 sps:$4 sm:$0xff]  }
 0x142   :  { %3281 = vmatmul.mubr.bf16.vlgmr.msra.gmra.mrb[4].mxu0 %v8121_v7  ;;  %3485 = vmatmul.mubr.bf16.vlgmr.msra.gmra.mrb[8].mxu1 %v8325_v13  ;;  %v7377_v7 = vld [vmem:[%s10174_s1 + $0x948] ss:$28 sps:$4 sm:$0xff]  }
 0x143   :  { %3290 = vmatpush1.bf16.msra.mxu0 %v7333_v38  ;;  %6652 = vmatpush3.bf16.msra.mxu1 %v7371_v40  ;;  %v7442_v38 = vld [vmem:[%s10174_s1 + $0xde0] ss:$28 sps:$4 sm:$0xff]  }
 0x144   :  { %3291 = vmatprep.subr.bf16.mxu0 %v7340_v39  ;;  %6653 = vmatprep.subr.bf16.mxu1 %v7372_v41  ;;  %v7408_v39 = vld [vmem:[%s10174_s1 + $0x6d8] ss:$28 sps:$4 sm:$0xff]   ;;  %v7446_v40 = vld [vmem:[%s10174_s1 + $0xc20] ss:$28 sps:$4 sm:$0xff]  }
 0x145   :  { %3524 = vmatprep.mubr.bf16.mxu1 %v8348_v18  ;;  %3321 = vmatprep.mubr.bf16.mxu0 %v8134_v11  ;;  %v7382_v11 = vld [vmem:[%s10174_s1 + $0x980] ss:$28 sps:$4 sm:$0xff]   ;;  %v7415_v41 = vld [vmem:[%s10174_s1 + $0x714] ss:$28 sps:$4 sm:$0xff]  }
 0x147   :  { %3292 = vmatpush1.bf16.msra.mxu0 %v7338_v42  ;;  %6654 = vmatpush3.bf16.msra.mxu1 %v7376_v43  ;;  %v7449_v42 = vld [vmem:[%s10176_s3 + $0x4] ss:$12 sps:$4 sm:$0xff]   ;;  %v7420_v43 = vld [vmem:[%s10174_s1 + $0x74c] ss:$28 sps:$4 sm:$0xff]  }
 0x148   :  { %3293 = vmatprep.subr.bf16.mxu0 %v7345_v52  ;;  %6655 = vmatprep.subr.bf16.mxu1 %v7377_v7  ;;  %v7413_v52 = vld [vmem:[%s10174_s1 + $0x710] ss:$28 sps:$4 sm:$0xff]  }
 0x149   :  { %v7447_v7 = vld [vmem:[%s10176_s3] ss:$12 sps:$4 sm:$0xff]  }
 0x14b   :  { %3294 = vmatpush1.bf16.msra.mxu0 %v7343_v44  ;;  %6656 = vmatpush3.bf16.msra.mxu1 %v7381_v46  ;;  %v7455_v44 = vld [vmem:[%s10176_s3 + $0x1c] ss:$12 sps:$4 sm:$0xff]   ;;  %v7453_v46 = vld [vmem:[%s10176_s3 + $0x18] ss:$12 sps:$4 sm:$0xff]  }
 0x14c   :  { %3295 = vmatprep.subr.bf16.mxu0 %v7350_v45  ;;  %6657 = vmatprep.subr.bf16.mxu1 %v7382_v11  ;;  %v7418_v45 = vld [vmem:[%s10174_s1 + $0x748] ss:$28 sps:$4 sm:$0xff]  }
 0x14d   :  { %v7425_v11 = vld [vmem:[%s10174_s1 + $0x784] ss:$28 sps:$4 sm:$0xff]  }
 0x14f   :  { %3296 = vmatpush1.bf16.msra.mxu0 %v7348_v47  ;;  %6658 = vmatpush3.bf16.msra.mxu1 %v7386_v49  ;;  %v7461_v47 = vld [vmem:[%s10176_s3 + $0x34] ss:$12 sps:$4 sm:$0xff]   ;;  %v7459_v49 = vld [vmem:[%s10176_s3 + $0x30] ss:$12 sps:$4 sm:$0xff]  }
 0x150   :  { %3297 = vmatprep.subr.bf16.mxu0 %v7355_v48  ;;  %6659 = vmatprep.subr.bf16.mxu1 %v7387_v50  ;;  %v7430_v48 = vld [vmem:[%s10174_s1 + $0x7bc] ss:$28 sps:$4 sm:$0xff]  }
 0x151   :  { %v7467_v50 = vld [vmem:[%s10176_s3 + $0x4c] ss:$12 sps:$4 sm:$0xff]  }
 0x153   :  { %3298 = vmatpush1.bf16.msra.mxu0 %v7353_v51  ;;  %6660 = vmatpush3.bf16.msra.mxu1 %v7391_v54  ;;  %v7435_v51 = vld [vmem:[%s10174_s1 + $0x7f4] ss:$28 sps:$4 sm:$0xff]  }
 0x154   :  { %3299 = vmatprep.subr.bf16.mxu0 %v7360_v53  ;;  %6661 = vmatprep.subr.bf16.mxu1 %v7392_v55  ;;  %v7465_v53 = vld [vmem:[%s10176_s3 + $0x48] ss:$12 sps:$4 sm:$0xff]   ;;  %v7473_v54 = vld [vmem:[%s10176_s3 + $0x64] ss:$12 sps:$4 sm:$0xff]  }
 0x155   :  { %v7433_v55 = vld [vmem:[%s10174_s1 + $0x7f0] ss:$28 sps:$4 sm:$0xff]  }
 0x157   :  { %3300 = vmatpush1.bf16.msra.mxu0 %v7358_v56  ;;  %6662 = vmatpush3.bf16.msra.mxu1 %v7396_v57  ;;  %v7440_v56 = vld [vmem:[%s10174_s1 + $0x82c] ss:$28 sps:$4 sm:$0xff]  }
 0x158   :  { %3301 = vmatprep.subr.bf16.mxu0 %v7365_v58  ;;  %6663 = vmatprep.subr.bf16.mxu1 %v7397_v59  ;;  %v7471_v57 = vld [vmem:[%s10176_s3 + $0x60] ss:$12 sps:$4 sm:$0xff]   ;;  %v7479_v58 = vld [vmem:[%s10176_s3 + $0x7c] ss:$12 sps:$4 sm:$0xff]  }
 0x159   :  { %v7438_v59 = vld [vmem:[%s10174_s1 + $0x828] ss:$28 sps:$4 sm:$0xff]  }
 0x15b   :  { %3302 = vmatpush1.bf16.msra.mxu0 %v7363_v60  ;;  %6664 = vmatpush3.bf16.msra.mxu1 %v7401_v61  ;;  %v7445_v60 = vld [vmem:[%s10174_s1 + $0x864] ss:$28 sps:$4 sm:$0xff]  }
 0x15c   :  { %3303 = vmatprep.subr.bf16.mxu0 %v7370_v62  ;;  %6665 = vmatprep.subr.bf16.mxu1 %v7402_v63  ;;  %v7477_v61 = vld [vmem:[%s10176_s3 + $0x78] ss:$12 sps:$4 sm:$0xff]   ;;  %v7485_v62 = vld [vmem:[%s10176_s3 + $0x94] ss:$12 sps:$4 sm:$0xff]  }
 0x15d   :  { %v7443_v63 = vld [vmem:[%s10174_s1 + $0x860] ss:$28 sps:$4 sm:$0xff]  }
 0x15f   :  { %3304 = vmatpush1.bf16.msra.mxu0 %v7368_v0  ;;  %6666 = vmatpush3.bf16.msra.mxu1 %v7406_v1  ;;  %v7452_v0 = vld [vmem:[%s10174_s1 + $0x89c] ss:$28 sps:$4 sm:$0xff]  }
 0x160   :  { %3305 = vmatprep.subr.bf16.mxu0 %v7375_v2  ;;  %6673 = vmatprep.subr.bf16.mxu1 %v7407_v3  ;;  %v7483_v1 = vld [vmem:[%s10176_s3 + $0x90] ss:$12 sps:$4 sm:$0xff]   ;;  %v7491_v2 = vld [vmem:[%s10176_s3 + $0xac] ss:$12 sps:$4 sm:$0xff]  }
 0x161   :  { %v7450_v3 = vld [vmem:[%s10174_s1 + $0x898] ss:$28 sps:$4 sm:$0xff]  }
 0x162   :  { %3525 = vmatmul.mubr.bf16.vlgmr.msra.gmra.mrb[12].mxu1 %v8540_v24 }
 0x163   :  { %3306 = vmatpush1.bf16.msra.mxu0 %v7373_v4  ;;  %6674 = vmatpush3.bf16.msra.mxu1 %v7411_v6  ;;  %v7489_v4 = vld [vmem:[%s10176_s3 + $0xa8] ss:$12 sps:$4 sm:$0xff]  }
 0x164   :  { %3307 = vmatprep.subr.bf16.mxu0 %v7380_v8  ;;  %6675 = vmatprep.subr.bf16.mxu1 %v7412_v9  ;;  %v7458_v6 = vld [vmem:[%s10174_s1 + $0x8d4] ss:$28 sps:$4 sm:$0xff]  }
 0x165   :  { %3564 = vmatprep.mubr.bf16.mxu1 %v8556_v27  ;;  %v7497_v8 = vld [vmem:[%s10176_s3 + $0xc4] ss:$12 sps:$4 sm:$0xff]  }
 0x166   :  { %v7456_v9 = vld [vmem:[%s10174_s1 + $0x8d0] ss:$28 sps:$4 sm:$0xff]  }
 0x167   :  { %3308 = vmatpush1.bf16.msra.mxu0 %v7378_v10  ;;  %6676 = vmatpush3.bf16.msra.mxu1 %v7416_v12  ;;  %v7495_v10 = vld [vmem:[%s10176_s3 + $0xc0] ss:$12 sps:$4 sm:$0xff]  }
 0x168   :  { %3309 = vmatprep.subr.bf16.mxu0 %v7385_v14  ;;  %6677 = vmatprep.subr.bf16.mxu1 %v7417_v16  ;;  %v7464_v12 = vld [vmem:[%s10174_s1 + $0x90c] ss:$28 sps:$4 sm:$0xff]  }
 0x169   :  { %v7503_v14 = vld [vmem:[%s10176_s3 + $0xdc] ss:$12 sps:$4 sm:$0xff]  }
 0x16a   :  { %v7462_v16 = vld [vmem:[%s10174_s1 + $0x908] ss:$28 sps:$4 sm:$0xff]  }
 0x16b   :  { %3310 = vmatpush1.bf16.msra.mxu0 %v7383_v5  ;;  %6678 = vmatpush3.bf16.msra.mxu1 %v7421_v19  ;;  %v7501_v5 = vld [vmem:[%s10176_s3 + $0xd8] ss:$12 sps:$4 sm:$0xff]  }
 0x16c   :  { %3311 = vmatprep.subr.bf16.mxu0 %v7390_v20  ;;  %6679 = vmatprep.subr.bf16.mxu1 %v7422_v21  ;;  %v7470_v19 = vld [vmem:[%s10174_s1 + $0x944] ss:$28 sps:$4 sm:$0xff]  }
 0x16d   :  { %v7509_v20 = vld [vmem:[%s10176_s3 + $0xf4] ss:$12 sps:$4 sm:$0xff]  }
 0x16e   :  { %v7468_v21 = vld [vmem:[%s10174_s1 + $0x940] ss:$28 sps:$4 sm:$0xff]  }
 0x16f   :  { %3312 = vmatpush1.bf16.msra.mxu0 %v7388_v23  ;;  %6680 = vmatpush3.bf16.msra.mxu1 %v7426_v25  ;;  %v7507_v23 = vld [vmem:[%s10176_s3 + $0xf0] ss:$12 sps:$4 sm:$0xff]  }
 0x170   :  { %3313 = vmatprep.subr.bf16.mxu0 %v7395_v26  ;;  %6681 = vmatprep.subr.bf16.mxu1 %v7427_v15  ;;  %v7476_v25 = vld [vmem:[%s10174_s1 + $0x97c] ss:$28 sps:$4 sm:$0xff]  }
 0x171   :  { %v7515_v26 = vld [vmem:[%s10176_s3 + $0x10c] ss:$12 sps:$4 sm:$0xff]  }
 0x172   :  { %v7474_v15 = vld [vmem:[%s10174_s1 + $0x978] ss:$28 sps:$4 sm:$0xff]  }
 0x173   :  { %3314 = vmatpush1.bf16.msra.mxu0 %v7393_v17  ;;  %6682 = vmatpush3.bf16.msra.mxu1 %v7431_v28  ;;  %v7513_v17 = vld [vmem:[%s10176_s3 + $0x108] ss:$12 sps:$4 sm:$0xff]  }
 0x174   :  { %3315 = vmatprep.subr.bf16.mxu0 %v7400_v29  ;;  %6683 = vmatprep.subr.bf16.mxu1 %v7432_v30  ;;  %v7482_v28 = vld [vmem:[%s10174_s1 + $0x9b4] ss:$28 sps:$4 sm:$0xff]  }
 0x175   :  { %v7521_v29 = vld [vmem:[%s10176_s3 + $0x124] ss:$12 sps:$4 sm:$0xff]  }
 0x176   :  { %v7480_v30 = vld [vmem:[%s10174_s1 + $0x9b0] ss:$28 sps:$4 sm:$0xff]  }
 0x177   :  { %3316 = vmatpush1.bf16.msra.mxu0 %v7398_v31  ;;  %6684 = vmatpush3.bf16.msra.mxu1 %v7436_v33  ;;  %v7519_v31 = vld [vmem:[%s10176_s3 + $0x120] ss:$12 sps:$4 sm:$0xff]  }
 0x178   :  { %3317 = vmatprep.subr.bf16.mxu0 %v7405_v34  ;;  %6685 = vmatprep.subr.bf16.mxu1 %v7437_v35  ;;  %v7488_v33 = vld [vmem:[%s10174_s1 + $0x9ec] ss:$28 sps:$4 sm:$0xff]  }
 0x179   :  { %v7527_v34 = vld [vmem:[%s10176_s3 + $0x13c] ss:$12 sps:$4 sm:$0xff]  }
 0x17a   :  { %v7486_v35 = vld [vmem:[%s10174_s1 + $0x9e8] ss:$28 sps:$4 sm:$0xff]  }
 0x17b   :  { %3318 = vmatpush1.bf16.msra.mxu0 %v7403_v22  ;;  %6686 = vmatpush3.bf16.msra.mxu1 %v7441_v36  ;;  %v7525_v22 = vld [vmem:[%s10176_s3 + $0x138] ss:$12 sps:$4 sm:$0xff]  }
 0x17c   :  { %3319 = vmatprep.subr.bf16.mxu0 %v7410_v37  ;;  %6687 = vmatprep.subr.bf16.mxu1 %v7442_v38  ;;  %v7494_v36 = vld [vmem:[%s10174_s1 + $0xa24] ss:$28 sps:$4 sm:$0xff]  }
 0x17d   :  { %v7533_v37 = vld [vmem:[%s10176_s3 + $0x154] ss:$12 sps:$4 sm:$0xff]  }
 0x17e   :  { %v7492_v38 = vld [vmem:[%s10174_s1 + $0xa20] ss:$28 sps:$4 sm:$0xff]  }
 0x17f   :  { %3320 = vmatpush1.bf16.msra.mxu0 %v7408_v39  ;;  %6688 = vmatpush3.bf16.msra.mxu1 %v7446_v40  ;;  %v7531_v39 = vld [vmem:[%s10176_s3 + $0x150] ss:$12 sps:$4 sm:$0xff]  }
 0x180   :  { %3330 = vmatprep.subr.bf16.mxu0 %v7415_v41  ;;  %4587 = vmatprep.subr.bf16.mxu1 %v7449_v42  ;;  %v7500_v40 = vld [vmem:[%s10174_s1 + $0xa5c] ss:$28 sps:$4 sm:$0xff]  }
 0x181   :  { %v7539_v41 = vld [vmem:[%s10176_s3 + $0x16c] ss:$12 sps:$4 sm:$0xff]  }
 0x182   :  { %3322 = vmatmul.mubr.bf16.vlgmr.msra.gmra.mrb[4].mxu0 %v8325_v13  ;;  %3565 = vmatmul.mubr.bf16.vlgmr.msra.gmra.mrb[16].mxu1 %v8744_v32  ;;  %v7423_v13 = vld [vmem:[%s10174_s1 + $0x780] ss:$28 sps:$4 sm:$0xff]   ;;  %v7498_v42 = vld [vmem:[%s10174_s1 + $0xa58] ss:$28 sps:$4 sm:$0xff]  }
 0x183   :  { %3331 = vmatpush1.bf16.msra.mxu0 %v7413_v52  ;;  %4588 = vmatpush1.bf16.msra.mxu1 %v7447_v7  ;;  %v7537_v52 = vld [vmem:[%s10176_s3 + $0x168] ss:$12 sps:$4 sm:$0xff]   ;;  %v7545_v7 = vld [vmem:[%s10176_s3 + $0x184] ss:$12 sps:$4 sm:$0xff]  }
 0x184   :  { %3332 = vmatprep.subr.bf16.mxu0 %v7420_v43  ;;  %4589 = vmatprep.subr.bf16.mxu1 %v7455_v44  ;;  %v7506_v43 = vld [vmem:[%s10174_s1 + $0xa94] ss:$28 sps:$4 sm:$0xff]  }
 0x185   :  { %3362 = vmatprep.mubr.bf16.mxu0 %v8348_v18  ;;  %v7428_v18 = vld [vmem:[%s10174_s1 + $0x7b8] ss:$28 sps:$4 sm:$0xff]   ;;  %v7504_v44 = vld [vmem:[%s10174_s1 + $0xa90] ss:$28 sps:$4 sm:$0xff]  }
 0x187   :  { %3333 = vmatpush1.bf16.msra.mxu0 %v7418_v45  ;;  %4590 = vmatpush1.bf16.msra.mxu1 %v7453_v46  ;;  %v7512_v45 = vld [vmem:[%s10174_s1 + $0xacc] ss:$28 sps:$4 sm:$0xff]  }
 0x188   :  { %3334 = vmatprep.subr.bf16.mxu0 %v7425_v11  ;;  %4591 = vmatprep.subr.bf16.mxu1 %v7461_v47  ;;  %v7510_v46 = vld [vmem:[%s10174_s1 + $0xac8] ss:$28 sps:$4 sm:$0xff]   ;;  %v553_v47 = vlaneseq }
 0x189   :  { %v7518_v11 = vld [vmem:[%s10174_s1 + $0xb04] ss:$28 sps:$4 sm:$0xff]  }
 0x18b   :  { %3335 = vmatpush1.bf16.msra.mxu0 %v7423_v13  ;;  %4592 = vmatpush1.bf16.msra.mxu1 %v7459_v49  ;;  %v7516_v13 = vld [vmem:[%s10174_s1 + $0xb00] ss:$28 sps:$4 sm:$0xff]   ;;  %v7530_v49 = vld [vmem:[%s10174_s1 + $0xb74] ss:$28 sps:$4 sm:$0xff]  }
 0x18c   :  { %3336 = vmatprep.subr.bf16.mxu0 %v7430_v48  ;;  %4593 = vmatprep.subr.bf16.mxu1 %v7467_v50  ;;  %v9354_v48 = vshrl.u32 %v553_v47, 7  ;;  %v7590_v47 = vld [vmem:[%s10174_s1 + $0xda4] ss:$28 sps:$4 sm:$0xff]  }
 0x18e   :  { %v9363_v50 = vsub.s32 0, %v9354_v48 }
 0x18f   :  { %3337 = vmatpush1.bf16.msra.mxu0 %v7428_v18  ;;  %4594 = vmatpush1.bf16.msra.mxu1 %v7465_v53  ;;  %v7528_v18 = vld [vmem:[%s10174_s1 + $0xb70] ss:$28 sps:$4 sm:$0xff]   ;;  %v9374_v53 = vsub.s32 1, %v9354_v48 }
 0x190   :  { %3338 = vmatprep.subr.bf16.mxu0 %v7435_v51  ;;  %4595 = vmatprep.subr.bf16.mxu1 %v7473_v54  ;;  %v9371_v51 = vld [vmem:[%s10177_s2] sm:$0x7f]  ;;  %v567_v54 = vsub.s32 3, %v9354_v48 }
 0x193   :  { %3339 = vmatpush1.bf16.msra.mxu0 %v7433_v55  ;;  %4596 = vmatpush1.bf16.msra.mxu1 %v7471_v57  ;;  %v7536_v55 = vld [vmem:[%s10174_s1 + $0xbac] ss:$28 sps:$4 sm:$0xff]   ;;  %v560_v57 = vrot.slane %v9371_v51, %v9374_v53 }
 0x194   :  { %3340 = vmatprep.subr.bf16.mxu0 %v7440_v56  ;;  %4597 = vmatprep.subr.bf16.mxu1 %v7479_v58  ;;  %v556_v56 = vrot.slane %v9371_v51, %v9363_v50  ;;  %v568_v58 = vrot.slane %v9371_v51, %v567_v54 }
 0x197   :  { %3341 = vmatpush1.bf16.msra.mxu0 %v7438_v59  ;;  %4598 = vmatpush1.bf16.msra.mxu1 %v7477_v61  ;;  %v7534_v59 = vld [vmem:[%s10174_s1 + $0xba8] ss:$28 sps:$4 sm:$0xff]  }
 0x198   :  { %3342 = vmatprep.subr.bf16.mxu0 %v7445_v60  ;;  %4599 = vmatprep.subr.bf16.mxu1 %v7485_v62  ;;  %v7542_v60 = vld [vmem:[%s10174_s1 + $0xbe4] ss:$28 sps:$4 sm:$0xff]  }
 0x19b   :  { %3343 = vmatpush1.bf16.msra.mxu0 %v7443_v63  ;;  %4600 = vmatpush1.bf16.msra.mxu1 %v7483_v1 }
 0x19c   :  { %3344 = vmatprep.subr.bf16.mxu0 %v7452_v0  ;;  %4601 = vmatprep.subr.bf16.mxu1 %v7491_v2 }
 0x19f   :  { %3345 = vmatpush1.bf16.msra.mxu0 %v7450_v3  ;;  %4602 = vmatpush1.bf16.msra.mxu1 %v7489_v4 }
 0x1a0   :  { %3346 = vmatprep.subr.bf16.mxu0 %v7458_v6  ;;  %4603 = vmatprep.subr.bf16.mxu1 %v7497_v8  ;;  %v7540_v8 = vld [vmem:[%s10174_s1 + $0xbe0] ss:$28 sps:$4 sm:$0xff]  }
 0x1a3   :  { %3347 = vmatpush1.bf16.msra.mxu0 %v7456_v9  ;;  %4604 = vmatpush1.bf16.msra.mxu1 %v7495_v10 }
 0x1a4   :  { %3348 = vmatprep.subr.bf16.mxu0 %v7464_v12  ;;  %4605 = vmatprep.subr.bf16.mxu1 %v7503_v14  ;;  %v7548_v14 = vld [vmem:[%s10174_s1 + $0xc1c] ss:$28 sps:$4 sm:$0xff]  }
 0x1a7   :  { %3349 = vmatpush1.bf16.msra.mxu0 %v7462_v16  ;;  %4606 = vmatpush1.bf16.msra.mxu1 %v7501_v5 }
 0x1a8   :  { %3350 = vmatprep.subr.bf16.mxu0 %v7470_v19  ;;  %4607 = vmatprep.subr.bf16.mxu1 %v7509_v20  ;;  %v7543_v20 = vld [vmem:[%s10176_s3 + $0x180] ss:$12 sps:$4 sm:$0xff]  }
 0x1ab   :  { %3351 = vmatpush1.bf16.msra.mxu0 %v7468_v21  ;;  %4608 = vmatpush1.bf16.msra.mxu1 %v7507_v23  ;;  %v7546_v21 = vld [vmem:[%s10174_s1 + $0xc18] ss:$28 sps:$4 sm:$0xff]  }
 0x1ac   :  { %3352 = vmatprep.subr.bf16.mxu0 %v7476_v25  ;;  %4609 = vmatprep.subr.bf16.mxu1 %v7515_v26  ;;  %v7551_v25 = vld [vmem:[%s10176_s3 + $0x19c] ss:$12 sps:$4 sm:$0xff]   ;;  %v7554_v26 = vld [vmem:[%s10174_s1 + $0xc54] ss:$28 sps:$4 sm:$0xff]  }
 0x1af   :  { %3353 = vmatpush1.bf16.msra.mxu0 %v7474_v15  ;;  %4610 = vmatpush1.bf16.msra.mxu1 %v7513_v17  ;;  %v7549_v17 = vld [vmem:[%s10176_s3 + $0x198] ss:$12 sps:$4 sm:$0xff]  }
 0x1b0   :  { %3354 = vmatprep.subr.bf16.mxu0 %v7482_v28  ;;  %4611 = vmatprep.subr.bf16.mxu1 %v7521_v29  ;;  %v7552_v28 = vld [vmem:[%s10174_s1 + $0xc50] ss:$28 sps:$4 sm:$0xff]   ;;  %v7557_v29 = vld [vmem:[%s10176_s3 + $0x1b4] ss:$12 sps:$4 sm:$0xff]  }
 0x1b3   :  { %3355 = vmatpush1.bf16.msra.mxu0 %v7480_v30  ;;  %4612 = vmatpush1.bf16.msra.mxu1 %v7519_v31  ;;  %v7560_v30 = vld [vmem:[%s10174_s1 + $0xc8c] ss:$28 sps:$4 sm:$0xff]   ;;  %v7555_v31 = vld [vmem:[%s10176_s3 + $0x1b0] ss:$12 sps:$4 sm:$0xff]  }
 0x1b4   :  { %3356 = vmatprep.subr.bf16.mxu0 %v7488_v33  ;;  %4613 = vmatprep.subr.bf16.mxu1 %v7527_v34  ;;  %v7558_v33 = vld [vmem:[%s10174_s1 + $0xc88] ss:$28 sps:$4 sm:$0xff]   ;;  %v7563_v34 = vld [vmem:[%s10176_s3 + $0x1cc] ss:$12 sps:$4 sm:$0xff]  }
 0x1b7   :  { %3357 = vmatpush1.bf16.msra.mxu0 %v7486_v35  ;;  %4614 = vmatpush1.bf16.msra.mxu1 %v7525_v22  ;;  %v7566_v35 = vld [vmem:[%s10174_s1 + $0xcc4] ss:$28 sps:$4 sm:$0xff]   ;;  %v7561_v22 = vld [vmem:[%s10176_s3 + $0x1c8] ss:$12 sps:$4 sm:$0xff]  }
 0x1b8   :  { %3358 = vmatprep.subr.bf16.mxu0 %v7494_v36  ;;  %4615 = vmatprep.subr.bf16.mxu1 %v7533_v37  ;;  %v7564_v36 = vld [vmem:[%s10174_s1 + $0xcc0] ss:$28 sps:$4 sm:$0xff]   ;;  %v7569_v37 = vld [vmem:[%s10176_s3 + $0x1e4] ss:$12 sps:$4 sm:$0xff]  }
 0x1bb   :  { %3359 = vmatpush1.bf16.msra.mxu0 %v7492_v38  ;;  %4616 = vmatpush1.bf16.msra.mxu1 %v7531_v39  ;;  %v7572_v38 = vld [vmem:[%s10174_s1 + $0xcfc] ss:$28 sps:$4 sm:$0xff]   ;;  %v7567_v39 = vld [vmem:[%s10176_s3 + $0x1e0] ss:$12 sps:$4 sm:$0xff]  }
 0x1bc   :  { %3360 = vmatprep.subr.bf16.mxu0 %v7500_v40  ;;  %4617 = vmatprep.subr.bf16.mxu1 %v7539_v41  ;;  %v7570_v40 = vld [vmem:[%s10174_s1 + $0xcf8] ss:$28 sps:$4 sm:$0xff]   ;;  %v7575_v41 = vld [vmem:[%s10176_s3 + $0x1fc] ss:$12 sps:$4 sm:$0xff]  }
 0x1bf   :  { %3361 = vmatpush1.bf16.msra.mxu0 %v7498_v42  ;;  %4618 = vmatpush1.bf16.msra.mxu1 %v7537_v52  ;;  %v7578_v42 = vld [vmem:[%s10174_s1 + $0xd34] ss:$28 sps:$4 sm:$0xff]   ;;  %v7573_v52 = vld [vmem:[%s10176_s3 + $0x1f8] ss:$12 sps:$4 sm:$0xff]  }
 0x1c0   :  { %3371 = vmatprep.subr.bf16.mxu0 %v7506_v43  ;;  %4628 = vmatprep.subr.bf16.mxu1 %v7545_v7  ;;  %v7576_v43 = vld [vmem:[%s10174_s1 + $0xd30] ss:$28 sps:$4 sm:$0xff]   ;;  %v7581_v7 = vld [vmem:[%s10176_s3 + $0x214] ss:$12 sps:$4 sm:$0xff]  }
 0x1c2   :  { %3363 = vmatmul.mubr.bf16.vlgmr.msra.gmra.mrb[4].mxu0 %v8540_v24  ;;  %v7524_v24 = vld [vmem:[%s10174_s1 + $0xb3c] ss:$28 sps:$4 sm:$0xff]  }
 0x1c3   :  { %3372 = vmatpush1.bf16.msra.mxu0 %v7504_v44  ;;  %3403 = vmatprep.mubr.bf16.mxu0 %v8556_v27  ;;  %v7522_v27 = vld [vmem:[%s10174_s1 + $0xb38] ss:$28 sps:$4 sm:$0xff]   ;;  %v7584_v44 = vld [vmem:[%s10174_s1 + $0xd6c] ss:$28 sps:$4 sm:$0xff]  }
 0x1c4   :  { %3373 = vmatprep.subr.bf16.mxu0 %v7512_v45  ;;  %v7579_v45 = vld [vmem:[%s10176_s3 + $0x210] ss:$12 sps:$4 sm:$0xff]  }
 0x1c7   :  { %3374 = vmatpush1.bf16.msra.mxu0 %v7510_v46  ;;  %v7582_v46 = vld [vmem:[%s10174_s1 + $0xd68] ss:$28 sps:$4 sm:$0xff]  }
 0x1c8   :  { %3375 = vmatprep.subr.bf16.mxu0 %v7518_v11  ;;  %v7587_v11 = vld [vmem:[%s10176_s3 + $0x22c] ss:$12 sps:$4 sm:$0xff]  }
 0x1cb   :  { %3376 = vmatpush1.bf16.msra.mxu0 %v7516_v13 }
 0x1cc   :  { %3377 = vmatprep.subr.bf16.mxu0 %v7524_v24 }
 0x1cf   :  { %3378 = vmatpush1.bf16.msra.mxu0 %v7522_v27  ;;  %v7585_v27 = vld [vmem:[%s10176_s3 + $0x228] ss:$12 sps:$4 sm:$0xff]  }
 0x1d0   :  { %3379 = vmatprep.subr.bf16.mxu0 %v7530_v49  ;;  %v7588_v49 = vld [vmem:[%s10174_s1 + $0xda0] ss:$28 sps:$4 sm:$0xff]  }
 0x1d3   :  { %3380 = vmatpush1.bf16.msra.mxu0 %v7528_v18 }
 0x1d4   :  { %3381 = vmatprep.subr.bf16.mxu0 %v7536_v55 }
 0x1d5   :  { %v3077_v61 = vpop.f32.mrb[0].mxu0  ;;  %v9393_v62 = vpop.f32.mrb[0].mxu1 }
 0x1d6   :  { %v6813_v63 = vadd.f32 %v3077_v61, %v556_v56  ;;  %v3079_v0 = vpop.f32.mrb[1].mxu0  ;;  %v3243_v1 = vpop.f32.mrb[1].mxu1  ;;  %v7593_v56 = vld [vmem:[%s10176_s3 + $0x244] ss:$12 sps:$4 sm:$0xff]   ;;  %v7599_v61 = vld [vmem:[%s10176_s3 + $0x25c] ss:$12 sps:$4 sm:$0xff]  }
 0x1d7   :  { %v6814_v2 = vadd.f32 %v3079_v0, %v560_v57  ;;  %v6816_v3 = vadd.f32 %v3243_v1, %v568_v58  ;;  %v3081_v4 = vpop.f32.mrb[2].mxu0  ;;  %v3245_v6 = vpop.f32.mrb[2].mxu1  ;;  %3382 = vmatpush1.bf16.msra.mxu0 %v7534_v59  ;;  %v7596_v57 = vld [vmem:[%s10174_s1 + $0xddc] ss:$28 sps:$4 sm:$0xff]   ;;  %v7591_v59 = vld [vmem:[%s10176_s3 + $0x240] ss:$12 sps:$4 sm:$0xff]  }
 0x1d8   :  { %v3572_v9 = vmax.f32 %v6813_v63, 0.0  ;;  %v3082_v10 = vpop.f32.mrb[3].mxu0  ;;  %v3246_v12 = vpop.f32.mrb[3].mxu1  ;;  %3383 = vmatprep.subr.bf16.mxu0 %v7542_v60  ;;  %v7594_v60 = vld [vmem:[%s10174_s1 + $0xdd8] ss:$28 sps:$4 sm:$0xff]  }
 0x1d9   :  { %v3573_v16 = vmax.f32 %v6814_v2, 0.0  ;;  %v3575_v5 = vmax.f32 %v6816_v3, 0.0  ;;  %v7600_v63 = vld [vmem:[%s10176_s3 + $0xc8] ss:$12 sps:$4 sm:$0xff]   ;;  %v7597_v0 = vld [vmem:[%s10176_s3 + $0x258] ss:$12 sps:$4 sm:$0xff]  }
 0x1da   :  { %v9409_v23 = vpack.c.bf16 %v3572_v9, %v3572_v9  ;;  %v7601_v1 = vld [vmem:[%s10176_s3 + $0x8] ss:$12 sps:$4 sm:$0xff]   ;;  %v7605_v3 = vld [vmem:[%s10176_s3 + $0xe0] ss:$12 sps:$4 sm:$0xff]   ;;  %v7602_v4 = vld [vmem:[%s10176_s3 + $0x270] ss:$12 sps:$4 sm:$0xff]  }
 0x1db   :  { %v9401_v19 = vpack.c.bf16 %v3573_v16, %v3573_v16  ;;  %3384 = vmatpush1.bf16.msra.mxu0 %v7540_v8  ;;  %v9418_v15 = vpack.c.bf16 %v3575_v5, %v3575_v5  ;;  %v7604_v2 = vld [vmem:[%s10176_s3 + $0x274] ss:$12 sps:$4 sm:$0xff]   ;;  %v7609_v8 = vld [vmem:[%s10176_s3 + $0x28c] ss:$12 sps:$4 sm:$0xff]   ;;  %v7614_v12 = vld [vmem:[%s10176_s3 + $0x2a4] ss:$12 sps:$4 sm:$0xff]  }
 0x1dc   :  { %3385 = vmatprep.subr.bf16.mxu0 %v7548_v14  ;;  %v7606_v6 = vld [vmem:[%s10176_s3 + $0x20] ss:$12 sps:$4 sm:$0xff]   ;;  %v7607_v9 = vld [vmem:[%s10176_s3 + $0x288] ss:$12 sps:$4 sm:$0xff]   ;;  %v7611_v10 = vld [vmem:[%s10176_s3 + $0x38] ss:$12 sps:$4 sm:$0xff]  }
 0x1dd   :  { %4619 = vmatprep.mubr.bf16.mxu1 %v9401_v19  ;;  %v7615_v14 = vld [vmem:[%s10176_s3 + $0x110] ss:$12 sps:$4 sm:$0xff]   ;;  %v7612_v16 = vld [vmem:[%s10176_s3 + $0x2a0] ss:$12 sps:$4 sm:$0xff]  }
 0x1de   :  { %4620 = vmatmul.mubr.bf16.vlgmr.msra.gmra.mrb[20].mxu1 %v9409_v23  ;;  %v7616_v5 = vld [vmem:[%s10176_s3 + $0x50] ss:$12 sps:$4 sm:$0xff]  }
 0x1df   :  { %4629 = vmatpush1.bf16.msra.mxu1 %v7543_v20  ;;  %3386 = vmatpush1.bf16.msra.mxu0 %v7546_v21  ;;  %v7619_v20 = vld [vmem:[%s10176_s3 + $0x2bc] ss:$12 sps:$4 sm:$0xff]  }
 0x1e0   :  { %4660 = vmatprep.mubr.bf16.mxu1 %v9418_v15  ;;  %4630 = vmatprep.subr.bf16.mxu1 %v7551_v25  ;;  %v7620_v21 = vld [vmem:[%s10176_s3 + $0x128] ss:$12 sps:$4 sm:$0xff]   ;;  %v579_v25 = vsub.s32 6, %v9354_v48 }
 0x1e1   :  { %3387 = vmatprep.subr.bf16.mxu0 %v7554_v26  ;;  %v7617_v26 = vld [vmem:[%s10176_s3 + $0x2b8] ss:$12 sps:$4 sm:$0xff]  }
 0x1e3   :  { %4631 = vmatpush1.bf16.msra.mxu1 %v7549_v17  ;;  %3388 = vmatpush1.bf16.msra.mxu0 %v7552_v28  ;;  %v7621_v17 = vld [vmem:[%s10176_s3 + $0x68] ss:$12 sps:$4 sm:$0xff]  }
 0x1e4   :  { %4632 = vmatprep.subr.bf16.mxu1 %v7557_v29  ;;  %3389 = vmatprep.subr.bf16.mxu0 %v7560_v30  ;;  %v7624_v29 = vld [vmem:[%s10176_s3 + $0x2d4] ss:$12 sps:$4 sm:$0xff]  }
 0x1e5   :  { %v7625_v30 = vld [vmem:[%s10176_s3 + $0x140] ss:$12 sps:$4 sm:$0xff]  }
 0x1e7   :  { %4633 = vmatpush1.bf16.msra.mxu1 %v7555_v31  ;;  %3390 = vmatpush1.bf16.msra.mxu0 %v7558_v33  ;;  %v580_v31 = vrot.slane %v9371_v51, %v579_v25  ;;  %v7622_v33 = vld [vmem:[%s10176_s3 + $0x2d0] ss:$12 sps:$4 sm:$0xff]  }
 0x1e8   :  { %4634 = vmatprep.subr.bf16.mxu1 %v7563_v34  ;;  %3391 = vmatprep.subr.bf16.mxu0 %v7566_v35  ;;  %v7626_v34 = vld [vmem:[%s10176_s3 + $0x80] ss:$12 sps:$4 sm:$0xff]   ;;  %v7648_v25 = vld [vmem:[%s10176_s3 + $0x2f0] ss:$12 sps:$4 sm:$0xff]  }
 0x1eb   :  { %4635 = vmatpush1.bf16.msra.mxu1 %v7561_v22  ;;  %3392 = vmatpush1.bf16.msra.mxu0 %v7564_v36  ;;  %v7629_v22 = vld [vmem:[%s10176_s3 + $0x2ec] ss:$12 sps:$4 sm:$0xff]  }
 0x1ec   :  { %4636 = vmatprep.subr.bf16.mxu1 %v7569_v37  ;;  %3393 = vmatprep.subr.bf16.mxu0 %v7572_v38  ;;  %v7630_v36 = vld [vmem:[%s10176_s3 + $0x158] ss:$12 sps:$4 sm:$0xff]  }
 0x1ef   :  { %4637 = vmatpush1.bf16.msra.mxu1 %v7567_v39  ;;  %3394 = vmatpush1.bf16.msra.mxu0 %v7570_v40  ;;  %v7631_v40 = vld [vmem:[%s10176_s3 + $0x98] ss:$12 sps:$4 sm:$0xff]  }
 0x1f0   :  { %4638 = vmatprep.subr.bf16.mxu1 %v7575_v41  ;;  %3395 = vmatprep.subr.bf16.mxu0 %v7578_v42 }
 0x1f3   :  { %4639 = vmatpush1.bf16.msra.mxu1 %v7573_v52  ;;  %3396 = vmatpush1.bf16.msra.mxu0 %v7576_v43  ;;  %v7632_v43 = vld [vmem:[%s10176_s3 + $0x170] ss:$12 sps:$4 sm:$0xff]  }
 0x1f4   :  { %4640 = vmatprep.subr.bf16.mxu1 %v7581_v7  ;;  %3397 = vmatprep.subr.bf16.mxu0 %v7584_v44  ;;  %v7652_v44 = vld [vmem:[%s10176_s3 + $0x304] ss:$12 sps:$4 sm:$0xff]  }
 0x1f5   :  { %v6623_v13 = vpop.f32.mrb[4].mxu1 }
 0x1f6   :  { %v6624_v24 = vpop.f32.mrb[5].mxu1 }
 0x1f7   :  { %4641 = vmatpush1.bf16.msra.mxu1 %v7579_v45  ;;  %3398 = vmatpush1.bf16.msra.mxu0 %v7582_v46  ;;  %v9500_v18 = vadd.f32 %v6624_v24, %v6623_v13  ;;  %v6626_v55 = vpop.f32.mrb[6].mxu1  ;;  %v7633_v46 = vld [vmem:[%s10176_s3 + $0xb0] ss:$12 sps:$4 sm:$0xff]   ;;  %v7634_v13 = vld [vmem:[%s10176_s3 + $0x248] ss:$12 sps:$4 sm:$0xff]  }
 0x1f8   :  { %4642 = vmatprep.subr.bf16.mxu1 %v7587_v11  ;;  %3399 = vmatprep.subr.bf16.mxu0 %v7590_v47  ;;  %v6627_v58 = vpop.f32.mrb[7].mxu1  ;;  %v7650_v11 = vld [vmem:[%s10176_s3 + $0x300] ss:$12 sps:$4 sm:$0xff]   ;;  %v7655_v24 = vld [vmem:[%s10176_s3 + $0x31c] ss:$12 sps:$4 sm:$0xff]  }
 0x1f9   :  { %v3447_v37 = vadd.f32 %v9500_v18, %v580_v31  ;;  %v7653_v18 = vld [vmem:[%s10176_s3 + $0x318] ss:$12 sps:$4 sm:$0xff]   ;;  %v7658_v55 = vld [vmem:[%s10176_s3 + $0x334] ss:$12 sps:$4 sm:$0xff]   ;;  %v7656_v58 = vld [vmem:[%s10176_s3 + $0x330] ss:$12 sps:$4 sm:$0xff]  }
 0x1fa   :  { %v7674_v31 = vld [vmem:[%s10176_s3 + $0x3c0] ss:$12 sps:$4 sm:$0xff]  }
 0x1fb   :  { %4643 = vmatpush1.bf16.msra.mxu1 %v7585_v27  ;;  %3400 = vmatpush1.bf16.msra.mxu0 %v7588_v49  ;;  %v7635_v27 = vld [vmem:[%s10176_s3 + $0x188] ss:$12 sps:$4 sm:$0xff]   ;;  %v7636_v49 = vld [vmem:[%s10176_s3 + $0x260] ss:$12 sps:$4 sm:$0xff]  }
 0x1fc   :  { %4644 = vmatprep.subr.bf16.mxu1 %v7593_v56  ;;  %3401 = vmatprep.subr.bf16.mxu0 %v7596_v57  ;;  %v7637_v56 = vld [vmem:[%s10176_s3 + $0x1a0] ss:$12 sps:$4 sm:$0xff]   ;;  %v7638_v57 = vld [vmem:[%s10176_s3 + $0x278] ss:$12 sps:$4 sm:$0xff]  }
 0x1ff   :  { %4645 = vmatpush1.bf16.msra.mxu1 %v7591_v59  ;;  %3402 = vmatpush1.bf16.msra.mxu0 %v7594_v60  ;;  %v7640_v59 = vld [vmem:[%s10176_s3 + $0x290] ss:$12 sps:$4 sm:$0xff]   ;;  %v7659_v60 = vld [vmem:[%s10176_s3 + $0x348] ss:$12 sps:$4 sm:$0xff]  }
 0x200   :  { %4646 = vmatprep.subr.bf16.mxu1 %v7599_v61  ;;  %6695 = vmatprep.subr.bf16.mxu0 %v7600_v63  ;;  %v7664_v61 = vld [vmem:[%s10176_s3 + $0x364] ss:$12 sps:$4 sm:$0xff]  }
 0x201   :  { %v7641_v63 = vld [vmem:[%s10176_s3 + $0x1d0] ss:$12 sps:$4 sm:$0xff]  }
 0x202   :  { %3404 = vmatmul.mubr.bf16.vlgmr.msra.gmra.mrb[4].mxu0 %v8744_v32  ;;  %v7610_v32 = vld [vmem:[%s10176_s3 + $0xf8] ss:$12 sps:$4 sm:$0xff]  }
 0x203   :  { %4647 = vmatpush1.bf16.msra.mxu1 %v7597_v0  ;;  %6696 = vmatpush3.bf16.msra.mxu0 %v7601_v1  ;;  %v7642_v0 = vld [vmem:[%s10176_s3 + $0x2a8] ss:$12 sps:$4 sm:$0xff]   ;;  %v7662_v1 = vld [vmem:[%s10176_s3 + $0x360] ss:$12 sps:$4 sm:$0xff]  }
 0x204   :  { %4783 = vmatprep.mubr.bf16.mxu0 %v9401_v19  ;;  %4648 = vmatprep.subr.bf16.mxu1 %v7604_v2  ;;  %v9565_v19 = vsub.s32 2, %v9354_v48  ;;  %v7667_v2 = vld [vmem:[%s10176_s3 + $0x37c] ss:$12 sps:$4 sm:$0xff]  }
 0x205   :  { %6697 = vmatprep.subr.bf16.mxu0 %v7605_v3  ;;  %v7643_v3 = vld [vmem:[%s10176_s3 + $0x1e8] ss:$12 sps:$4 sm:$0xff]  }
 0x206   :  { %v564_v28 = vrot.slane %v9371_v51, %v9565_v19 }
 0x207   :  { %4649 = vmatpush1.bf16.msra.mxu1 %v7602_v4  ;;  %6698 = vmatpush3.bf16.msra.mxu0 %v7606_v6  ;;  %v7644_v4 = vld [vmem:[%s10176_s3 + $0x2c0] ss:$12 sps:$4 sm:$0xff]   ;;  %v7665_v6 = vld [vmem:[%s10176_s3 + $0x378] ss:$12 sps:$4 sm:$0xff]  }
 0x208   :  { %4650 = vmatprep.subr.bf16.mxu1 %v7609_v8  ;;  %6699 = vmatprep.subr.bf16.mxu0 %v7610_v32  ;;  %v6815_v35 = vadd.f32 %v9393_v62, %v564_v28  ;;  %v7627_v62 = vld [vmem:[%s10176_s3 + $0x2e8] ss:$12 sps:$4 sm:$0xff]   ;;  %v7645_v32 = vld [vmem:[%s10176_s3 + $0x200] ss:$12 sps:$4 sm:$0xff]  }
 0x209   :  { %v7670_v8 = vld [vmem:[%s10176_s3 + $0x394] ss:$12 sps:$4 sm:$0xff]  }
 0x20a   :  { %v3574_v52 = vmax.f32 %v6815_v35, 0.0  ;;  %v7678_v35 = vld [vmem:[%s10176_s3 + $0x308] ss:$12 sps:$4 sm:$0xff]  }
 0x20b   :  { %4651 = vmatpush1.bf16.msra.mxu1 %v7607_v9  ;;  %6700 = vmatpush3.bf16.msra.mxu0 %v7611_v10  ;;  %v7646_v9 = vld [vmem:[%s10176_s3 + $0x2d8] ss:$12 sps:$4 sm:$0xff]   ;;  %v7668_v10 = vld [vmem:[%s10176_s3 + $0x390] ss:$12 sps:$4 sm:$0xff]  }
 0x20c   :  { %4652 = vmatprep.subr.bf16.mxu1 %v7614_v12  ;;  %6701 = vmatprep.subr.bf16.mxu0 %v7615_v14  ;;  %v9623_v47 = vpack.c.bf16 %v3574_v52, %v3574_v52  ;;  %v7673_v14 = vld [vmem:[%s10176_s3 + $0x3ac] ss:$12 sps:$4 sm:$0xff]   ;;  %v7692_v52 = vld [vmem:[%s10176_s3 + $0x410] ss:$12 sps:$4 sm:$0xff]  }
 0x20f   :  { %4653 = vmatpush1.bf16.msra.mxu1 %v7612_v16  ;;  %6702 = vmatpush3.bf16.msra.mxu0 %v7616_v5  ;;  %v7647_v5 = vld [vmem:[%s10176_s3 + $0x218] ss:$12 sps:$4 sm:$0xff]  }
 0x210   :  { %4654 = vmatprep.subr.bf16.mxu1 %v7619_v20  ;;  %6703 = vmatprep.subr.bf16.mxu0 %v7620_v21 }
 0x213   :  { %4655 = vmatpush1.bf16.msra.mxu1 %v7617_v26  ;;  %6704 = vmatpush3.bf16.msra.mxu0 %v7621_v17  ;;  %v7671_v17 = vld [vmem:[%s10176_s3 + $0x3a8] ss:$12 sps:$4 sm:$0xff]  }
 0x214   :  { %4656 = vmatprep.subr.bf16.mxu1 %v7624_v29  ;;  %6705 = vmatprep.subr.bf16.mxu0 %v7625_v30  ;;  %v7676_v29 = vld [vmem:[%s10176_s3 + $0x3c4] ss:$12 sps:$4 sm:$0xff]  }
 0x215   :  { %v6645_v38 = vpop.f32.mrb[8].mxu1  ;;  %v7649_v30 = vld [vmem:[%s10176_s3 + $0x230] ss:$12 sps:$4 sm:$0xff]  }
 0x216   :  { %v6646_v39 = vpop.f32.mrb[9].mxu1 }
 0x217   :  { %4657 = vmatpush1.bf16.msra.mxu1 %v7622_v33  ;;  %6706 = vmatpush3.bf16.msra.mxu0 %v7626_v34  ;;  %v6647_v41 = vadd.f32 %v6646_v39, %v6645_v38  ;;  %v6648_v42 = vpop.f32.mrb[10].mxu1  ;;  %v7677_v33 = vld [vmem:[%s10176_s3 + $0x3c8] ss:$12 sps:$4 sm:$0xff]   ;;  %v7683_v38 = vld [vmem:[%s10176_s3 + $0x320] ss:$12 sps:$4 sm:$0xff]  }
 0x218   :  { %4658 = vmatprep.subr.bf16.mxu1 %v7629_v22  ;;  %6707 = vmatprep.subr.bf16.mxu0 %v7630_v36  ;;  %v6649_v7 = vpop.f32.mrb[11].mxu1  ;;  %v7681_v34 = vld [vmem:[%s10176_s3 + $0x3dc] ss:$12 sps:$4 sm:$0xff]   ;;  %v7679_v22 = vld [vmem:[%s10176_s3 + $0x3d8] ss:$12 sps:$4 sm:$0xff]  }
 0x219   :  { %v9615_v45 = vadd.f32 %v6647_v41, %v3447_v37  ;;  %v7682_v36 = vld [vmem:[%s10176_s3 + $0x3e0] ss:$12 sps:$4 sm:$0xff]   ;;  %v7684_v39 = vld [vmem:[%s10176_s3 + $0x3f0] ss:$12 sps:$4 sm:$0xff]   ;;  %v7688_v41 = vld [vmem:[%s10176_s3 + $0x338] ss:$12 sps:$4 sm:$0xff]  }
 0x21a   :  { %v7686_v37 = vld [vmem:[%s10176_s3 + $0x3f4] ss:$12 sps:$4 sm:$0xff]   ;;  %v7693_v7 = vld [vmem:[%s10176_s3 + $0x350] ss:$12 sps:$4 sm:$0xff]  }
 0x21b   :  { %4659 = vmatpush1.bf16.msra.mxu1 %v7627_v62  ;;  %6708 = vmatpush3.bf16.msra.mxu0 %v7631_v40  ;;  %v7687_v62 = vld [vmem:[%s10176_s3 + $0x3f8] ss:$12 sps:$4 sm:$0xff]   ;;  %v7689_v42 = vld [vmem:[%s10176_s3 + $0x408] ss:$12 sps:$4 sm:$0xff]  }
 0x21c   :  { %6709 = vmatprep.subr.bf16.mxu0 %v7632_v43  ;;  %4669 = vmatprep.subr.bf16.mxu1 %v7652_v44  ;;  %v7691_v40 = vld [vmem:[%s10176_s3 + $0x40c] ss:$12 sps:$4 sm:$0xff]   ;;  %v7696_v43 = vld [vmem:[%s10176_s3 + $0x424] ss:$12 sps:$4 sm:$0xff]  }
 0x21d   :  { %v7694_v44 = vld [vmem:[%s10176_s3 + $0x420] ss:$12 sps:$4 sm:$0xff]  }
 0x21e   :  { %4661 = vmatmul.mubr.bf16.vlgmr.msra.gmra.mrb[20].mxu1 %v9623_v47 }
 0x21f   :  { %6710 = vmatpush3.bf16.msra.mxu0 %v7633_v46  ;;  %4670 = vmatpush1.bf16.msra.mxu1 %v7650_v11  ;;  %v7701_v46 = vld [vmem:[%s10176_s3 + $0x43c] ss:$12 sps:$4 sm:$0xff]  }
 0x220   :  { %6717 = vmatprep.subr.bf16.mxu0 %v7634_v13  ;;  %4671 = vmatprep.subr.bf16.mxu1 %v7655_v24  ;;  %v7698_v11 = vld [vmem:[%s10176_s3 + $0x368] ss:$12 sps:$4 sm:$0xff]   ;;  %v7702_v13 = vld [vmem:[%s10176_s3 + $0x440] ss:$12 sps:$4 sm:$0xff]  }
 0x221   :  { %v7703_v24 = vld [vmem:[%s10176_s3 + $0x380] ss:$12 sps:$4 sm:$0xff]  }
 0x222   :  { %4784 = vmatmul.mubr.bf16.vlgmr.msra.gmra.mrb[8].mxu0 %v9409_v23  ;;  %v7661_v23 = vld [vmem:[%s10176_s3 + $0x34c] ss:$12 sps:$4 sm:$0xff]  }
 0x223   :  { %6718 = vmatpush3.bf16.msra.mxu0 %v7635_v27  ;;  %4823 = vmatprep.mubr.bf16.mxu0 %v9418_v15  ;;  %v7639_v15 = vld [vmem:[%s10176_s3 + $0x1b8] ss:$12 sps:$4 sm:$0xff]  }
 0x224   :  { %6719 = vmatprep.subr.bf16.mxu0 %v7636_v49  ;;  %4672 = vmatpush1.bf16.msra.mxu1 %v7653_v18  ;;  %v7706_v49 = vld [vmem:[%s10176_s3 + $0x454] ss:$12 sps:$4 sm:$0xff]   ;;  %v7707_v18 = vld [vmem:[%s10176_s3 + $0x458] ss:$12 sps:$4 sm:$0xff]  }
 0x225   :  { %4673 = vmatprep.subr.bf16.mxu1 %v7658_v55 }
 0x227   :  { %6720 = vmatpush3.bf16.msra.mxu0 %v7637_v56  ;;  %v7704_v56 = vld [vmem:[%s10176_s3 + $0x450] ss:$12 sps:$4 sm:$0xff]  }
 0x228   :  { %6721 = vmatprep.subr.bf16.mxu0 %v7638_v57  ;;  %4674 = vmatpush1.bf16.msra.mxu1 %v7656_v58  ;;  %v7708_v58 = vld [vmem:[%s10176_s3 + $0x398] ss:$12 sps:$4 sm:$0xff]  }
 0x229   :  { %4675 = vmatprep.subr.bf16.mxu1 %v7661_v23 }
 0x22b   :  { %6722 = vmatpush3.bf16.msra.mxu0 %v7639_v15 }
 0x22c   :  { %6723 = vmatprep.subr.bf16.mxu0 %v7640_v59  ;;  %4676 = vmatpush1.bf16.msra.mxu1 %v7659_v60  ;;  %v7711_v60 = vld [vmem:[%s10176_s3 + $0x46c] ss:$12 sps:$4 sm:$0xff]  }
 0x22d   :  { %4677 = vmatprep.subr.bf16.mxu1 %v7664_v61  ;;  %v7712_v61 = vld [vmem:[%s10176_s3 + $0x470] ss:$12 sps:$4 sm:$0xff]  }
 0x22f   :  { %6724 = vmatpush3.bf16.msra.mxu0 %v7641_v63  ;;  %v7709_v63 = vld [vmem:[%s10176_s3 + $0x468] ss:$12 sps:$4 sm:$0xff]  }
 0x230   :  { %6725 = vmatprep.subr.bf16.mxu0 %v7642_v0  ;;  %4678 = vmatpush1.bf16.msra.mxu1 %v7662_v1  ;;  %v7713_v0 = vld [vmem:[%s10176_s3 + $0x3b0] ss:$12 sps:$4 sm:$0xff]  }
 0x231   :  { %4679 = vmatprep.subr.bf16.mxu1 %v7667_v2  ;;  %v7716_v1 = vld [vmem:[%s10176_s3 + $0x484] ss:$12 sps:$4 sm:$0xff]   ;;  %v7723_v2 = vld [vmem:[%s10178_s5 + $0xc] ss:$16 sps:$4 sm:$0xff]  }
 0x233   :  { %6726 = vmatpush3.bf16.msra.mxu0 %v7643_v3  ;;  %v571_v3 = vsub.s32 4, %v9354_v48 }
 0x234   :  { %6727 = vmatprep.subr.bf16.mxu0 %v7644_v4  ;;  %4680 = vmatpush1.bf16.msra.mxu1 %v7665_v6  ;;  %v575_v4 = vsub.s32 5, %v9354_v48 }
 0x235   :  { %v6667_v12 = vpop.f32.mrb[12].mxu1  ;;  %4681 = vmatprep.subr.bf16.mxu1 %v7670_v8  ;;  %v572_v6 = vrot.slane %v9371_v51, %v571_v3  ;;  %v7754_v3 = vld [vmem:[%s10178_s5 + $0xc0] ss:$16 sps:$4 sm:$0xff]  }
 0x236   :  { %v6668_v16 = vpop.f32.mrb[13].mxu1  ;;  %v576_v8 = vrot.slane %v9371_v51, %v575_v4  ;;  %v7729_v51 = vld [vmem:[%s10178_s5 + $0x2c] ss:$16 sps:$4 sm:$0xff]   ;;  %v7762_v4 = vld [vmem:[%s10178_s5 + $0xe4] ss:$16 sps:$4 sm:$0xff]  }
 0x237   :  { %6728 = vmatpush3.bf16.msra.mxu0 %v7645_v32  ;;  %v6669_v20 = vadd.f32 %v6668_v16, %v6667_v12  ;;  %v6670_v21 = vpop.f32.mrb[14].mxu1 }
 0x238   :  { %6729 = vmatprep.subr.bf16.mxu0 %v7646_v9  ;;  %v6671_v26 = vpop.f32.mrb[15].mxu1  ;;  %4682 = vmatpush1.bf16.msra.mxu1 %v7668_v10 }
 0x239   :  { %v9716_v28 = vadd.f32 %v6669_v20, %v9615_v45  ;;  %4683 = vmatprep.subr.bf16.mxu1 %v7673_v14  ;;  %v7697_v45 = vld [vmem:[%s10176_s3 + $0x428] ss:$12 sps:$4 sm:$0xff]  }
 0x23b   :  { %6730 = vmatpush3.bf16.msra.mxu0 %v7647_v5 }
 0x23c   :  { %6731 = vmatprep.subr.bf16.mxu0 %v7648_v25  ;;  %4684 = vmatpush1.bf16.msra.mxu1 %v7671_v17  ;;  %v7714_v25 = vld [vmem:[%s10176_s3 + $0x480] ss:$12 sps:$4 sm:$0xff]   ;;  %v7721_v17 = vld [vmem:[%s10178_s5 + $0x8] ss:$16 sps:$4 sm:$0xff]  }
 0x23d   :  { %4685 = vmatprep.subr.bf16.mxu1 %v7676_v29  ;;  %v7859_v29 = vmov 0.0  }
 0x23f   :  { %6732 = vmatpush3.bf16.msra.mxu0 %v7649_v30  ;;  %v7727_v30 = vld [vmem:[%s10178_s5 + $0x28] ss:$16 sps:$4 sm:$0xff]  }
 0x240   :  { %4686 = vmatpush1.bf16.msra.mxu1 %v7674_v31  ;;  %6739 = vmatprep.subr.bf16.mxu0 %v7677_v33  ;;  %v7735_v31 = vld [vmem:[%s10178_s5 + $0x4c] ss:$16 sps:$4 sm:$0xff]  }
 0x241   :  { %4687 = vmatprep.subr.bf16.mxu1 %v7681_v34  ;;  %v7733_v34 = vld [vmem:[%s10178_s5 + $0x48] ss:$16 sps:$4 sm:$0xff]  }
 0x242   :  { %4824 = vmatmul.mubr.bf16.vlgmr.msra.gmra.mrb[12].mxu0 %v9623_v47  ;;  %v7699_v47 = vld [vmem:[%s10176_s3 + $0x438] ss:$12 sps:$4 sm:$0xff]  }
 0x243   :  { %6740 = vmatpush3.bf16.msra.mxu0 %v7678_v35  ;;  %v7741_v35 = vld [vmem:[%s10178_s5 + $0x6c] ss:$16 sps:$4 sm:$0xff]  }
 0x244   :  { %4688 = vmatpush1.bf16.msra.mxu1 %v7679_v22  ;;  %6741 = vmatprep.subr.bf16.mxu0 %v7682_v36  ;;  %v7717_v22 = vld [vmem:[%s10176_s3 + $0x488] ss:$12 sps:$4 sm:$0xff]  }
 0x245   :  { %4689 = vmatprep.subr.bf16.mxu1 %v7686_v37  ;;  %v7720_v37 = vld [vmem:[%s10178_s5 + $0x4] ss:$16 sps:$4 sm:$0xff]  }
 0x247   :  { %6742 = vmatpush3.bf16.msra.mxu0 %v7683_v38  ;;  %v7739_v38 = vld [vmem:[%s10178_s5 + $0x68] ss:$16 sps:$4 sm:$0xff]  }
 0x248   :  { %4690 = vmatpush1.bf16.msra.mxu1 %v7684_v39  ;;  %6743 = vmatprep.subr.bf16.mxu0 %v7687_v62  ;;  %v7747_v39 = vld [vmem:[%s10178_s5 + $0x8c] ss:$16 sps:$4 sm:$0xff]   ;;  %v7745_v62 = vld [vmem:[%s10178_s5 + $0x88] ss:$16 sps:$4 sm:$0xff]  }
 0x249   :  { %4691 = vmatprep.subr.bf16.mxu1 %v7691_v40  ;;  %v7753_v40 = vld [vmem:[%s10178_s5 + $0xac] ss:$16 sps:$4 sm:$0xff]  }
 0x24b   :  { %6744 = vmatpush3.bf16.msra.mxu0 %v7688_v41  ;;  %v7718_v41 = vld [vmem:[%s10178_s5] ss:$16 sps:$4 sm:$0xff]  }
 0x24c   :  { %4692 = vmatpush1.bf16.msra.mxu1 %v7689_v42  ;;  %6745 = vmatprep.subr.bf16.mxu0 %v7692_v52  ;;  %v7726_v42 = vld [vmem:[%s10178_s5 + $0x24] ss:$16 sps:$4 sm:$0xff]   ;;  %v7751_v52 = vld [vmem:[%s10178_s5 + $0xa8] ss:$16 sps:$4 sm:$0xff]  }
 0x24d   :  { %4693 = vmatprep.subr.bf16.mxu1 %v7696_v43  ;;  %v7759_v43 = vld [vmem:[%s10178_s5 + $0xcc] ss:$16 sps:$4 sm:$0xff]  }
 0x24f   :  { %6746 = vmatpush3.bf16.msra.mxu0 %v7693_v7  ;;  %v7724_v7 = vld [vmem:[%s10178_s5 + $0x20] ss:$16 sps:$4 sm:$0xff]  }
 0x250   :  { %4694 = vmatpush1.bf16.msra.mxu1 %v7694_v44  ;;  %6747 = vmatprep.subr.bf16.mxu0 %v7697_v45  ;;  %v7732_v44 = vld [vmem:[%s10178_s5 + $0x44] ss:$16 sps:$4 sm:$0xff]   ;;  %v7757_v45 = vld [vmem:[%s10178_s5 + $0xc8] ss:$16 sps:$4 sm:$0xff]  }
 0x251   :  { %4695 = vmatprep.subr.bf16.mxu1 %v7701_v46 }
 0x253   :  { %6748 = vmatpush3.bf16.msra.mxu0 %v7698_v11  ;;  %v7765_v11 = vld [vmem:[%s10178_s5 + $0xec] ss:$16 sps:$4 sm:$0xff]  }
 0x254   :  { %4696 = vmatpush1.bf16.msra.mxu1 %v7699_v47  ;;  %6749 = vmatprep.subr.bf16.mxu0 %v7702_v13 }
 0x255   :  { %v6689_v27 = vpop.f32.mrb[16].mxu1  ;;  %4697 = vmatprep.subr.bf16.mxu1 %v7706_v49 }
 0x256   :  { %v6690_v55 = vpop.f32.mrb[17].mxu1 }
 0x257   :  { %v6691_v57 = vadd.f32 %v6690_v55, %v6689_v27  ;;  %6750 = vmatpush3.bf16.msra.mxu0 %v7703_v24  ;;  %v6692_v23 = vpop.f32.mrb[18].mxu1  ;;  %v7730_v27 = vld [vmem:[%s10178_s5 + $0x40] ss:$16 sps:$4 sm:$0xff]   ;;  %v7763_v55 = vld [vmem:[%s10178_s5 + $0xe8] ss:$16 sps:$4 sm:$0xff]  }
 0x258   :  { %4698 = vmatpush1.bf16.msra.mxu1 %v7704_v56  ;;  %6751 = vmatprep.subr.bf16.mxu0 %v7707_v18  ;;  %v6693_v15 = vpop.f32.mrb[19].mxu1  ;;  %v7738_v18 = vld [vmem:[%s10178_s5 + $0x64] ss:$16 sps:$4 sm:$0xff]   ;;  %v7771_v56 = vld [vmem:[%s10178_s5 + $0x10c] ss:$16 sps:$4 sm:$0xff]  }
 0x259   :  { %v3567_v59 = vadd.f32 %v6691_v57, %v9716_v28  ;;  %4699 = vmatprep.subr.bf16.mxu1 %v7711_v60  ;;  %v7858_v28 = vmov 0   ;;  %v7736_v57 = vld [vmem:[%s10178_s5 + $0x60] ss:$16 sps:$4 sm:$0xff]   ;;  %v7769_v23 = vld [vmem:[%s10178_s5 + $0x108] ss:$16 sps:$4 sm:$0xff]  }
 0x25a   :  { %v7777_v15 = vld [vmem:[%s10178_s5 + $0x12c] ss:$16 sps:$4 sm:$0xff]   ;;  %v7750_v60 = vld [vmem:[%s10178_s5 + $0xa4] ss:$16 sps:$4 sm:$0xff]  }
 0x25b   :  { %6752 = vmatpush3.bf16.msra.mxu0 %v7708_v58  ;;  %v3578_v33 = vmax.f32 %v3567_v59, 0.0  ;;  %v7744_v58 = vld [vmem:[%s10178_s5 + $0x84] ss:$16 sps:$4 sm:$0xff]   ;;  %v7742_v59 = vld [vmem:[%s10178_s5 + $0x80] ss:$16 sps:$4 sm:$0xff]  }
 0x25c   :  { %4700 = vmatpush1.bf16.msra.mxu1 %v7709_v63  ;;  %6753 = vmatprep.subr.bf16.mxu0 %v7712_v61  ;;  %v7775_v61 = vld [vmem:[%s10178_s5 + $0x128] ss:$16 sps:$4 sm:$0xff]   ;;  %v7783_v63 = vld [vmem:[%s10178_s5 + $0x14c] ss:$16 sps:$4 sm:$0xff]  }
 0x25d   :  { %4710 = vmatprep.subr.bf16.mxu1 %v7716_v1  ;;  %v3585_v36 = vpack.c.bf16 %v3578_v33, %v3578_v33  ;;  %v7756_v1 = vld [vmem:[%s10178_s5 + $0xc4] ss:$16 sps:$4 sm:$0xff]   ;;  %v7789_v33 = vld [vmem:[%s10178_s5 + $0x16c] ss:$16 sps:$4 sm:$0xff]  }
 0x25f   :  { %6754 = vmatpush3.bf16.msra.mxu0 %v7713_v0  ;;  %v7748_v0 = vld [vmem:[%s10178_s5 + $0xa0] ss:$16 sps:$4 sm:$0xff]  }
 0x260   :  { %5457 = vmatprep.subr.bf16.mxu0 %v7723_v2  ;;  %v7781_v2 = vld [vmem:[%s10178_s5 + $0x148] ss:$16 sps:$4 sm:$0xff]  }
 0x2d5   :  { %v3405_v32 = vpop.f32.mrb[4].mxu0 }
 0x2d6   :  { %v6817_v9 = vadd.f32 %v3405_v32, %v572_v6  ;;  %v3407_v10 = vpop.f32.mrb[5].mxu0  ;;  %v7760_v6 = vld [vmem:[%s10178_s5 + $0xe0] ss:$16 sps:$4 sm:$0xff]  }
 0x2d7   :  { %v6818_v12 = vadd.f32 %v3407_v10, %v576_v8  ;;  %v3409_v14 = vpop.f32.mrb[6].mxu0  ;;  %v7768_v8 = vld [vmem:[%s10178_s5 + $0x104] ss:$16 sps:$4 sm:$0xff]   ;;  %v7766_v32 = vld [vmem:[%s10178_s5 + $0x100] ss:$16 sps:$4 sm:$0xff]  }
 0x2d8   :  { %v3576_v16 = vmax.f32 %v6817_v9, 0.0  ;;  %v3410_v5 = vpop.f32.mrb[7].mxu0  ;;  %v9958_v9 = vld [vmem:[%s10179_s4] sm:$0x7]  ;;  %v7774_v10 = vld [vmem:[%s10178_s5 + $0x124] ss:$16 sps:$4 sm:$0xff]  }
 0x2d9   :  { %v3577_v20 = vmax.f32 %v6818_v12, 0.0  ;;  %v3795_v12 = vrot.slane %v9958_v9, %v9565_v19  ;;  %v7772_v14 = vld [vmem:[%s10178_s5 + $0x120] ss:$16 sps:$4 sm:$0xff]  }
 0x2da   :  { %v3583_v26 = vpack.c.bf16 %v3576_v16, %v3576_v16  ;;  %v7780_v16 = vld [vmem:[%s10178_s5 + $0x144] ss:$16 sps:$4 sm:$0xff]  }
 0x2db   :  { %v3584_v21 = vpack.c.bf16 %v3577_v20, %v3577_v20 }
 0x2dd   :  { %4701 = vmatprep.mubr.bf16.mxu1 %v3584_v21  ;;  %4863 = vmatprep.mubr.bf16.mxu0 %v3584_v21 }
 0x2de   :  { %4702 = vmatmul.mubr.bf16.vlgmr.msra.gmra.mrb[20].mxu1 %v3583_v26  ;;  %4864 = vmatmul.mubr.bf16.vlgmr.msra.gmra.mrb[16].mxu0 %v3583_v26 }
 0x2df   :  { %4711 = vmatpush1.bf16.msra.mxu1 %v7714_v25  ;;  %4742 = vmatprep.mubr.bf16.mxu1 %v7858_v28 }
 0x2e0   :  { %6807 = vmatprep.subr.bf16.mxu1 %v7859_v29  ;;  %5458 = vmatpush1.bf16.msra.mxu0 %v7721_v17  ;;  %v7778_v17 = vld [vmem:[%s10178_s5 + $0x140] ss:$16 sps:$4 sm:$0xff]  }
 0x2e1   :  { %5459 = vmatprep.subr.bf16.mxu0 %v7729_v51 }
 0x2e4   :  { %5460 = vmatpush1.bf16.msra.mxu0 %v7727_v30  ;;  %v7784_v30 = vld [vmem:[%s10178_s5 + $0x160] ss:$16 sps:$4 sm:$0xff]  }
 0x2e5   :  { %5461 = vmatprep.subr.bf16.mxu0 %v7735_v31  ;;  %v7786_v31 = vld [vmem:[%s10178_s5 + $0x164] ss:$16 sps:$4 sm:$0xff]  }
 0x2e8   :  { %5462 = vmatpush1.bf16.msra.mxu0 %v7733_v34  ;;  %v7787_v34 = vld [vmem:[%s10178_s5 + $0x168] ss:$16 sps:$4 sm:$0xff]  }
 0x2e9   :  { %5463 = vmatprep.subr.bf16.mxu0 %v7741_v35  ;;  %v7790_v35 = vld [vmem:[%s10178_s5 + $0x180] ss:$16 sps:$4 sm:$0xff]  }
 0x2ea   :  { %6498 = vmatmul.mubr.msk.bf16.vlgmr.msra.gmra.mrb[20].mxu1 %vm4583_vm0, %v3585_v36 }
 0x2eb   :  { %6808 = vmatpush3.bf16.msra.mxu1 %v7717_v22  ;;  %6809 = vmatprep.mubr.msk.bf16.mxu1 %vm7860_vm1, %v7859_v29  ;;  %v7792_v22 = vld [vmem:[%s10178_s5 + $0x184] ss:$16 sps:$4 sm:$0xff]  }
 0x2ec   :  { %5375 = vmatprep.subr.bf16.mxu1 %v7720_v37  ;;  %5464 = vmatpush1.bf16.msra.mxu0 %v7739_v38  ;;  %v7795_v37 = vld [vmem:[%s10178_s5 + $0x18c] ss:$16 sps:$4 sm:$0xff]   ;;  %v7798_v38 = vld [vmem:[%s10178_s5 + $0x1a4] ss:$16 sps:$4 sm:$0xff]  }
 0x2ed   :  { %5465 = vmatprep.subr.bf16.mxu0 %v7747_v39  ;;  %v7801_v39 = vld [vmem:[%s10178_s5 + $0x1ac] ss:$16 sps:$4 sm:$0xff]  }
 0x2f0   :  { %5466 = vmatpush1.bf16.msra.mxu0 %v7745_v62  ;;  %v7796_v62 = vld [vmem:[%s10178_s5 + $0x1a0] ss:$16 sps:$4 sm:$0xff]  }
 0x2f1   :  { %5467 = vmatprep.subr.bf16.mxu0 %v7753_v40  ;;  %v7799_v40 = vld [vmem:[%s10178_s5 + $0x1a8] ss:$16 sps:$4 sm:$0xff]  }
 0x2f2   :  { %6810 = vmatmul.mubr.msk.bf16.vlgmr.msra.gmra.mrb[24].mxu1 %vm4583_vm0, %v3585_v36  ;;  %v7793_v36 = vld [vmem:[%s10178_s5 + $0x188] ss:$16 sps:$4 sm:$0xff]  }
 0x2f3   :  { %5376 = vmatpush1.bf16.msra.mxu1 %v7718_v41  ;;  %v7804_v41 = vld [vmem:[%s10178_s5 + $0x1c4] ss:$16 sps:$4 sm:$0xff]  }
 0x2f4   :  { %5377 = vmatprep.subr.bf16.mxu1 %v7726_v42  ;;  %5468 = vmatpush1.bf16.msra.mxu0 %v7751_v52  ;;  %v7807_v42 = vld [vmem:[%s10178_s5 + $0x1cc] ss:$16 sps:$4 sm:$0xff]   ;;  %v7802_v52 = vld [vmem:[%s10178_s5 + $0x1c0] ss:$16 sps:$4 sm:$0xff]  }
 0x2f5   :  { %v6711_v46 = vpop.f32.mrb[8].mxu0  ;;  %5469 = vmatprep.subr.bf16.mxu0 %v7759_v43  ;;  %v7805_v43 = vld [vmem:[%s10178_s5 + $0x1c8] ss:$16 sps:$4 sm:$0xff]  }
 0x2f6   :  { %v6712_v47 = vpop.f32.mrb[9].mxu0 }
 0x2f7   :  { %v6713_v13 = vadd.f32 %v6712_v47, %v6711_v46  ;;  %v6714_v24 = vpop.f32.mrb[10].mxu0  ;;  %5378 = vmatpush1.bf16.msra.mxu1 %v7724_v7  ;;  %v7810_v7 = vld [vmem:[%s10178_s5 + $0x1e4] ss:$16 sps:$4 sm:$0xff]   ;;  %v7811_v46 = vld [vmem:[%s10178_s5 + $0x1e8] ss:$16 sps:$4 sm:$0xff]  }
 0x2f8   :  { %v6715_v49 = vpop.f32.mrb[11].mxu0  ;;  %5379 = vmatprep.subr.bf16.mxu1 %v7732_v44  ;;  %5470 = vmatpush1.bf16.msra.mxu0 %v7757_v45  ;;  %v7813_v44 = vld [vmem:[%s10178_s5 + $0x1ec] ss:$16 sps:$4 sm:$0xff]   ;;  %v7808_v45 = vld [vmem:[%s10178_s5 + $0x1e0] ss:$16 sps:$4 sm:$0xff]  }
 0x2f9   :  { %5471 = vmatprep.subr.bf16.mxu0 %v7765_v11  ;;  %v4786_v21 = vadd.f32 %v6713_v13, %v3795_v12  ;;  %v7816_v11 = vld [vmem:[%s10178_s5 + $0x204] ss:$16 sps:$4 sm:$0xff]   ;;  %v7817_v12 = vld [vmem:[%s10178_s5 + $0x220] ss:$16 sps:$4 sm:$0xff]  }
 0x2fa   :  { %v7831_v47 = vld [vmem:[%s10180_s7 + $0xc0] sm:$0xff]  }
 0x2fb   :  { %5380 = vmatpush1.bf16.msra.mxu1 %v7730_v27 }
 0x2fc   :  { %5381 = vmatprep.subr.bf16.mxu1 %v7738_v18  ;;  %5472 = vmatpush1.bf16.msra.mxu0 %v7763_v55 }
 0x2fd   :  { %5473 = vmatprep.subr.bf16.mxu0 %v7771_v56  ;;  %v3787_v56 = vrot.slane %v9958_v9, %v9363_v50 }
 0x2ff   :  { %5382 = vmatpush1.bf16.msra.mxu1 %v7736_v57  ;;  %v3791_v57 = vrot.slane %v9958_v9, %v9374_v53 }
 0x300   :  { %5383 = vmatprep.subr.bf16.mxu1 %v7744_v58  ;;  %5474 = vmatpush1.bf16.msra.mxu0 %v7769_v23 }
 0x301   :  { %5475 = vmatprep.subr.bf16.mxu0 %v7777_v15 }
 0x303   :  { %5384 = vmatpush1.bf16.msra.mxu1 %v7742_v59 }
 0x304   :  { %5385 = vmatprep.subr.bf16.mxu1 %v7750_v60  ;;  %5476 = vmatpush1.bf16.msra.mxu0 %v7775_v61 }
 0x305   :  { %5477 = vmatprep.subr.bf16.mxu0 %v7783_v63 }
 0x307   :  { %5386 = vmatpush1.bf16.msra.mxu1 %v7748_v0 }
 0x308   :  { %5387 = vmatprep.subr.bf16.mxu1 %v7756_v1  ;;  %5478 = vmatpush1.bf16.msra.mxu0 %v7781_v2  ;;  %v7814_v2 = vld [vmem:[%s10178_s5 + $0x200] ss:$16 sps:$4 sm:$0xff]  }
 0x309   :  { %5479 = vmatprep.subr.bf16.mxu0 %v7789_v33  ;;  %v7834_v33 = vld [vmem:[%s10180_s7 + $0x58] sm:$0xff]  }
 0x30b   :  { %5388 = vmatpush1.bf16.msra.mxu1 %v7754_v3 }
 0x30c   :  { %5389 = vmatprep.subr.bf16.mxu1 %v7762_v4  ;;  %5480 = vmatpush1.bf16.msra.mxu0 %v7787_v34  ;;  %v7819_v4 = vld [vmem:[%s10178_s5 + $0x224] ss:$16 sps:$4 sm:$0xff]   ;;  %v7835_v34 = vld [vmem:[%s10180_s7 + $0xc8] sm:$0xff]  }
 0x30d   :  { %5481 = vmatprep.subr.bf16.mxu0 %v7795_v37  ;;  %v7839_v37 = vld [vmem:[%s10180_s7 + $0xd0] sm:$0xff]  }
 0x30f   :  { %5390 = vmatpush1.bf16.msra.mxu1 %v7760_v6  ;;  %v7833_v6 = vld [vmem:[%s10180_s7 + $0x80] sm:$0xff]  }
 0x310   :  { %5391 = vmatprep.subr.bf16.mxu1 %v7768_v8  ;;  %5482 = vmatpush1.bf16.msra.mxu0 %v7793_v36  ;;  %v7838_v36 = vld [vmem:[%s10180_s7 + $0x60] sm:$0xff]  }
 0x311   :  { %5483 = vmatprep.subr.bf16.mxu0 %v7801_v39  ;;  %v7841_v39 = vld [vmem:[%s10180_s7 + $0x90] sm:$0xff]  }
 0x313   :  { %5392 = vmatpush1.bf16.msra.mxu1 %v7766_v32 }
 0x314   :  { %5393 = vmatprep.subr.bf16.mxu1 %v7774_v10  ;;  %5484 = vmatpush1.bf16.msra.mxu0 %v7799_v40  ;;  %v7843_v40 = vld [vmem:[%s10180_s7 + $0xd8] sm:$0xff]  }
 0x315   :  { %v6733_v5 = vpop.f32.mrb[12].mxu0  ;;  %5485 = vmatprep.subr.bf16.mxu0 %v7807_v42  ;;  %v7845_v42 = vld [vmem:[%s10180_s7 + $0x98] sm:$0xff]  }
 0x316   :  { %v6734_v20 = vpop.f32.mrb[13].mxu0 }
 0x317   :  { %v6735_v25 = vadd.f32 %v6734_v20, %v6733_v5  ;;  %v6736_v26 = vpop.f32.mrb[14].mxu0  ;;  %5394 = vmatpush1.bf16.msra.mxu1 %v7772_v14  ;;  %v7820_v20 = vld [vmem:[%s10178_s5 + $0x208] ss:$16 sps:$4 sm:$0xff]  }
 0x318   :  { %v6737_v51 = vpop.f32.mrb[15].mxu0  ;;  %5395 = vmatprep.subr.bf16.mxu1 %v7780_v16  ;;  %5486 = vmatpush1.bf16.msra.mxu0 %v7805_v43  ;;  %v7822_v16 = vld [vmem:[%s10178_s5 + $0x20c] ss:$16 sps:$4 sm:$0xff]   ;;  %v7823_v26 = vld [vmem:[%s10178_s5 + $0x228] ss:$16 sps:$4 sm:$0xff]   ;;  %v7847_v43 = vld [vmem:[%s10180_s7 + $0xe0] sm:$0xff]  }
 0x319   :  { %v4826_v29 = vadd.f32 %v6735_v25, %v4786_v21  ;;  %5487 = vmatprep.subr.bf16.mxu0 %v7813_v44  ;;  %v7825_v25 = vld [vmem:[%s10178_s5 + $0x22c] ss:$16 sps:$4 sm:$0xff]   ;;  %v7827_v51 = vld [vmem:[%s10180_s7] sm:$0xff]  }
 0x31a   :  { %v7849_v44 = vld [vmem:[%s10180_s7 + $0xa0] sm:$0xff]  }
 0x31b   :  { %5396 = vmatpush1.bf16.msra.mxu1 %v7778_v17  ;;  %v7826_v17 = vld [vmem:[%s10180_s7 + $0x40] sm:$0xff]  }
 0x31c   :  { %5397 = vmatprep.subr.bf16.mxu1 %v7786_v31  ;;  %5488 = vmatpush1.bf16.msra.mxu0 %v7811_v46  ;;  %v7832_v31 = vld [vmem:[%s10180_s7 + $0x10] sm:$0xff]   ;;  %v7851_v46 = vld [vmem:[%s10180_s7 + $0xe8] sm:$0xff]  }
 0x31d   :  { %6785 = vmatprep.subr.bf16.mxu0 %v7831_v47  ;;  %v7853_v47 = vld [vmem:[%s10180_s7 + $0xa8] sm:$0xff]  }
 0x31f   :  { %5398 = vmatpush1.bf16.msra.mxu1 %v7784_v30  ;;  %v7830_v30 = vld [vmem:[%s10180_s7 + $0x50] sm:$0xff]  }
 0x320   :  { %5399 = vmatprep.subr.bf16.mxu1 %v7792_v22  ;;  %v7837_v22 = vld [vmem:[%s10180_s7 + $0x88] sm:$0xff]  }
 0x323   :  { %5400 = vmatpush1.bf16.msra.mxu1 %v7790_v35  ;;  %v7836_v35 = vld [vmem:[%s10180_s7 + $0x18] sm:$0xff]  }
 0x324   :  { %5401 = vmatprep.subr.bf16.mxu1 %v7798_v38  ;;  %v7840_v38 = vld [vmem:[%s10180_s7 + $0x20] sm:$0xff]  }
 0x327   :  { %5402 = vmatpush1.bf16.msra.mxu1 %v7796_v62  ;;  %v7842_v62 = vld [vmem:[%s10180_s7 + $0x68] sm:$0xff]  }
 0x328   :  { %5403 = vmatprep.subr.bf16.mxu1 %v7804_v41  ;;  %v7844_v41 = vld [vmem:[%s10180_s7 + $0x28] sm:$0xff]  }
 0x32b   :  { %5404 = vmatpush1.bf16.msra.mxu1 %v7802_v52  ;;  %v7846_v52 = vld [vmem:[%s10180_s7 + $0x70] sm:$0xff]  }
 0x32c   :  { %5405 = vmatprep.subr.bf16.mxu1 %v7810_v7  ;;  %v7848_v7 = vld [vmem:[%s10180_s7 + $0x30] sm:$0xff]  }
 0x32f   :  { %5406 = vmatpush1.bf16.msra.mxu1 %v7808_v45  ;;  %v7850_v45 = vld [vmem:[%s10180_s7 + $0x78] sm:$0xff]  }
 0x330   :  { %5416 = vmatprep.subr.bf16.mxu1 %v7816_v11  ;;  %v7852_v11 = vld [vmem:[%s10180_s7 + $0x38] sm:$0xff]  }
 0x3b1   :  { %v6755_v13 = vpop.f32.mrb[16].mxu0 }
 0x3b2   :  { %v6756_v24 = vpop.f32.mrb[17].mxu0 }
 0x3b3   :  { %v6757_v27 = vadd.f32 %v6756_v24, %v6755_v13  ;;  %v6758_v49 = vpop.f32.mrb[18].mxu0  ;;  %v7854_v13 = vld [vmem:[%s10180_s7 + $0xf0] sm:$0xff]  }
 0x3b4   :  { %v6759_v18 = vpop.f32.mrb[19].mxu0  ;;  %v7855_v24 = vld [vmem:[%s10180_s7 + $0xb0] sm:$0xff]   ;;  %v7857_v49 = vld [vmem:[%s10180_s7 + $0xb8] sm:$0xff]  }
 0x3b5   :  { %v4866_v55 = vadd.f32 %v6757_v27, %v4826_v29  ;;  %v7828_v29 = vld [vmem:[%s10180_s7 + $0x48] sm:$0xff]   ;;  %v7856_v27 = vld [vmem:[%s10180_s7 + $0xf8] sm:$0xff]  }
 0x3bd   :  { %v4744_v58 = vpop.f32.mrb[20].mxu1 }
 0x3be   :  { %v6819_v23 = vadd.f32 %v4744_v58, %v3787_v56  ;;  %v4746_v15 = vpop.f32.mrb[21].mxu1  ;;  %v4989_v58 = vld [vmem:[%s10181_s6] sm:$0xf] }
 0x3bf   :  { %v6820_v59 = vadd.f32 %v4746_v15, %v3791_v57  ;;  %v4748_v60 = vpop.f32.mrb[22].mxu1  ;;  %v4998_v15 = vrot.slane %v4989_v58, %v9374_v53 }
 0x3c0   :  { %v4911_v61 = vmax.f32 %v6819_v23, 0.0  ;;  %v4749_v63 = vpop.f32.mrb[23].mxu1  ;;  %v4994_v23 = vrot.slane %v4989_v58, %v9363_v50 }
 0x3c1   :  { %v4912_v0 = vmax.f32 %v6820_v59, 0.0 }
 0x3c2   :  { %v4914_v3 = vpack.c.bf16 %v4911_v61, %v4911_v61 }
 0x3c3   :  { %v4915_v1 = vpack.c.bf16 %v4912_v0, %v4912_v0 }
 0x3c5   :  { %v4905_v8 = vpop.f32.mrb[24].mxu1  ;;  %5407 = vmatprep.mubr.bf16.mxu1 %v4915_v1  ;;  %5489 = vmatprep.mubr.bf16.mxu0 %v4915_v1  ;;  %v5002_v1 = vrot.slane %v4989_v58, %v9565_v19 }
 0x3c6   :  { %v4906_v32 = vadd.f32 %v4905_v8, %v4866_v55  ;;  %v6811_v9 = vpop.f32.mrb[25].mxu1  ;;  %5408 = vmatmul.mubr.bf16.vlgmr.msra.gmra.mrb[28].mxu1 %v4914_v3  ;;  %5490 = vmatmul.mubr.bf16.vlgmr.msra.gmra.mrb[20].mxu0 %v4914_v3 }
 0x3c7   :  { %5417 = vmatpush1.bf16.msra.mxu1 %v7814_v2  ;;  %v4908_v10 = vpop.f32.mrb[26].mxu1  ;;  %5448 = vmatprep.mubr.bf16.mxu1 %v7858_v28 }
 0x3c8   :  { %v6812_v14 = vpop.f32.mrb[27].mxu1  ;;  %5418 = vmatprep.subr.bf16.mxu1 %v7819_v4  ;;  %6786 = vmatpush3.bf16.msra.mxu0 %v7833_v6  ;;  %v4913_v5 = vmax.f32 %v4906_v32, 0.0  ;;  %v5006_v4 = vrot.slane %v4989_v58, %v567_v54 }
 0x3c9   :  { %6787 = vmatprep.subr.bf16.mxu0 %v7835_v34 }
 0x3ca   :  { %v4916_v21 = vpack.c.bf16 %v4913_v5, %v4913_v5 }
 0x3cb   :  { %5419 = vmatpush1.bf16.msra.mxu1 %v7817_v12 }
 0x3cc   :  { %5498 = vmatprep.subr.bf16.mxu1 %v7822_v16  ;;  %6788 = vmatpush3.bf16.msra.mxu0 %v7837_v22 }
 0x3cd   :  { %6789 = vmatprep.subr.bf16.mxu0 %v7839_v37 }
 0x3d0   :  { %6790 = vmatpush3.bf16.msra.mxu0 %v7841_v39 }
 0x3d1   :  { %6791 = vmatprep.subr.bf16.mxu0 %v7843_v40 }
 0x3d2   :  { %6572 = vmatmul.mubr.msk.bf16.vlgmr.msra.gmra.mrb[28].mxu1 %vm5371_vm2, %v4916_v21 }
 0x3d3   :  { %5499 = vmatpush1.bf16.msra.mxu1 %v7820_v20  ;;  %5530 = vmatprep.mubr.bf16.mxu1 %v7858_v28  ;;  %v7829_v28 = vld [vmem:[%s10180_s7 + $0x8] sm:$0xff]  }
 0x3d4   :  { %5500 = vmatprep.subr.bf16.mxu1 %v7825_v25  ;;  %6792 = vmatpush3.bf16.msra.mxu0 %v7845_v42 }
 0x3d5   :  { %6793 = vmatprep.subr.bf16.mxu0 %v7847_v43 }
 0x3d7   :  { %5501 = vmatpush1.bf16.msra.mxu1 %v7823_v26 }
 0x3d8   :  { %6763 = vmatprep.subr.bf16.mxu1 %v7826_v17  ;;  %6794 = vmatpush3.bf16.msra.mxu0 %v7849_v44 }
 0x3d9   :  { %6795 = vmatprep.subr.bf16.mxu0 %v7851_v46 }
 0x3da   :  { %6573 = vmatmul.mubr.msk.bf16.vlgmr.msra.gmra.mrb[32].mxu1 %vm5371_vm2, %v4916_v21 }
 0x3db   :  { %6764 = vmatpush3.bf16.msra.mxu1 %v7827_v51 }
 0x3dc   :  { %6765 = vmatprep.subr.bf16.mxu1 %v7828_v29  ;;  %6796 = vmatpush3.bf16.msra.mxu0 %v7853_v47  ;;  %v6574_v29 = vld [vmem:[%s10182_s8] ss:$0 sm:$0xff] }
 0x3dd   :  { %6797 = vmatprep.subr.bf16.mxu0 %v7854_v13 }
 0x3df   :  { %6766 = vmatpush3.bf16.msra.mxu1 %v7829_v28 }
 0x3e0   :  { %6767 = vmatprep.subr.bf16.mxu1 %v7830_v30  ;;  %6798 = vmatpush3.bf16.msra.mxu0 %v7855_v24 }
 0x3e1   :  { %6799 = vmatprep.subr.bf16.mxu0 %v7856_v27 }
 0x3e3   :  { %6768 = vmatpush3.bf16.msra.mxu1 %v7832_v31 }
 0x3e4   :  { %6769 = vmatprep.subr.bf16.mxu1 %v7834_v33  ;;  %6800 = vmatpush3.bf16.msra.mxu0 %v7857_v49 }
 0x3e7   :  { %6770 = vmatpush3.bf16.msra.mxu1 %v7836_v35 }
 0x3e8   :  { %6771 = vmatprep.subr.bf16.mxu1 %v7838_v36 }
 0x3eb   :  { %6772 = vmatpush3.bf16.msra.mxu1 %v7840_v38 }
 0x3ec   :  { %6773 = vmatprep.subr.bf16.mxu1 %v7842_v62 }
 0x3ef   :  { %6774 = vmatpush3.bf16.msra.mxu1 %v7844_v41 }
 0x3f0   :  { %6775 = vmatprep.subr.bf16.mxu1 %v7846_v52 }
 0x3f3   :  { %6776 = vmatpush3.bf16.msra.mxu1 %v7848_v7 }
 0x3f4   :  { %6777 = vmatprep.subr.bf16.mxu1 %v7850_v45 }
 0x3f7   :  { %6778 = vmatpush3.bf16.msra.mxu1 %v7852_v11 }
 0x499   :  { %v5491_v18 = vpop.f32.mrb[20].mxu0 }
 0x49a   :  { %v5493_v55 = vpop.f32.mrb[21].mxu0  ;;  %v5492_v32 = vadd.f32 %v5491_v18, %v5002_v1 }
 0x49b   :  { %v5495_v56 = vpop.f32.mrb[22].mxu0  ;;  %v5494_v10 = vadd.f32 %v5493_v55, %v5006_v4 }
 0x49c   :  { %v5496_v57 = vpop.f32.mrb[23].mxu0 }
 0x4a5   :  { %v5450_v59 = vpop.f32.mrb[28].mxu1 }
 0x4a6   :  { %v6821_v60 = vadd.f32 %v5450_v59, %v4994_v23  ;;  %v5452_v61 = vpop.f32.mrb[29].mxu1 }
 0x4a7   :  { %v6822_v63 = vadd.f32 %v5452_v61, %v4998_v15  ;;  %v5454_v0 = vpop.f32.mrb[30].mxu1 }
 0x4a8   :  { %v5539_v2 = vmax.f32 %v6821_v60, 0.0  ;;  %v5455_v3 = vpop.f32.mrb[31].mxu1 }
 0x4a9   :  { %v5540_v6 = vmax.f32 %v6822_v63, 0.0 }
 0x4aa   :  { %v5543_v9 = vpack.c.bf16 %v5539_v2, %v5539_v2 }
 0x4ab   :  { %v5544_v8 = vpack.c.bf16 %v5540_v6, %v5540_v6 }
 0x4ad   :  { %v5532_v50 = vpop.f32.mrb[32].mxu1  ;;  %5842 = vmatprep.mubr.bf16.mxu1 %v5544_v8 }
 0x4ae   :  { %v5533_v53 = vadd.f32 %v5532_v50, %v5492_v32  ;;  %v5534_v12 = vpop.f32.mrb[33].mxu1  ;;  %5843 = vmatmul.mubr.bf16.vlgmr.msra.gmra.mrb[36].mxu1 %v5543_v9 }
 0x4af   :  { %v5535_v14 = vadd.f32 %v5534_v12, %v5494_v10  ;;  %v5536_v16 = vpop.f32.mrb[34].mxu1 }
 0x4b0   :  { %v5541_v5 = vmax.f32 %v5533_v53, 0.0  ;;  %v5537_v20 = vpop.f32.mrb[35].mxu1 }
 0x4b1   :  { %v5542_v19 = vmax.f32 %v5535_v14, 0.0 }
 0x4b2   :  { %v5545_v25 = vpack.c.bf16 %v5541_v5, %v5541_v5 }
 0x4b3   :  { %v5546_v21 = vpack.c.bf16 %v5542_v19, %v5542_v19 }
 0x4b5   :  { %5882 = vmatprep.mubr.bf16.mxu0 %v5546_v21 }
 0x4b6   :  { %5883 = vmatmul.mubr.bf16.vlgmr.msra.gmra.mrb[24].mxu0 %v5545_v25 }
 0x581   :  { %v6779_v48 = vpop.f32.mrb[36].mxu1 }
 0x582   :  { %v6780_v54 = vpop.f32.mrb[37].mxu1 }
 0x583   :  { %v6781_v26 = vadd.f32 %v6780_v54, %v6779_v48  ;;  %v6782_v17 = vpop.f32.mrb[38].mxu1 }
 0x584   :  { %v6783_v51 = vpop.f32.mrb[39].mxu1 }
 0x585   :  { %v5845_v31 = vadd.f32 %v6781_v26, %v6574_v29 }
 0x589   :  { %v6801_v28 = vpop.f32.mrb[24].mxu0 }
 0x58a   :  { %v6802_v30 = vpop.f32.mrb[25].mxu0 }
 0x58b   :  { %v6803_v33 = vadd.f32 %v6802_v30, %v6801_v28  ;;  %v6804_v34 = vpop.f32.mrb[26].mxu0 }
 0x58c   :  { %v6805_v35 = vpop.f32.mrb[27].mxu0 }
 0x58d   :  { %v5885_v22 = vadd.f32 %v6803_v33, %v5845_v31 }
 0x58f   :  { %5890 = vst [vmem:[%s10183_s9] sm:$0xff] %v5885_v22 }

</bundles_post_ra>
